<compile_context>
chip_gen: v7x
topology: tpu7x:2x2x1
jax: 0.10.0
libtpu: 0.0.40
codegen_flags: <defaults>
</compile_context>

<pallas_src>
import math
from functools import partial

import jax
import jax.numpy as jnp
from jax.experimental import pallas as pl
from jax.experimental.pallas import tpu as pltpu


NC_PAD = 128  # lane-dense classifier output width (sliced to num_classes in glue)


def _full_spec(shape):
    nd = len(shape)
    return pl.BlockSpec(shape, lambda i: (0,) * nd)


# ----------------------------------------------------------------------------
# Patch-embedding kernel: [B*P, K] @ [K, E] + [1, E]
# bf16 matmul operands, f32 accumulation (single full-array block).
# ----------------------------------------------------------------------------
def _patch_embed_kernel(x_ref, w_ref, b_ref, o_ref):
    o_ref[...] = (
        jnp.dot(x_ref[...], w_ref[...], preferred_element_type=jnp.float32)
        + b_ref[...]
    )


def patch_embed(patches_bf16, w_bf16, b_f32):
    M, K = patches_bf16.shape
    _, E = w_bf16.shape
    return pl.pallas_call(
        _patch_embed_kernel,
        out_shape=jax.ShapeDtypeStruct((M, E), jnp.float32),
        grid=(1,),
        in_specs=[_full_spec((M, K)), _full_spec((K, E)), _full_spec((1, E))],
        out_specs=pl.BlockSpec((M, E), lambda i: (0, 0)),
    )(patches_bf16, w_bf16, b_f32)


# ----------------------------------------------------------------------------
# Fused encoder stack + classifier kernel
# ----------------------------------------------------------------------------
def _layernorm(x, gamma, beta, eps=1e-5):
    mean = jnp.mean(x, axis=-1, keepdims=True)
    var = jnp.mean((x - mean) ** 2, axis=-1, keepdims=True)
    return (x - mean) * jax.lax.rsqrt(var + eps) * gamma + beta


def _fused_vit_kernel(
    x_ref,
    wqkv_ref, bqkv_ref, wo_ref, bo_ref,
    g1_ref, be1_ref, w1_ref, b1_ref, w2_ref, b2_ref, g2_ref, be2_ref,
    wcls_ref, bcls_ref,
    o_ref,
    attn_scr,
    *, B, S, E, num_heads, num_layers,
):
    hd = E // num_heads
    scale = 1.0 / math.sqrt(hd)
    BS = B * S

    x = x_ref[...]              # [B*S, E] f32 residual stream, resident in VMEM

    # Block-diagonal attention bias built in-kernel (hoisted out of the layer
    # loop): 0 within an image, -1e9 across images.  Comparison-only iota math
    # (no integer division) so it lowers cleanly on the VPU.
    r = jax.lax.broadcasted_iota(jnp.int32, (BS, BS), 0)
    c = jax.lax.broadcasted_iota(jnp.int32, (BS, BS), 1)
    same = None
    for b in range(B):  # static unroll, B is tiny
        in_r = (r >= b * S) & (r < (b + 1) * S)
        in_c = (c >= b * S) & (c < (b + 1) * S)
        blk = in_r & in_c
        same = blk if same is None else (same | blk)
    attn_bias = jnp.where(same, 0.0, -1e9).astype(jnp.float32)   # [B*S, B*S]

    # Static unroll over layers (num_layers is tiny); weights for all layers
    # are already resident in VMEM as stacked [L, ...] blocks.
    for l in range(num_layers):
        xb = x.astype(jnp.bfloat16)

        # Fused QKV projection: one [B*S, E] @ [E, 3E] MXU pass (bf16, f32 acc).
        qkv = (jnp.dot(xb, wqkv_ref[l], preferred_element_type=jnp.float32)
               + bqkv_ref[l])                                   # [B*S, 3E] f32

        # Per-head attention; batch stays folded into rows via block-diag bias.
        for h in range(num_heads):
            qh = qkv[:, h * hd:(h + 1) * hd].astype(jnp.bfloat16)
            kh = qkv[:, E + h * hd:E + (h + 1) * hd].astype(jnp.bfloat16)
            vh = qkv[:, 2 * E + h * hd:2 * E + (h + 1) * hd].astype(jnp.bfloat16)

            s = (jnp.einsum("qd,kd->qk", qh, kh,
                            preferred_element_type=jnp.float32) * scale
                 + attn_bias)                                    # [B*S, B*S] f32
            s = s - jnp.max(s, axis=-1, keepdims=True)
            p = jnp.exp(s)
            p = p * pl.reciprocal(jnp.sum(p, axis=-1, keepdims=True), approx=True)

            head_out = jnp.dot(p.astype(jnp.bfloat16), vh,
                               preferred_element_type=jnp.float32)  # [B*S, hd]
            # Write each head's output directly into its lane offsets.
            attn_scr[:, pl.ds(h * hd, hd)] = head_out

        attn = (jnp.dot(attn_scr[...].astype(jnp.bfloat16), wo_ref[l],
                        preferred_element_type=jnp.float32) + bo_ref[l])

        h1 = _layernorm(x + attn, g1_ref[l], be1_ref[l])          # f32

        ffn = (jnp.dot(h1.astype(jnp.bfloat16), w1_ref[l],
                       preferred_element_type=jnp.float32) + b1_ref[l])
        ffn = jnp.maximum(ffn, 0.0)
        ffn = (jnp.dot(ffn.astype(jnp.bfloat16), w2_ref[l],
                       preferred_element_type=jnp.float32) + b2_ref[l])

        x = _layernorm(h1 + ffn, g2_ref[l], be2_ref[l])           # f32

    # Classifier on the [CLS] token of each image (row b*S), lane-dense output.
    cls_rows = jnp.concatenate([x[b * S:b * S + 1, :] for b in range(B)], axis=0)
    o_ref[...] = (jnp.dot(cls_rows.astype(jnp.bfloat16), wcls_ref[...],
                          preferred_element_type=jnp.float32) + bcls_ref[...])


def vit_encode_classify(tokens_flat, lp, w_cls, b_cls,
                        *, B, S, E, num_heads, num_layers):
    inputs = [
        tokens_flat,
        lp["wqkv"], lp["bqkv"], lp["wo"], lp["bo"],
        lp["g1"], lp["be1"], lp["w1"], lp["b1"], lp["w2"], lp["b2"],
        lp["g2"], lp["be2"],
        w_cls, b_cls,
    ]
    in_specs = [_full_spec(a.shape) for a in inputs]
    return pl.pallas_call(
        partial(_fused_vit_kernel, B=B, S=S, E=E,
                num_heads=num_heads, num_layers=num_layers),
        out_shape=jax.ShapeDtypeStruct((B, NC_PAD), jnp.float32),
        grid=(1,),
        in_specs=in_specs,
        out_specs=pl.BlockSpec((B, NC_PAD), lambda i: (0, 0)),
        scratch_shapes=[pltpu.VMEM((B * S, E), jnp.float32)],
        compiler_params=pltpu.CompilerParams(dimension_semantics=("arbitrary",)),
    )(*inputs)


# ----------------------------------------------------------------------------
# Parameter construction (deterministic, synthetic)
# ----------------------------------------------------------------------------
def init_params(key, num_channels, patch_size, embedding_size, num_classes,
                num_heads, num_layers):
    K = num_channels * patch_size * patch_size
    E = embedding_size
    L = num_layers

    def nrm(k, shape, s=0.02, dtype=jnp.float32):
        return (jax.random.normal(k, shape, jnp.float32) * s).astype(dtype)

    keys = jax.random.split(key, 5)
    w_cls = jnp.zeros((E, NC_PAD), jnp.bfloat16)
    w_cls = w_cls.at[:, :num_classes].set(
        nrm(keys[3], (E, num_classes), dtype=jnp.bfloat16))

    params = {
        # Conv2d weight reshaped to a matmul: [E, C, ps, ps] -> [K, E]  (bf16)
        "w_patch": nrm(keys[0], (K, E), dtype=jnp.bfloat16),
        "b_patch": jnp.zeros((1, E), jnp.float32),
        "class_token": nrm(keys[1], (1, 1, E), s=1.0),
        "pos_emb": nrm(keys[2], (1, 17, E), s=1.0),
        # Classifier padded to 128 output lanes (zero columns), sliced in glue.
        "w_cls": w_cls,
        "b_cls": jnp.zeros((1, NC_PAD), jnp.float32),
    }

    lk = jax.random.split(keys[4], 4)
    params["layers"] = {
        "wqkv": nrm(lk[0], (L, E, 3 * E), dtype=jnp.bfloat16),
        "bqkv": jnp.zeros((L, 1, 3 * E), jnp.float32),
        "wo":   nrm(lk[1], (L, E, E), dtype=jnp.bfloat16),
        "bo":   jnp.zeros((L, 1, E), jnp.float32),
        "g1":   jnp.ones((L, 1, E), jnp.float32),
        "be1":  jnp.zeros((L, 1, E), jnp.float32),
        "w1":   nrm(lk[2], (L, E, 4 * E), dtype=jnp.bfloat16),
        "b1":   jnp.zeros((L, 1, 4 * E), jnp.float32),
        "w2":   nrm(lk[3], (L, 4 * E, E), dtype=jnp.bfloat16),
        "b2":   jnp.zeros((L, 1, E), jnp.float32),
        "g2":   jnp.ones((L, 1, E), jnp.float32),
        "be2":  jnp.zeros((L, 1, E), jnp.float32),
    }
    return params


# ----------------------------------------------------------------------------
# Full forward pass
# ----------------------------------------------------------------------------
def vit_forward(x_nchw, params, patch_size, num_heads, num_layers, num_classes):
    B, C, Hh, Ww = x_nchw.shape
    ps = patch_size
    Hp, Wp = Hh // ps, Ww // ps
    P = Hp * Wp
    E = params["w_patch"].shape[1]
    S = P + 1

    # --- glue (layout only): unfold NCHW into patch rows, (c, kh, kw) order
    patches = x_nchw.reshape(B, C, Hp, ps, Wp, ps)
    patches = patches.transpose(0, 2, 4, 1, 3, 5).reshape(B * P, C * ps * ps)

    # --- Pallas: patch-embedding matmul (== strided Conv2d)
    emb = patch_embed(patches.astype(jnp.bfloat16),
                      params["w_patch"], params["b_patch"])      # [B*P, E] f32

    # --- glue (layout only): reproduce torch `.view(B, -1, E)` on the NCHW
    #     conv output (channel/space scramble), prepend CLS, add positions.
    conv_out = jnp.transpose(emb.reshape(B, P, E), (0, 2, 1))    # [B, E, P]
    tokens = conv_out.reshape(B, P, E)                           # scrambled [B,P,E]
    cls = jnp.broadcast_to(params["class_token"], (B, 1, E))
    tokens = jnp.concatenate([cls, tokens], axis=1) + params["pos_emb"]  # [B,S,E]
    tokens_flat = tokens.reshape(B * S, E).astype(jnp.float32)

    # --- Pallas: fused encoder stack + classifier (lane-dense 128-wide logits)
    logits_padded = vit_encode_classify(
        tokens_flat, params["layers"],
        params["w_cls"], params["b_cls"],
        B=B, S=S, E=E, num_heads=num_heads, num_layers=num_layers)

    return logits_padded[:, :num_classes]


if __name__ == "__main__":
    # Small config implied by the module: 17 positions => 16 patches.
    image_size, patch_size = 16, 4
    num_channels, num_classes = 4, 10
    embedding_size, num_heads, num_layers = 32, 4, 2
    batch = 2
    assert (image_size // patch_size) ** 2 == 16  # position_embeddings fixed at 17

    key = jax.random.PRNGKey(0)
    k_x, k_p = jax.random.split(key)
    x = jax.random.normal(k_x, (batch, num_channels, image_size, image_size),
                          jnp.float32)
    params = init_params(k_p, num_channels, patch_size, embedding_size,
                         num_classes, num_heads, num_layers)

    fwd = jax.jit(partial(vit_forward, patch_size=patch_size,
                          num_heads=num_heads, num_layers=num_layers,
                          num_classes=num_classes))
    logits = fwd(x, params)
    jax.block_until_ready(logits)
    assert logits.shape == (batch, num_classes)
    assert bool(jnp.all(jnp.isfinite(logits)))
    print("KERNEL_OK")
</pallas_src>

<mosaic_0001>
module attributes {stable_mosaic.version = 11 : i64} {
  func.func @_patch_embed_kernel(%arg0: i32, %arg1: memref<32x64xbf16, #tpu.memory_space<vmem>>, %arg2: memref<64x32xbf16, #tpu.memory_space<vmem>>, %arg3: memref<1x32xf32, #tpu.memory_space<vmem>>, %arg4: memref<32x32xf32, #tpu.memory_space<vmem>>) attributes {dimension_semantics = [#tpu.dimension_semantics<arbitrary>], iteration_bounds = array<i64: 1>, scalar_prefetch = 0 : i64, scratch_operands = 0 : i64, tpu.core_type = #tpu.core_type<tc>, window_params = [{pipeline_mode = #tpu.pipeline_mode<synchronous>, transform_indices = @transform_0, window_bounds = array<i64: 32, 64>}, {pipeline_mode = #tpu.pipeline_mode<synchronous>, transform_indices = @transform_1, window_bounds = array<i64: 64, 32>}, {pipeline_mode = #tpu.pipeline_mode<synchronous>, transform_indices = @transform_2, window_bounds = array<i64: 1, 32>}, {pipeline_mode = #tpu.pipeline_mode<synchronous>, transform_indices = @transform_3, window_bounds = array<i64: 32, 32>}]} {
    %c0 = arith.constant 0 : index
    %c0_0 = arith.constant 0 : index
    %0 = vector.load %arg1[%c0, %c0_0] : memref<32x64xbf16, #tpu.memory_space<vmem>>, vector<32x64xbf16>
    %c0_1 = arith.constant 0 : index
    %c0_2 = arith.constant 0 : index
    %1 = vector.load %arg2[%c0_1, %c0_2] : memref<64x32xbf16, #tpu.memory_space<vmem>>, vector<64x32xbf16>
    %cst = arith.constant dense<0.000000e+00> : vector<32x32xf32>
    %2 = tpu.matmul %0, %1, %cst {dimension_numbers = #tpu.dot_dimension_numbers<[1], [0], [0], [1], [0, 0, 1, 1], [], []>} : vector<32x64xbf16>, vector<64x32xbf16>, vector<32x32xf32> -> vector<32x32xf32>
    %c0_3 = arith.constant 0 : index
    %c0_4 = arith.constant 0 : index
    %3 = vector.load %arg3[%c0_3, %c0_4] : memref<1x32xf32, #tpu.memory_space<vmem>>, vector<1x32xf32>
    %4 = vector.broadcast %3 : vector<1x32xf32> to vector<32x32xf32>
    %5 = arith.addf %2, %4 : vector<32x32xf32>
    %c0_5 = arith.constant 0 : index
    %c0_6 = arith.constant 0 : index
    %6 = vector.load %arg4[%c0_5, %c0_6] : memref<32x32xf32, #tpu.memory_space<vmem>>, vector<32x32xf32>
    tpu.vector_store %arg4[%c0_5, %c0_6], %5 {strides = array<i32>} : memref<32x32xf32, #tpu.memory_space<vmem>>, vector<32x32xf32>,
    return
  }
  func.func @transform_0(%arg0: i32) -> (i32, i32) {
    %c0_i32 = arith.constant 0 : i32
    %c0_i32_0 = arith.constant 0 : i32
    %c0_i32_1 = arith.constant 0 : i32
    return %c0_i32, %c0_i32_0 : i32, i32
  }
  func.func @transform_1(%arg0: i32) -> (i32, i32) {
    %c0_i32 = arith.constant 0 : i32
    %c0_i32_0 = arith.constant 0 : i32
    %c0_i32_1 = arith.constant 0 : i32
    return %c0_i32, %c0_i32_0 : i32, i32
  }
  func.func @transform_2(%arg0: i32) -> (i32, i32) {
    %c0_i32 = arith.constant 0 : i32
    %c0_i32_0 = arith.constant 0 : i32
    %c0_i32_1 = arith.constant 0 : i32
    return %c0_i32, %c0_i32_0 : i32, i32
  }
  func.func @transform_3(%arg0: i32) -> (i32, i32) {
    %c0_i32 = arith.constant 0 : i32
    %c0_i32_0 = arith.constant 0 : i32
    %c0_i32_1 = arith.constant 0 : i32
    return %c0_i32, %c0_i32_0 : i32, i32
  }
}

module attributes {stable_mosaic.version = 11 : i64} {
  func.func @_fused_vit_kernel(%arg0: i32, %arg1: memref<34x32xf32, #tpu.memory_space<vmem>>, %arg2: memref<2x32x96xbf16, #tpu.memory_space<vmem>>, %arg3: memref<2x1x96xf32, #tpu.memory_space<vmem>>, %arg4: memref<2x32x32xbf16, #tpu.memory_space<vmem>>, %arg5: memref<2x1x32xf32, #tpu.memory_space<vmem>>, %arg6: memref<2x1x32xf32, #tpu.memory_space<vmem>>, %arg7: memref<2x1x32xf32, #tpu.memory_space<vmem>>, %arg8: memref<2x32x128xbf16, #tpu.memory_space<vmem>>, %arg9: memref<2x1x128xf32, #tpu.memory_space<vmem>>, %arg10: memref<2x128x32xbf16, #tpu.memory_space<vmem>>, %arg11: memref<2x1x32xf32, #tpu.memory_space<vmem>>, %arg12: memref<2x1x32xf32, #tpu.memory_space<vmem>>, %arg13: memref<2x1x32xf32, #tpu.memory_space<vmem>>, %arg14: memref<32x128xbf16, #tpu.memory_space<vmem>>, %arg15: memref<1x128xf32, #tpu.memory_space<vmem>>, %arg16: memref<2x128xf32, #tpu.memory_space<vmem>>, %arg17: memref<34x32xf32, #tpu.memory_space<vmem>>) attributes {dimension_semantics = [#tpu.dimension_semantics<arbitrary>], iteration_bounds = array<i64: 1>, scalar_prefetch = 0 : i64, scratch_operands = 1 : i64, tpu.core_type = #tpu.core_type<tc>, window_params = [{pipeline_mode = #tpu.pipeline_mode<synchronous>, transform_indices = @transform_0, window_bounds = array<i64: 34, 32>}, {pipeline_mode = #tpu.pipeline_mode<synchronous>, transform_indices = @transform_1, window_bounds = array<i64: 2, 32, 96>}, {pipeline_mode = #tpu.pipeline_mode<synchronous>, transform_indices = @transform_2, window_bounds = array<i64: 2, 1, 96>}, {pipeline_mode = #tpu.pipeline_mode<synchronous>, transform_indices = @transform_3, window_bounds = array<i64: 2, 32, 32>}, {pipeline_mode = #tpu.pipeline_mode<synchronous>, transform_indices = @transform_4, window_bounds = array<i64: 2, 1, 32>}, {pipeline_mode = #tpu.pipeline_mode<synchronous>, transform_indices = @transform_5, window_bounds = array<i64: 2, 1, 32>}, {pipeline_mode = #tpu.pipeline_mode<synchronous>, transform_indices = @transform_6, window_bounds = array<i64: 2, 1, 32>}, {pipeline_mode = #tpu.pipeline_mode<synchronous>, transform_indices = @transform_7, window_bounds = array<i64: 2, 32, 128>}, {pipeline_mode = #tpu.pipeline_mode<synchronous>, transform_indices = @transform_8, window_bounds = array<i64: 2, 1, 128>}, {pipeline_mode = #tpu.pipeline_mode<synchronous>, transform_indices = @transform_9, window_bounds = array<i64: 2, 128, 32>}, {pipeline_mode = #tpu.pipeline_mode<synchronous>, transform_indices = @transform_10, window_bounds = array<i64: 2, 1, 32>}, {pipeline_mode = #tpu.pipeline_mode<synchronous>, transform_indices = @transform_11, window_bounds = array<i64: 2, 1, 32>}, {pipeline_mode = #tpu.pipeline_mode<synchronous>, transform_indices = @transform_12, window_bounds = array<i64: 2, 1, 32>}, {pipeline_mode = #tpu.pipeline_mode<synchronous>, transform_indices = @transform_13, window_bounds = array<i64: 32, 128>}, {pipeline_mode = #tpu.pipeline_mode<synchronous>, transform_indices = @transform_14, window_bounds = array<i64: 1, 128>}, {pipeline_mode = #tpu.pipeline_mode<synchronous>, transform_indices = @transform_15, window_bounds = array<i64: 2, 128>}]} {
    %c0 = arith.constant 0 : index
    %c0_0 = arith.constant 0 : index
    %0 = vector.load %arg1[%c0, %c0_0] : memref<34x32xf32, #tpu.memory_space<vmem>>, vector<34x32xf32>
    %1 = tpu.iota {dimensions = array<i32: 0>} : vector<34x34xi32>
    %2 = tpu.iota {dimensions = array<i32: 1>} : vector<34x34xi32>
    %c0_i32 = arith.constant 0 : i32
    %3 = vector.broadcast %c0_i32 : i32 to vector<34x34xi32>
    %4 = arith.cmpi sge, %1, %3 : vector<34x34xi32>
    %c17_i32 = arith.constant 17 : i32
    %5 = vector.broadcast %c17_i32 : i32 to vector<34x34xi32>
    %6 = arith.cmpi slt, %1, %5 : vector<34x34xi32>
    %7 = arith.andi %4, %6 : vector<34x34xi1>
    %c0_i32_1 = arith.constant 0 : i32
    %8 = vector.broadcast %c0_i32_1 : i32 to vector<34x34xi32>
    %9 = arith.cmpi sge, %2, %8 : vector<34x34xi32>
    %c17_i32_2 = arith.constant 17 : i32
    %10 = vector.broadcast %c17_i32_2 : i32 to vector<34x34xi32>
    %11 = arith.cmpi slt, %2, %10 : vector<34x34xi32>
    %12 = arith.andi %9, %11 : vector<34x34xi1>
    %13 = arith.andi %7, %12 : vector<34x34xi1>
    %c17_i32_3 = arith.constant 17 : i32
    %14 = vector.broadcast %c17_i32_3 : i32 to vector<34x34xi32>
    %15 = arith.cmpi sge, %1, %14 : vector<34x34xi32>
    %c34_i32 = arith.constant 34 : i32
    %16 = vector.broadcast %c34_i32 : i32 to vector<34x34xi32>
    %17 = arith.cmpi slt, %1, %16 : vector<34x34xi32>
    %18 = arith.andi %15, %17 : vector<34x34xi1>
    %c17_i32_4 = arith.constant 17 : i32
    %19 = vector.broadcast %c17_i32_4 : i32 to vector<34x34xi32>
    %20 = arith.cmpi sge, %2, %19 : vector<34x34xi32>
    %c34_i32_5 = arith.constant 34 : i32
    %21 = vector.broadcast %c34_i32_5 : i32 to vector<34x34xi32>
    %22 = arith.cmpi slt, %2, %21 : vector<34x34xi32>
    %23 = arith.andi %20, %22 : vector<34x34xi1>
    %24 = arith.andi %18, %23 : vector<34x34xi1>
    %25 = arith.ori %13, %24 : vector<34x34xi1>
    %cst = arith.constant 0.000000e+00 : f32
    %cst_6 = arith.constant -1.000000e+09 : f32
    %26 = vector.broadcast %cst : f32 to vector<34x34xf32>
    %27 = vector.broadcast %cst_6 : f32 to vector<34x34xf32>
    %28 = arith.select %25, %26, %27 : vector<34x34xi1>, vector<34x34xf32>
    %29 = arith.truncf %0 : vector<34x32xf32> to vector<34x32xbf16>
    %c0_7 = arith.constant 0 : index
    %c0_8 = arith.constant 0 : index
    %c0_9 = arith.constant 0 : index
    %30 = vector.load %arg2[%c0_7, %c0_8, %c0_9] : memref<2x32x96xbf16, #tpu.memory_space<vmem>>, vector<1x32x96xbf16>
    %31 = vector.shape_cast %30 : vector<1x32x96xbf16> to vector<32x96xbf16>
    %cst_10 = arith.constant dense<0.000000e+00> : vector<34x96xf32>
    %32 = tpu.matmul %29, %31, %cst_10 {dimension_numbers = #tpu.dot_dimension_numbers<[1], [0], [0], [1], [0, 0, 1, 1], [], []>} : vector<34x32xbf16>, vector<32x96xbf16>, vector<34x96xf32> -> vector<34x96xf32>
    %c0_11 = arith.constant 0 : index
    %c0_12 = arith.constant 0 : index
    %c0_13 = arith.constant 0 : index
    %33 = vector.load %arg3[%c0_11, %c0_12, %c0_13] : memref<2x1x96xf32, #tpu.memory_space<vmem>>, vector<1x1x96xf32>
    %34 = vector.shape_cast %33 : vector<1x1x96xf32> to vector<1x96xf32>
    %35 = vector.broadcast %34 : vector<1x96xf32> to vector<34x96xf32>
    %36 = arith.addf %32, %35 : vector<34x96xf32>
    %37 = vector.extract_strided_slice %36 {offsets = [0, 0], sizes = [34, 8], strides = [1, 1]} : vector<34x96xf32> to vector<34x8xf32>
    %38 = arith.truncf %37 : vector<34x8xf32> to vector<34x8xbf16>
    %39 = vector.extract_strided_slice %36 {offsets = [0, 32], sizes = [34, 8], strides = [1, 1]} : vector<34x96xf32> to vector<34x8xf32>
    %40 = arith.truncf %39 : vector<34x8xf32> to vector<34x8xbf16>
    %41 = vector.extract_strided_slice %36 {offsets = [0, 64], sizes = [34, 8], strides = [1, 1]} : vector<34x96xf32> to vector<34x8xf32>
    %42 = arith.truncf %41 : vector<34x8xf32> to vector<34x8xbf16>
    "tpu.trace_start"() <{level = 10 : i32, message = "qd,kd->qk"}> : () -> ()
    %cst_14 = arith.constant dense<0.000000e+00> : vector<34x34xf32>
    %43 = tpu.matmul %38, %40, %cst_14 {dimension_numbers = #tpu.dot_dimension_numbers<[1], [1], [0], [0], [0, 0, 1, 0], [], []>} : vector<34x8xbf16>, vector<34x8xbf16>, vector<34x34xf32> -> vector<34x34xf32>
    "tpu.trace_stop"() : () -> ()
    %cst_15 = arith.constant 0.353553385 : f32
    %44 = vector.broadcast %cst_15 : f32 to vector<34x34xf32>
    %45 = arith.mulf %43, %44 : vector<34x34xf32>
    %46 = arith.addf %45, %28 : vector<34x34xf32>
    %cst_16 = arith.constant dense<0xFF800000> : vector<34xf32>
    %47 = vector.multi_reduction <maximumf>, %46, %cst_16 [1] : vector<34x34xf32> to vector<34xf32>
    %48 = vector.shape_cast %47 : vector<34xf32> to vector<34x1xf32>
    %49 = vector.broadcast %48 : vector<34x1xf32> to vector<34x34xf32>
    %50 = arith.subf %46, %49 : vector<34x34xf32>
    %51 = math.exp %50 : vector<34x34xf32>
    %cst_17 = arith.constant dense<0.000000e+00> : vector<34xf32>
    %52 = vector.multi_reduction <add>, %51, %cst_17 [1] : vector<34x34xf32> to vector<34xf32>
    %53 = vector.shape_cast %52 : vector<34xf32> to vector<34x1xf32>
    %54 = tpu.reciprocal %53 {approx = true} : vector<34x1xf32> -> vector<34x1xf32>
    %55 = vector.broadcast %54 : vector<34x1xf32> to vector<34x34xf32>
    %56 = arith.mulf %51, %55 : vector<34x34xf32>
    %57 = arith.truncf %56 : vector<34x34xf32> to vector<34x34xbf16>
    %cst_18 = arith.constant dense<0.000000e+00> : vector<34x8xf32>
    %58 = tpu.matmul %57, %42, %cst_18 {dimension_numbers = #tpu.dot_dimension_numbers<[1], [0], [0], [1], [0, 0, 1, 1], [], []>} : vector<34x34xbf16>, vector<34x8xbf16>, vector<34x8xf32> -> vector<34x8xf32>
    %c0_19 = arith.constant 0 : index
    %c0_20 = arith.constant 0 : index
    %59 = vector.load %arg17[%c0_19, %c0_20] : memref<34x32xf32, #tpu.memory_space<vmem>>, vector<34x8xf32>
    tpu.vector_store %arg17[%c0_19, %c0_20], %58 {strides = array<i32>} : memref<34x32xf32, #tpu.memory_space<vmem>>, vector<34x8xf32>,
    %60 = vector.extract_strided_slice %36 {offsets = [0, 8], sizes = [34, 8], strides = [1, 1]} : vector<34x96xf32> to vector<34x8xf32>
    %61 = arith.truncf %60 : vector<34x8xf32> to vector<34x8xbf16>
    %62 = vector.extract_strided_slice %36 {offsets = [0, 40], sizes = [34, 8], strides = [1, 1]} : vector<34x96xf32> to vector<34x8xf32>
    %63 = arith.truncf %62 : vector<34x8xf32> to vector<34x8xbf16>
    %64 = vector.extract_strided_slice %36 {offsets = [0, 72], sizes = [34, 8], strides = [1, 1]} : vector<34x96xf32> to vector<34x8xf32>
    %65 = arith.truncf %64 : vector<34x8xf32> to vector<34x8xbf16>
    "tpu.trace_start"() <{level = 10 : i32, message = "qd,kd->qk"}> : () -> ()
    %cst_21 = arith.constant dense<0.000000e+00> : vector<34x34xf32>
    %66 = tpu.matmul %61, %63, %cst_21 {dimension_numbers = #tpu.dot_dimension_numbers<[1], [1], [0], [0], [0, 0, 1, 0], [], []>} : vector<34x8xbf16>, vector<34x8xbf16>, vector<34x34xf32> -> vector<34x34xf32>
    "tpu.trace_stop"() : () -> ()
    %cst_22 = arith.constant 0.353553385 : f32
    %67 = vector.broadcast %cst_22 : f32 to vector<34x34xf32>
    %68 = arith.mulf %66, %67 : vector<34x34xf32>
    %69 = arith.addf %68, %28 : vector<34x34xf32>
    %cst_23 = arith.constant dense<0xFF800000> : vector<34xf32>
    %70 = vector.multi_reduction <maximumf>, %69, %cst_23 [1] : vector<34x34xf32> to vector<34xf32>
    %71 = vector.shape_cast %70 : vector<34xf32> to vector<34x1xf32>
    %72 = vector.broadcast %71 : vector<34x1xf32> to vector<34x34xf32>
    %73 = arith.subf %69, %72 : vector<34x34xf32>
    %74 = math.exp %73 : vector<34x34xf32>
    %cst_24 = arith.constant dense<0.000000e+00> : vector<34xf32>
    %75 = vector.multi_reduction <add>, %74, %cst_24 [1] : vector<34x34xf32> to vector<34xf32>
    %76 = vector.shape_cast %75 : vector<34xf32> to vector<34x1xf32>
    %77 = tpu.reciprocal %76 {approx = true} : vector<34x1xf32> -> vector<34x1xf32>
    %78 = vector.broadcast %77 : vector<34x1xf32> to vector<34x34xf32>
    %79 = arith.mulf %74, %78 : vector<34x34xf32>
    %80 = arith.truncf %79 : vector<34x34xf32> to vector<34x34xbf16>
    %cst_25 = arith.constant dense<0.000000e+00> : vector<34x8xf32>
    %81 = tpu.matmul %80, %65, %cst_25 {dimension_numbers = #tpu.dot_dimension_numbers<[1], [0], [0], [1], [0, 0, 1, 1], [], []>} : vector<34x34xbf16>, vector<34x8xbf16>, vector<34x8xf32> -> vector<34x8xf32>
    %c0_26 = arith.constant 0 : index
    %c8 = arith.constant 8 : index
    %82 = vector.load %arg17[%c0_26, %c8] : memref<34x32xf32, #tpu.memory_space<vmem>>, vector<34x8xf32>
    tpu.vector_store %arg17[%c0_26, %c8], %81 {strides = array<i32>} : memref<34x32xf32, #tpu.memory_space<vmem>>, vector<34x8xf32>,
    %83 = vector.extract_strided_slice %36 {offsets = [0, 16], sizes = [34, 8], strides = [1, 1]} : vector<34x96xf32> to vector<34x8xf32>
    %84 = arith.truncf %83 : vector<34x8xf32> to vector<34x8xbf16>
    %85 = vector.extract_strided_slice %36 {offsets = [0, 48], sizes = [34, 8], strides = [1, 1]} : vector<34x96xf32> to vector<34x8xf32>
    %86 = arith.truncf %85 : vector<34x8xf32> to vector<34x8xbf16>
    %87 = vector.extract_strided_slice %36 {offsets = [0, 80], sizes = [34, 8], strides = [1, 1]} : vector<34x96xf32> to vector<34x8xf32>
    %88 = arith.truncf %87 : vector<34x8xf32> to vector<34x8xbf16>
    "tpu.trace_start"() <{level = 10 : i32, message = "qd,kd->qk"}> : () -> ()
    %cst_27 = arith.constant dense<0.000000e+00> : vector<34x34xf32>
    %89 = tpu.matmul %84, %86, %cst_27 {dimension_numbers = #tpu.dot_dimension_numbers<[1], [1], [0], [0], [0, 0, 1, 0], [], []>} : vector<34x8xbf16>, vector<34x8xbf16>, vector<34x34xf32> -> vector<34x34xf32>
    "tpu.trace_stop"() : () -> ()
    %cst_28 = arith.constant 0.353553385 : f32
    %90 = vector.broadcast %cst_28 : f32 to vector<34x34xf32>
    %91 = arith.mulf %89, %90 : vector<34x34xf32>
    %92 = arith.addf %91, %28 : vector<34x34xf32>
    %cst_29 = arith.constant dense<0xFF800000> : vector<34xf32>
    %93 = vector.multi_reduction <maximumf>, %92, %cst_29 [1] : vector<34x34xf32> to vector<34xf32>
    %94 = vector.shape_cast %93 : vector<34xf32> to vector<34x1xf32>
    %95 = vector.broadcast %94 : vector<34x1xf32> to vector<34x34xf32>
    %96 = arith.subf %92, %95 : vector<34x34xf32>
    %97 = math.exp %96 : vector<34x34xf32>
    %cst_30 = arith.constant dense<0.000000e+00> : vector<34xf32>
    %98 = vector.multi_reduction <add>, %97, %cst_30 [1] : vector<34x34xf32> to vector<34xf32>
    %99 = vector.shape_cast %98 : vector<34xf32> to vector<34x1xf32>
    %100 = tpu.reciprocal %99 {approx = true} : vector<34x1xf32> -> vector<34x1xf32>
    %101 = vector.broadcast %100 : vector<34x1xf32> to vector<34x34xf32>
    %102 = arith.mulf %97, %101 : vector<34x34xf32>
    %103 = arith.truncf %102 : vector<34x34xf32> to vector<34x34xbf16>
    %cst_31 = arith.constant dense<0.000000e+00> : vector<34x8xf32>
    %104 = tpu.matmul %103, %88, %cst_31 {dimension_numbers = #tpu.dot_dimension_numbers<[1], [0], [0], [1], [0, 0, 1, 1], [], []>} : vector<34x34xbf16>, vector<34x8xbf16>, vector<34x8xf32> -> vector<34x8xf32>
    %c0_32 = arith.constant 0 : index
    %c16 = arith.constant 16 : index
    %105 = vector.load %arg17[%c0_32, %c16] : memref<34x32xf32, #tpu.memory_space<vmem>>, vector<34x8xf32>
    tpu.vector_store %arg17[%c0_32, %c16], %104 {strides = array<i32>} : memref<34x32xf32, #tpu.memory_space<vmem>>, vector<34x8xf32>,
    %106 = vector.extract_strided_slice %36 {offsets = [0, 24], sizes = [34, 8], strides = [1, 1]} : vector<34x96xf32> to vector<34x8xf32>
    %107 = arith.truncf %106 : vector<34x8xf32> to vector<34x8xbf16>
    %108 = vector.extract_strided_slice %36 {offsets = [0, 56], sizes = [34, 8], strides = [1, 1]} : vector<34x96xf32> to vector<34x8xf32>
    %109 = arith.truncf %108 : vector<34x8xf32> to vector<34x8xbf16>
    %110 = vector.extract_strided_slice %36 {offsets = [0, 88], sizes = [34, 8], strides = [1, 1]} : vector<34x96xf32> to vector<34x8xf32>
    %111 = arith.truncf %110 : vector<34x8xf32> to vector<34x8xbf16>
    "tpu.trace_start"() <{level = 10 : i32, message = "qd,kd->qk"}> : () -> ()
    %cst_33 = arith.constant dense<0.000000e+00> : vector<34x34xf32>
    %112 = tpu.matmul %107, %109, %cst_33 {dimension_numbers = #tpu.dot_dimension_numbers<[1], [1], [0], [0], [0, 0, 1, 0], [], []>} : vector<34x8xbf16>, vector<34x8xbf16>, vector<34x34xf32> -> vector<34x34xf32>
    "tpu.trace_stop"() : () -> ()
    %cst_34 = arith.constant 0.353553385 : f32
    %113 = vector.broadcast %cst_34 : f32 to vector<34x34xf32>
    %114 = arith.mulf %112, %113 : vector<34x34xf32>
    %115 = arith.addf %114, %28 : vector<34x34xf32>
    %cst_35 = arith.constant dense<0xFF800000> : vector<34xf32>
    %116 = vector.multi_reduction <maximumf>, %115, %cst_35 [1] : vector<34x34xf32> to vector<34xf32>
    %117 = vector.shape_cast %116 : vector<34xf32> to vector<34x1xf32>
    %118 = vector.broadcast %117 : vector<34x1xf32> to vector<34x34xf32>
    %119 = arith.subf %115, %118 : vector<34x34xf32>
    %120 = math.exp %119 : vector<34x34xf32>
    %cst_36 = arith.constant dense<0.000000e+00> : vector<34xf32>
    %121 = vector.multi_reduction <add>, %120, %cst_36 [1] : vector<34x34xf32> to vector<34xf32>
    %122 = vector.shape_cast %121 : vector<34xf32> to vector<34x1xf32>
    %123 = tpu.reciprocal %122 {approx = true} : vector<34x1xf32> -> vector<34x1xf32>
    %124 = vector.broadcast %123 : vector<34x1xf32> to vector<34x34xf32>
    %125 = arith.mulf %120, %124 : vector<34x34xf32>
    %126 = arith.truncf %125 : vector<34x34xf32> to vector<34x34xbf16>
    %cst_37 = arith.constant dense<0.000000e+00> : vector<34x8xf32>
    %127 = tpu.matmul %126, %111, %cst_37 {dimension_numbers = #tpu.dot_dimension_numbers<[1], [0], [0], [1], [0, 0, 1, 1], [], []>} : vector<34x34xbf16>, vector<34x8xbf16>, vector<34x8xf32> -> vector<34x8xf32>
    %c0_38 = arith.constant 0 : index
    %c24 = arith.constant 24 : index
    %128 = vector.load %arg17[%c0_38, %c24] : memref<34x32xf32, #tpu.memory_space<vmem>>, vector<34x8xf32>
    tpu.vector_store %arg17[%c0_38, %c24], %127 {strides = array<i32>} : memref<34x32xf32, #tpu.memory_space<vmem>>, vector<34x8xf32>,
    %c0_39 = arith.constant 0 : index
    %c0_40 = arith.constant 0 : index
    %129 = vector.load %arg17[%c0_39, %c0_40] : memref<34x32xf32, #tpu.memory_space<vmem>>, vector<34x32xf32>
    %130 = arith.truncf %129 : vector<34x32xf32> to vector<34x32xbf16>
    %c0_41 = arith.constant 0 : index
    %c0_42 = arith.constant 0 : index
    %c0_43 = arith.constant 0 : index
    %131 = vector.load %arg4[%c0_41, %c0_42, %c0_43] : memref<2x32x32xbf16, #tpu.memory_space<vmem>>, vector<1x32x32xbf16>
    %132 = vector.shape_cast %131 : vector<1x32x32xbf16> to vector<32x32xbf16>
    %cst_44 = arith.constant dense<0.000000e+00> : vector<34x32xf32>
    %133 = tpu.matmul %130, %132, %cst_44 {dimension_numbers = #tpu.dot_dimension_numbers<[1], [0], [0], [1], [0, 0, 1, 1], [], []>} : vector<34x32xbf16>, vector<32x32xbf16>, vector<34x32xf32> -> vector<34x32xf32>
    %c0_45 = arith.constant 0 : index
    %c0_46 = arith.constant 0 : index
    %c0_47 = arith.constant 0 : index
    %134 = vector.load %arg5[%c0_45, %c0_46, %c0_47] : memref<2x1x32xf32, #tpu.memory_space<vmem>>, vector<1x1x32xf32>
    %135 = vector.shape_cast %134 : vector<1x1x32xf32> to vector<1x32xf32>
    %136 = vector.broadcast %135 : vector<1x32xf32> to vector<34x32xf32>
    %137 = arith.addf %133, %136 : vector<34x32xf32>
    %138 = arith.addf %0, %137 : vector<34x32xf32>
    %c0_48 = arith.constant 0 : index
    %c0_49 = arith.constant 0 : index
    %c0_50 = arith.constant 0 : index
    %139 = vector.load %arg6[%c0_48, %c0_49, %c0_50] : memref<2x1x32xf32, #tpu.memory_space<vmem>>, vector<1x1x32xf32>
    %140 = vector.shape_cast %139 : vector<1x1x32xf32> to vector<1x32xf32>
    %c0_51 = arith.constant 0 : index
    %c0_52 = arith.constant 0 : index
    %c0_53 = arith.constant 0 : index
    %141 = vector.load %arg7[%c0_51, %c0_52, %c0_53] : memref<2x1x32xf32, #tpu.memory_space<vmem>>, vector<1x1x32xf32>
    %142 = vector.shape_cast %141 : vector<1x1x32xf32> to vector<1x32xf32>
    %cst_54 = arith.constant dense<0.000000e+00> : vector<34xf32>
    %143 = vector.multi_reduction <add>, %138, %cst_54 [1] : vector<34x32xf32> to vector<34xf32>
    %144 = vector.shape_cast %143 : vector<34xf32> to vector<34x1xf32>
    %cst_55 = arith.constant 3.200000e+01 : f32
    %145 = vector.broadcast %cst_55 : f32 to vector<34x1xf32>
    %146 = arith.divf %144, %145 : vector<34x1xf32>
    %147 = vector.broadcast %146 : vector<34x1xf32> to vector<34x32xf32>
    %148 = arith.subf %138, %147 : vector<34x32xf32>
    %149 = arith.mulf %148, %148 : vector<34x32xf32>
    %cst_56 = arith.constant dense<0.000000e+00> : vector<34xf32>
    %150 = vector.multi_reduction <add>, %149, %cst_56 [1] : vector<34x32xf32> to vector<34xf32>
    %151 = vector.shape_cast %150 : vector<34xf32> to vector<34x1xf32>
    %cst_57 = arith.constant 3.200000e+01 : f32
    %152 = vector.broadcast %cst_57 : f32 to vector<34x1xf32>
    %153 = arith.divf %151, %152 : vector<34x1xf32>
    %154 = vector.broadcast %146 : vector<34x1xf32> to vector<34x32xf32>
    %155 = arith.subf %138, %154 : vector<34x32xf32>
    %cst_58 = arith.constant 9.99999974E-6 : f32
    %156 = vector.broadcast %cst_58 : f32 to vector<34x1xf32>
    %157 = arith.addf %153, %156 : vector<34x1xf32>
    %158 = math.rsqrt %157 : vector<34x1xf32>
    %159 = vector.broadcast %158 : vector<34x1xf32> to vector<34x32xf32>
    %160 = arith.mulf %155, %159 : vector<34x32xf32>
    %161 = vector.broadcast %140 : vector<1x32xf32> to vector<34x32xf32>
    %162 = arith.mulf %160, %161 : vector<34x32xf32>
    %163 = vector.broadcast %142 : vector<1x32xf32> to vector<34x32xf32>
    %164 = arith.addf %162, %163 : vector<34x32xf32>
    %165 = arith.truncf %164 : vector<34x32xf32> to vector<34x32xbf16>
    %c0_59 = arith.constant 0 : index
    %c0_60 = arith.constant 0 : index
    %c0_61 = arith.constant 0 : index
    %166 = vector.load %arg8[%c0_59, %c0_60, %c0_61] : memref<2x32x128xbf16, #tpu.memory_space<vmem>>, vector<1x32x128xbf16>
    %167 = vector.shape_cast %166 : vector<1x32x128xbf16> to vector<32x128xbf16>
    %cst_62 = arith.constant dense<0.000000e+00> : vector<34x128xf32>
    %168 = tpu.matmul %165, %167, %cst_62 {dimension_numbers = #tpu.dot_dimension_numbers<[1], [0], [0], [1], [0, 0, 1, 1], [], []>} : vector<34x32xbf16>, vector<32x128xbf16>, vector<34x128xf32> -> vector<34x128xf32>
    %c0_63 = arith.constant 0 : index
    %c0_64 = arith.constant 0 : index
    %c0_65 = arith.constant 0 : index
    %169 = vector.load %arg9[%c0_63, %c0_64, %c0_65] : memref<2x1x128xf32, #tpu.memory_space<vmem>>, vector<1x1x128xf32>
    %170 = vector.shape_cast %169 : vector<1x1x128xf32> to vector<1x128xf32>
    %171 = vector.broadcast %170 : vector<1x128xf32> to vector<34x128xf32>
    %172 = arith.addf %168, %171 : vector<34x128xf32>
    %cst_66 = arith.constant 0.000000e+00 : f32
    %173 = vector.broadcast %cst_66 : f32 to vector<34x128xf32>
    %174 = arith.maximumf %172, %173 : vector<34x128xf32>
    %175 = arith.truncf %174 : vector<34x128xf32> to vector<34x128xbf16>
    %c0_67 = arith.constant 0 : index
    %c0_68 = arith.constant 0 : index
    %c0_69 = arith.constant 0 : index
    %176 = vector.load %arg10[%c0_67, %c0_68, %c0_69] : memref<2x128x32xbf16, #tpu.memory_space<vmem>>, vector<1x128x32xbf16>
    %177 = vector.shape_cast %176 : vector<1x128x32xbf16> to vector<128x32xbf16>
    %cst_70 = arith.constant dense<0.000000e+00> : vector<34x32xf32>
    %178 = tpu.matmul %175, %177, %cst_70 {dimension_numbers = #tpu.dot_dimension_numbers<[1], [0], [0], [1], [0, 0, 1, 1], [], []>} : vector<34x128xbf16>, vector<128x32xbf16>, vector<34x32xf32> -> vector<34x32xf32>
    %c0_71 = arith.constant 0 : index
    %c0_72 = arith.constant 0 : index
    %c0_73 = arith.constant 0 : index
    %179 = vector.load %arg11[%c0_71, %c0_72, %c0_73] : memref<2x1x32xf32, #tpu.memory_space<vmem>>, vector<1x1x32xf32>
    %180 = vector.shape_cast %179 : vector<1x1x32xf32> to vector<1x32xf32>
    %181 = vector.broadcast %180 : vector<1x32xf32> to vector<34x32xf32>
    %182 = arith.addf %178, %181 : vector<34x32xf32>
    %183 = arith.addf %164, %182 : vector<34x32xf32>
    %c0_74 = arith.constant 0 : index
    %c0_75 = arith.constant 0 : index
    %c0_76 = arith.constant 0 : index
    %184 = vector.load %arg12[%c0_74, %c0_75, %c0_76] : memref<2x1x32xf32, #tpu.memory_space<vmem>>, vector<1x1x32xf32>
    %185 = vector.shape_cast %184 : vector<1x1x32xf32> to vector<1x32xf32>
    %c0_77 = arith.constant 0 : index
    %c0_78 = arith.constant 0 : index
    %c0_79 = arith.constant 0 : index
    %186 = vector.load %arg13[%c0_77, %c0_78, %c0_79] : memref<2x1x32xf32, #tpu.memory_space<vmem>>, vector<1x1x32xf32>
    %187 = vector.shape_cast %186 : vector<1x1x32xf32> to vector<1x32xf32>
    %cst_80 = arith.constant dense<0.000000e+00> : vector<34xf32>
    %188 = vector.multi_reduction <add>, %183, %cst_80 [1] : vector<34x32xf32> to vector<34xf32>
    %189 = vector.shape_cast %188 : vector<34xf32> to vector<34x1xf32>
    %cst_81 = arith.constant 3.200000e+01 : f32
    %190 = vector.broadcast %cst_81 : f32 to vector<34x1xf32>
    %191 = arith.divf %189, %190 : vector<34x1xf32>
    %192 = vector.broadcast %191 : vector<34x1xf32> to vector<34x32xf32>
    %193 = arith.subf %183, %192 : vector<34x32xf32>
    %194 = arith.mulf %193, %193 : vector<34x32xf32>
    %cst_82 = arith.constant dense<0.000000e+00> : vector<34xf32>
    %195 = vector.multi_reduction <add>, %194, %cst_82 [1] : vector<34x32xf32> to vector<34xf32>
    %196 = vector.shape_cast %195 : vector<34xf32> to vector<34x1xf32>
    %cst_83 = arith.constant 3.200000e+01 : f32
    %197 = vector.broadcast %cst_83 : f32 to vector<34x1xf32>
    %198 = arith.divf %196, %197 : vector<34x1xf32>
    %199 = vector.broadcast %191 : vector<34x1xf32> to vector<34x32xf32>
    %200 = arith.subf %183, %199 : vector<34x32xf32>
    %cst_84 = arith.constant 9.99999974E-6 : f32
    %201 = vector.broadcast %cst_84 : f32 to vector<34x1xf32>
    %202 = arith.addf %198, %201 : vector<34x1xf32>
    %203 = math.rsqrt %202 : vector<34x1xf32>
    %204 = vector.broadcast %203 : vector<34x1xf32> to vector<34x32xf32>
    %205 = arith.mulf %200, %204 : vector<34x32xf32>
    %206 = vector.broadcast %185 : vector<1x32xf32> to vector<34x32xf32>
    %207 = arith.mulf %205, %206 : vector<34x32xf32>
    %208 = vector.broadcast %187 : vector<1x32xf32> to vector<34x32xf32>
    %209 = arith.addf %207, %208 : vector<34x32xf32>
    %210 = arith.truncf %209 : vector<34x32xf32> to vector<34x32xbf16>
    %c1 = arith.constant 1 : index
    %c0_85 = arith.constant 0 : index
    %c0_86 = arith.constant 0 : index
    %211 = vector.load %arg2[%c1, %c0_85, %c0_86] : memref<2x32x96xbf16, #tpu.memory_space<vmem>>, vector<1x32x96xbf16>
    %212 = vector.shape_cast %211 : vector<1x32x96xbf16> to vector<32x96xbf16>
    %cst_87 = arith.constant dense<0.000000e+00> : vector<34x96xf32>
    %213 = tpu.matmul %210, %212, %cst_87 {dimension_numbers = #tpu.dot_dimension_numbers<[1], [0], [0], [1], [0, 0, 1, 1], [], []>} : vector<34x32xbf16>, vector<32x96xbf16>, vector<34x96xf32> -> vector<34x96xf32>
    %c1_88 = arith.constant 1 : index
    %c0_89 = arith.constant 0 : index
    %c0_90 = arith.constant 0 : index
    %214 = vector.load %arg3[%c1_88, %c0_89, %c0_90] : memref<2x1x96xf32, #tpu.memory_space<vmem>>, vector<1x1x96xf32>
    %215 = vector.shape_cast %214 : vector<1x1x96xf32> to vector<1x96xf32>
    %216 = vector.broadcast %215 : vector<1x96xf32> to vector<34x96xf32>
    %217 = arith.addf %213, %216 : vector<34x96xf32>
    %218 = vector.extract_strided_slice %217 {offsets = [0, 0], sizes = [34, 8], strides = [1, 1]} : vector<34x96xf32> to vector<34x8xf32>
    %219 = arith.truncf %218 : vector<34x8xf32> to vector<34x8xbf16>
    %220 = vector.extract_strided_slice %217 {offsets = [0, 32], sizes = [34, 8], strides = [1, 1]} : vector<34x96xf32> to vector<34x8xf32>
    %221 = arith.truncf %220 : vector<34x8xf32> to vector<34x8xbf16>
    %222 = vector.extract_strided_slice %217 {offsets = [0, 64], sizes = [34, 8], strides = [1, 1]} : vector<34x96xf32> to vector<34x8xf32>
    %223 = arith.truncf %222 : vector<34x8xf32> to vector<34x8xbf16>
    "tpu.trace_start"() <{level = 10 : i32, message = "qd,kd->qk"}> : () -> ()
    %cst_91 = arith.constant dense<0.000000e+00> : vector<34x34xf32>
    %224 = tpu.matmul %219, %221, %cst_91 {dimension_numbers = #tpu.dot_dimension_numbers<[1], [1], [0], [0], [0, 0, 1, 0], [], []>} : vector<34x8xbf16>, vector<34x8xbf16>, vector<34x34xf32> -> vector<34x34xf32>
    "tpu.trace_stop"() : () -> ()
    %cst_92 = arith.constant 0.353553385 : f32
    %225 = vector.broadcast %cst_92 : f32 to vector<34x34xf32>
    %226 = arith.mulf %224, %225 : vector<34x34xf32>
    %227 = arith.addf %226, %28 : vector<34x34xf32>
    %cst_93 = arith.constant dense<0xFF800000> : vector<34xf32>
    %228 = vector.multi_reduction <maximumf>, %227, %cst_93 [1] : vector<34x34xf32> to vector<34xf32>
    %229 = vector.shape_cast %228 : vector<34xf32> to vector<34x1xf32>
    %230 = vector.broadcast %229 : vector<34x1xf32> to vector<34x34xf32>
    %231 = arith.subf %227, %230 : vector<34x34xf32>
    %232 = math.exp %231 : vector<34x34xf32>
    %cst_94 = arith.constant dense<0.000000e+00> : vector<34xf32>
    %233 = vector.multi_reduction <add>, %232, %cst_94 [1] : vector<34x34xf32> to vector<34xf32>
    %234 = vector.shape_cast %233 : vector<34xf32> to vector<34x1xf32>
    %235 = tpu.reciprocal %234 {approx = true} : vector<34x1xf32> -> vector<34x1xf32>
    %236 = vector.broadcast %235 : vector<34x1xf32> to vector<34x34xf32>
    %237 = arith.mulf %232, %236 : vector<34x34xf32>
    %238 = arith.truncf %237 : vector<34x34xf32> to vector<34x34xbf16>
    %cst_95 = arith.constant dense<0.000000e+00> : vector<34x8xf32>
    %239 = tpu.matmul %238, %223, %cst_95 {dimension_numbers = #tpu.dot_dimension_numbers<[1], [0], [0], [1], [0, 0, 1, 1], [], []>} : vector<34x34xbf16>, vector<34x8xbf16>, vector<34x8xf32> -> vector<34x8xf32>
    %c0_96 = arith.constant 0 : index
    %c0_97 = arith.constant 0 : index
    %240 = vector.load %arg17[%c0_96, %c0_97] : memref<34x32xf32, #tpu.memory_space<vmem>>, vector<34x8xf32>
    tpu.vector_store %arg17[%c0_96, %c0_97], %239 {strides = array<i32>} : memref<34x32xf32, #tpu.memory_space<vmem>>, vector<34x8xf32>,
    %241 = vector.extract_strided_slice %217 {offsets = [0, 8], sizes = [34, 8], strides = [1, 1]} : vector<34x96xf32> to vector<34x8xf32>
    %242 = arith.truncf %241 : vector<34x8xf32> to vector<34x8xbf16>
    %243 = vector.extract_strided_slice %217 {offsets = [0, 40], sizes = [34, 8], strides = [1, 1]} : vector<34x96xf32> to vector<34x8xf32>
    %244 = arith.truncf %243 : vector<34x8xf32> to vector<34x8xbf16>
    %245 = vector.extract_strided_slice %217 {offsets = [0, 72], sizes = [34, 8], strides = [1, 1]} : vector<34x96xf32> to vector<34x8xf32>
    %246 = arith.truncf %245 : vector<34x8xf32> to vector<34x8xbf16>
    "tpu.trace_start"() <{level = 10 : i32, message = "qd,kd->qk"}> : () -> ()
    %cst_98 = arith.constant dense<0.000000e+00> : vector<34x34xf32>
    %247 = tpu.matmul %242, %244, %cst_98 {dimension_numbers = #tpu.dot_dimension_numbers<[1], [1], [0], [0], [0, 0, 1, 0], [], []>} : vector<34x8xbf16>, vector<34x8xbf16>, vector<34x34xf32> -> vector<34x34xf32>
    "tpu.trace_stop"() : () -> ()
    %cst_99 = arith.constant 0.353553385 : f32
    %248 = vector.broadcast %cst_99 : f32 to vector<34x34xf32>
    %249 = arith.mulf %247, %248 : vector<34x34xf32>
    %250 = arith.addf %249, %28 : vector<34x34xf32>
    %cst_100 = arith.constant dense<0xFF800000> : vector<34xf32>
    %251 = vector.multi_reduction <maximumf>, %250, %cst_100 [1] : vector<34x34xf32> to vector<34xf32>
    %252 = vector.shape_cast %251 : vector<34xf32> to vector<34x1xf32>
    %253 = vector.broadcast %252 : vector<34x1xf32> to vector<34x34xf32>
    %254 = arith.subf %250, %253 : vector<34x34xf32>
    %255 = math.exp %254 : vector<34x34xf32>
    %cst_101 = arith.constant dense<0.000000e+00> : vector<34xf32>
    %256 = vector.multi_reduction <add>, %255, %cst_101 [1] : vector<34x34xf32> to vector<34xf32>
    %257 = vector.shape_cast %256 : vector<34xf32> to vector<34x1xf32>
    %258 = tpu.reciprocal %257 {approx = true} : vector<34x1xf32> -> vector<34x1xf32>
    %259 = vector.broadcast %258 : vector<34x1xf32> to vector<34x34xf32>
    %260 = arith.mulf %255, %259 : vector<34x34xf32>
    %261 = arith.truncf %260 : vector<34x34xf32> to vector<34x34xbf16>
    %cst_102 = arith.constant dense<0.000000e+00> : vector<34x8xf32>
    %262 = tpu.matmul %261, %246, %cst_102 {dimension_numbers = #tpu.dot_dimension_numbers<[1], [0], [0], [1], [0, 0, 1, 1], [], []>} : vector<34x34xbf16>, vector<34x8xbf16>, vector<34x8xf32> -> vector<34x8xf32>
    %c0_103 = arith.constant 0 : index
    %c8_104 = arith.constant 8 : index
    %263 = vector.load %arg17[%c0_103, %c8_104] : memref<34x32xf32, #tpu.memory_space<vmem>>, vector<34x8xf32>
    tpu.vector_store %arg17[%c0_103, %c8_104], %262 {strides = array<i32>} : memref<34x32xf32, #tpu.memory_space<vmem>>, vector<34x8xf32>,
    %264 = vector.extract_strided_slice %217 {offsets = [0, 16], sizes = [34, 8], strides = [1, 1]} : vector<34x96xf32> to vector<34x8xf32>
    %265 = arith.truncf %264 : vector<34x8xf32> to vector<34x8xbf16>
    %266 = vector.extract_strided_slice %217 {offsets = [0, 48], sizes = [34, 8], strides = [1, 1]} : vector<34x96xf32> to vector<34x8xf32>
    %267 = arith.truncf %266 : vector<34x8xf32> to vector<34x8xbf16>
    %268 = vector.extract_strided_slice %217 {offsets = [0, 80], sizes = [34, 8], strides = [1, 1]} : vector<34x96xf32> to vector<34x8xf32>
    %269 = arith.truncf %268 : vector<34x8xf32> to vector<34x8xbf16>
    "tpu.trace_start"() <{level = 10 : i32, message = "qd,kd->qk"}> : () -> ()
    %cst_105 = arith.constant dense<0.000000e+00> : vector<34x34xf32>
    %270 = tpu.matmul %265, %267, %cst_105 {dimension_numbers = #tpu.dot_dimension_numbers<[1], [1], [0], [0], [0, 0, 1, 0], [], []>} : vector<34x8xbf16>, vector<34x8xbf16>, vector<34x34xf32> -> vector<34x34xf32>
    "tpu.trace_stop"() : () -> ()
    %cst_106 = arith.constant 0.353553385 : f32
    %271 = vector.broadcast %cst_106 : f32 to vector<34x34xf32>
    %272 = arith.mulf %270, %271 : vector<34x34xf32>
    %273 = arith.addf %272, %28 : vector<34x34xf32>
    %cst_107 = arith.constant dense<0xFF800000> : vector<34xf32>
    %274 = vector.multi_reduction <maximumf>, %273, %cst_107 [1] : vector<34x34xf32> to vector<34xf32>
    %275 = vector.shape_cast %274 : vector<34xf32> to vector<34x1xf32>
    %276 = vector.broadcast %275 : vector<34x1xf32> to vector<34x34xf32>
    %277 = arith.subf %273, %276 : vector<34x34xf32>
    %278 = math.exp %277 : vector<34x34xf32>
    %cst_108 = arith.constant dense<0.000000e+00> : vector<34xf32>
    %279 = vector.multi_reduction <add>, %278, %cst_108 [1] : vector<34x34xf32> to vector<34xf32>
    %280 = vector.shape_cast %279 : vector<34xf32> to vector<34x1xf32>
    %281 = tpu.reciprocal %280 {approx = true} : vector<34x1xf32> -> vector<34x1xf32>
    %282 = vector.broadcast %281 : vector<34x1xf32> to vector<34x34xf32>
    %283 = arith.mulf %278, %282 : vector<34x34xf32>
    %284 = arith.truncf %283 : vector<34x34xf32> to vector<34x34xbf16>
    %cst_109 = arith.constant dense<0.000000e+00> : vector<34x8xf32>
    %285 = tpu.matmul %284, %269, %cst_109 {dimension_numbers = #tpu.dot_dimension_numbers<[1], [0], [0], [1], [0, 0, 1, 1], [], []>} : vector<34x34xbf16>, vector<34x8xbf16>, vector<34x8xf32> -> vector<34x8xf32>
    %c0_110 = arith.constant 0 : index
    %c16_111 = arith.constant 16 : index
    %286 = vector.load %arg17[%c0_110, %c16_111] : memref<34x32xf32, #tpu.memory_space<vmem>>, vector<34x8xf32>
    tpu.vector_store %arg17[%c0_110, %c16_111], %285 {strides = array<i32>} : memref<34x32xf32, #tpu.memory_space<vmem>>, vector<34x8xf32>,
    %287 = vector.extract_strided_slice %217 {offsets = [0, 24], sizes = [34, 8], strides = [1, 1]} : vector<34x96xf32> to vector<34x8xf32>
    %288 = arith.truncf %287 : vector<34x8xf32> to vector<34x8xbf16>
    %289 = vector.extract_strided_slice %217 {offsets = [0, 56], sizes = [34, 8], strides = [1, 1]} : vector<34x96xf32> to vector<34x8xf32>
    %290 = arith.truncf %289 : vector<34x8xf32> to vector<34x8xbf16>
    %291 = vector.extract_strided_slice %217 {offsets = [0, 88], sizes = [34, 8], strides = [1, 1]} : vector<34x96xf32> to vector<34x8xf32>
    %292 = arith.truncf %291 : vector<34x8xf32> to vector<34x8xbf16>
    "tpu.trace_start"() <{level = 10 : i32, message = "qd,kd->qk"}> : () -> ()
    %cst_112 = arith.constant dense<0.000000e+00> : vector<34x34xf32>
    %293 = tpu.matmul %288, %290, %cst_112 {dimension_numbers = #tpu.dot_dimension_numbers<[1], [1], [0], [0], [0, 0, 1, 0], [], []>} : vector<34x8xbf16>, vector<34x8xbf16>, vector<34x34xf32> -> vector<34x34xf32>
    "tpu.trace_stop"() : () -> ()
    %cst_113 = arith.constant 0.353553385 : f32
    %294 = vector.broadcast %cst_113 : f32 to vector<34x34xf32>
    %295 = arith.mulf %293, %294 : vector<34x34xf32>
    %296 = arith.addf %295, %28 : vector<34x34xf32>
    %cst_114 = arith.constant dense<0xFF800000> : vector<34xf32>
    %297 = vector.multi_reduction <maximumf>, %296, %cst_114 [1] : vector<34x34xf32> to vector<34xf32>
    %298 = vector.shape_cast %297 : vector<34xf32> to vector<34x1xf32>
    %299 = vector.broadcast %298 : vector<34x1xf32> to vector<34x34xf32>
    %300 = arith.subf %296, %299 : vector<34x34xf32>
    %301 = math.exp %300 : vector<34x34xf32>
    %cst_115 = arith.constant dense<0.000000e+00> : vector<34xf32>
    %302 = vector.multi_reduction <add>, %301, %cst_115 [1] : vector<34x34xf32> to vector<34xf32>
    %303 = vector.shape_cast %302 : vector<34xf32> to vector<34x1xf32>
    %304 = tpu.reciprocal %303 {approx = true} : vector<34x1xf32> -> vector<34x1xf32>
    %305 = vector.broadcast %304 : vector<34x1xf32> to vector<34x34xf32>
    %306 = arith.mulf %301, %305 : vector<34x34xf32>
    %307 = arith.truncf %306 : vector<34x34xf32> to vector<34x34xbf16>
    %cst_116 = arith.constant dense<0.000000e+00> : vector<34x8xf32>
    %308 = tpu.matmul %307, %292, %cst_116 {dimension_numbers = #tpu.dot_dimension_numbers<[1], [0], [0], [1], [0, 0, 1, 1], [], []>} : vector<34x34xbf16>, vector<34x8xbf16>, vector<34x8xf32> -> vector<34x8xf32>
    %c0_117 = arith.constant 0 : index
    %c24_118 = arith.constant 24 : index
    %309 = vector.load %arg17[%c0_117, %c24_118] : memref<34x32xf32, #tpu.memory_space<vmem>>, vector<34x8xf32>
    tpu.vector_store %arg17[%c0_117, %c24_118], %308 {strides = array<i32>} : memref<34x32xf32, #tpu.memory_space<vmem>>, vector<34x8xf32>,
    %c0_119 = arith.constant 0 : index
    %c0_120 = arith.constant 0 : index
    %310 = vector.load %arg17[%c0_119, %c0_120] : memref<34x32xf32, #tpu.memory_space<vmem>>, vector<34x32xf32>
    %311 = arith.truncf %310 : vector<34x32xf32> to vector<34x32xbf16>
    %c1_121 = arith.constant 1 : index
    %c0_122 = arith.constant 0 : index
    %c0_123 = arith.constant 0 : index
    %312 = vector.load %arg4[%c1_121, %c0_122, %c0_123] : memref<2x32x32xbf16, #tpu.memory_space<vmem>>, vector<1x32x32xbf16>
    %313 = vector.shape_cast %312 : vector<1x32x32xbf16> to vector<32x32xbf16>
    %cst_124 = arith.constant dense<0.000000e+00> : vector<34x32xf32>
    %314 = tpu.matmul %311, %313, %cst_124 {dimension_numbers = #tpu.dot_dimension_numbers<[1], [0], [0], [1], [0, 0, 1, 1], [], []>} : vector<34x32xbf16>, vector<32x32xbf16>, vector<34x32xf32> -> vector<34x32xf32>
    %c1_125 = arith.constant 1 : index
    %c0_126 = arith.constant 0 : index
    %c0_127 = arith.constant 0 : index
    %315 = vector.load %arg5[%c1_125, %c0_126, %c0_127] : memref<2x1x32xf32, #tpu.memory_space<vmem>>, vector<1x1x32xf32>
    %316 = vector.shape_cast %315 : vector<1x1x32xf32> to vector<1x32xf32>
    %317 = vector.broadcast %316 : vector<1x32xf32> to vector<34x32xf32>
    %318 = arith.addf %314, %317 : vector<34x32xf32>
    %319 = arith.addf %209, %318 : vector<34x32xf32>
    %c1_128 = arith.constant 1 : index
    %c0_129 = arith.constant 0 : index
    %c0_130 = arith.constant 0 : index
    %320 = vector.load %arg6[%c1_128, %c0_129, %c0_130] : memref<2x1x32xf32, #tpu.memory_space<vmem>>, vector<1x1x32xf32>
    %321 = vector.shape_cast %320 : vector<1x1x32xf32> to vector<1x32xf32>
    %c1_131 = arith.constant 1 : index
    %c0_132 = arith.constant 0 : index
    %c0_133 = arith.constant 0 : index
    %322 = vector.load %arg7[%c1_131, %c0_132, %c0_133] : memref<2x1x32xf32, #tpu.memory_space<vmem>>, vector<1x1x32xf32>
    %323 = vector.shape_cast %322 : vector<1x1x32xf32> to vector<1x32xf32>
    %cst_134 = arith.constant dense<0.000000e+00> : vector<34xf32>
    %324 = vector.multi_reduction <add>, %319, %cst_134 [1] : vector<34x32xf32> to vector<34xf32>
    %325 = vector.shape_cast %324 : vector<34xf32> to vector<34x1xf32>
    %cst_135 = arith.constant 3.200000e+01 : f32
    %326 = vector.broadcast %cst_135 : f32 to vector<34x1xf32>
    %327 = arith.divf %325, %326 : vector<34x1xf32>
    %328 = vector.broadcast %327 : vector<34x1xf32> to vector<34x32xf32>
    %329 = arith.subf %319, %328 : vector<34x32xf32>
    %330 = arith.mulf %329, %329 : vector<34x32xf32>
    %cst_136 = arith.constant dense<0.000000e+00> : vector<34xf32>
    %331 = vector.multi_reduction <add>, %330, %cst_136 [1] : vector<34x32xf32> to vector<34xf32>
    %332 = vector.shape_cast %331 : vector<34xf32> to vector<34x1xf32>
    %cst_137 = arith.constant 3.200000e+01 : f32
    %333 = vector.broadcast %cst_137 : f32 to vector<34x1xf32>
    %334 = arith.divf %332, %333 : vector<34x1xf32>
    %335 = vector.broadcast %327 : vector<34x1xf32> to vector<34x32xf32>
    %336 = arith.subf %319, %335 : vector<34x32xf32>
    %cst_138 = arith.constant 9.99999974E-6 : f32
    %337 = vector.broadcast %cst_138 : f32 to vector<34x1xf32>
    %338 = arith.addf %334, %337 : vector<34x1xf32>
    %339 = math.rsqrt %338 : vector<34x1xf32>
    %340 = vector.broadcast %339 : vector<34x1xf32> to vector<34x32xf32>
    %341 = arith.mulf %336, %340 : vector<34x32xf32>
    %342 = vector.broadcast %321 : vector<1x32xf32> to vector<34x32xf32>
    %343 = arith.mulf %341, %342 : vector<34x32xf32>
    %344 = vector.broadcast %323 : vector<1x32xf32> to vector<34x32xf32>
    %345 = arith.addf %343, %344 : vector<34x32xf32>
    %346 = arith.truncf %345 : vector<34x32xf32> to vector<34x32xbf16>
    %c1_139 = arith.constant 1 : index
    %c0_140 = arith.constant 0 : index
    %c0_141 = arith.constant 0 : index
    %347 = vector.load %arg8[%c1_139, %c0_140, %c0_141] : memref<2x32x128xbf16, #tpu.memory_space<vmem>>, vector<1x32x128xbf16>
    %348 = vector.shape_cast %347 : vector<1x32x128xbf16> to vector<32x128xbf16>
    %cst_142 = arith.constant dense<0.000000e+00> : vector<34x128xf32>
    %349 = tpu.matmul %346, %348, %cst_142 {dimension_numbers = #tpu.dot_dimension_numbers<[1], [0], [0], [1], [0, 0, 1, 1], [], []>} : vector<34x32xbf16>, vector<32x128xbf16>, vector<34x128xf32> -> vector<34x128xf32>
    %c1_143 = arith.constant 1 : index
    %c0_144 = arith.constant 0 : index
    %c0_145 = arith.constant 0 : index
    %350 = vector.load %arg9[%c1_143, %c0_144, %c0_145] : memref<2x1x128xf32, #tpu.memory_space<vmem>>, vector<1x1x128xf32>
    %351 = vector.shape_cast %350 : vector<1x1x128xf32> to vector<1x128xf32>
    %352 = vector.broadcast %351 : vector<1x128xf32> to vector<34x128xf32>
    %353 = arith.addf %349, %352 : vector<34x128xf32>
    %cst_146 = arith.constant 0.000000e+00 : f32
    %354 = vector.broadcast %cst_146 : f32 to vector<34x128xf32>
    %355 = arith.maximumf %353, %354 : vector<34x128xf32>
    %356 = arith.truncf %355 : vector<34x128xf32> to vector<34x128xbf16>
    %c1_147 = arith.constant 1 : index
    %c0_148 = arith.constant 0 : index
    %c0_149 = arith.constant 0 : index
    %357 = vector.load %arg10[%c1_147, %c0_148, %c0_149] : memref<2x128x32xbf16, #tpu.memory_space<vmem>>, vector<1x128x32xbf16>
    %358 = vector.shape_cast %357 : vector<1x128x32xbf16> to vector<128x32xbf16>
    %cst_150 = arith.constant dense<0.000000e+00> : vector<34x32xf32>
    %359 = tpu.matmul %356, %358, %cst_150 {dimension_numbers = #tpu.dot_dimension_numbers<[1], [0], [0], [1], [0, 0, 1, 1], [], []>} : vector<34x128xbf16>, vector<128x32xbf16>, vector<34x32xf32> -> vector<34x32xf32>
    %c1_151 = arith.constant 1 : index
    %c0_152 = arith.constant 0 : index
    %c0_153 = arith.constant 0 : index
    %360 = vector.load %arg11[%c1_151, %c0_152, %c0_153] : memref<2x1x32xf32, #tpu.memory_space<vmem>>, vector<1x1x32xf32>
    %361 = vector.shape_cast %360 : vector<1x1x32xf32> to vector<1x32xf32>
    %362 = vector.broadcast %361 : vector<1x32xf32> to vector<34x32xf32>
    %363 = arith.addf %359, %362 : vector<34x32xf32>
    %364 = arith.addf %345, %363 : vector<34x32xf32>
    %c1_154 = arith.constant 1 : index
    %c0_155 = arith.constant 0 : index
    %c0_156 = arith.constant 0 : index
    %365 = vector.load %arg12[%c1_154, %c0_155, %c0_156] : memref<2x1x32xf32, #tpu.memory_space<vmem>>, vector<1x1x32xf32>
    %366 = vector.shape_cast %365 : vector<1x1x32xf32> to vector<1x32xf32>
    %c1_157 = arith.constant 1 : index
    %c0_158 = arith.constant 0 : index
    %c0_159 = arith.constant 0 : index
    %367 = vector.load %arg13[%c1_157, %c0_158, %c0_159] : memref<2x1x32xf32, #tpu.memory_space<vmem>>, vector<1x1x32xf32>
    %368 = vector.shape_cast %367 : vector<1x1x32xf32> to vector<1x32xf32>
    %cst_160 = arith.constant dense<0.000000e+00> : vector<34xf32>
    %369 = vector.multi_reduction <add>, %364, %cst_160 [1] : vector<34x32xf32> to vector<34xf32>
    %370 = vector.shape_cast %369 : vector<34xf32> to vector<34x1xf32>
    %cst_161 = arith.constant 3.200000e+01 : f32
    %371 = vector.broadcast %cst_161 : f32 to vector<34x1xf32>
    %372 = arith.divf %370, %371 : vector<34x1xf32>
    %373 = vector.broadcast %372 : vector<34x1xf32> to vector<34x32xf32>
    %374 = arith.subf %364, %373 : vector<34x32xf32>
    %375 = arith.mulf %374, %374 : vector<34x32xf32>
    %cst_162 = arith.constant dense<0.000000e+00> : vector<34xf32>
    %376 = vector.multi_reduction <add>, %375, %cst_162 [1] : vector<34x32xf32> to vector<34xf32>
    %377 = vector.shape_cast %376 : vector<34xf32> to vector<34x1xf32>
    %cst_163 = arith.constant 3.200000e+01 : f32
    %378 = vector.broadcast %cst_163 : f32 to vector<34x1xf32>
    %379 = arith.divf %377, %378 : vector<34x1xf32>
    %380 = vector.broadcast %372 : vector<34x1xf32> to vector<34x32xf32>
    %381 = arith.subf %364, %380 : vector<34x32xf32>
    %cst_164 = arith.constant 9.99999974E-6 : f32
    %382 = vector.broadcast %cst_164 : f32 to vector<34x1xf32>
    %383 = arith.addf %379, %382 : vector<34x1xf32>
    %384 = math.rsqrt %383 : vector<34x1xf32>
    %385 = vector.broadcast %384 : vector<34x1xf32> to vector<34x32xf32>
    %386 = arith.mulf %381, %385 : vector<34x32xf32>
    %387 = vector.broadcast %366 : vector<1x32xf32> to vector<34x32xf32>
    %388 = arith.mulf %386, %387 : vector<34x32xf32>
    %389 = vector.broadcast %368 : vector<1x32xf32> to vector<34x32xf32>
    %390 = arith.addf %388, %389 : vector<34x32xf32>
    %391 = vector.extract_strided_slice %390 {offsets = [0, 0], sizes = [1, 32], strides = [1, 1]} : vector<34x32xf32> to vector<1x32xf32>
    %392 = vector.extract_strided_slice %390 {offsets = [17, 0], sizes = [1, 32], strides = [1, 1]} : vector<34x32xf32> to vector<1x32xf32>
    %393 = tpu.concatenate %391, %392 in 0 : vector<1x32xf32>, vector<1x32xf32> -> vector<2x32xf32>
    %394 = arith.truncf %393 : vector<2x32xf32> to vector<2x32xbf16>
    %c0_165 = arith.constant 0 : index
    %c0_166 = arith.constant 0 : index
    %395 = vector.load %arg14[%c0_165, %c0_166] : memref<32x128xbf16, #tpu.memory_space<vmem>>, vector<32x128xbf16>
    %cst_167 = arith.constant dense<0.000000e+00> : vector<2x128xf32>
    %396 = tpu.matmul %394, %395, %cst_167 {dimension_numbers = #tpu.dot_dimension_numbers<[1], [0], [0], [1], [0, 0, 1, 1], [], []>} : vector<2x32xbf16>, vector<32x128xbf16>, vector<2x128xf32> -> vector<2x128xf32>
    %c0_168 = arith.constant 0 : index
    %c0_169 = arith.constant 0 : index
    %397 = vector.load %arg15[%c0_168, %c0_169] : memref<1x128xf32, #tpu.memory_space<vmem>>, vector<1x128xf32>
    %398 = vector.broadcast %397 : vector<1x128xf32> to vector<2x128xf32>
    %399 = arith.addf %396, %398 : vector<2x128xf32>
    %c0_170 = arith.constant 0 : index
    %c0_171 = arith.constant 0 : index
    %400 = vector.load %arg16[%c0_170, %c0_171] : memref<2x128xf32, #tpu.memory_space<vmem>>, vector<2x128xf32>
    tpu.vector_store %arg16[%c0_170, %c0_171], %399 {strides = array<i32>} : memref<2x128xf32, #tpu.memory_space<vmem>>, vector<2x128xf32>,
    return
  }
  func.func @transform_0(%arg0: i32) -> (i32, i32) {
    %c0_i32 = arith.constant 0 : i32
    %c0_i32_0 = arith.constant 0 : i32
    %c0_i32_1 = arith.constant 0 : i32
    return %c0_i32, %c0_i32_0 : i32, i32
  }
  func.func @transform_1(%arg0: i32) -> (i32, i32, i32) {
    %c0_i32 = arith.constant 0 : i32
    %c0_i32_0 = arith.constant 0 : i32
    %c0_i32_1 = arith.constant 0 : i32
    %c0_i32_2 = arith.constant 0 : i32
    return %c0_i32, %c0_i32_0, %c0_i32_1 : i32, i32, i32
  }
  func.func @transform_2(%arg0: i32) -> (i32, i32, i32) {
    %c0_i32 = arith.constant 0 : i32
    %c0_i32_0 = arith.constant 0 : i32
    %c0_i32_1 = arith.constant 0 : i32
    %c0_i32_2 = arith.constant 0 : i32
    return %c0_i32, %c0_i32_0, %c0_i32_1 : i32, i32, i32
  }
  func.func @transform_3(%arg0: i32) -> (i32, i32, i32) {
    %c0_i32 = arith.constant 0 : i32
    %c0_i32_0 = arith.constant 0 : i32
    %c0_i32_1 = arith.constant 0 : i32
    %c0_i32_2 = arith.constant 0 : i32
    return %c0_i32, %c0_i32_0, %c0_i32_1 : i32, i32, i32
  }
  func.func @transform_4(%arg0: i32) -> (i32, i32, i32) {
    %c0_i32 = arith.constant 0 : i32
    %c0_i32_0 = arith.constant 0 : i32
    %c0_i32_1 = arith.constant 0 : i32
    %c0_i32_2 = arith.constant 0 : i32
    return %c0_i32, %c0_i32_0, %c0_i32_1 : i32, i32, i32
  }
  func.func @transform_5(%arg0: i32) -> (i32, i32, i32) {
    %c0_i32 = arith.constant 0 : i32
    %c0_i32_0 = arith.constant 0 : i32
    %c0_i32_1 = arith.constant 0 : i32
    %c0_i32_2 = arith.constant 0 : i32
    return %c0_i32, %c0_i32_0, %c0_i32_1 : i32, i32, i32
  }
  func.func @transform_6(%arg0: i32) -> (i32, i32, i32) {
    %c0_i32 = arith.constant 0 : i32
    %c0_i32_0 = arith.constant 0 : i32
    %c0_i32_1 = arith.constant 0 : i32
    %c0_i32_2 = arith.constant 0 : i32
    return %c0_i32, %c0_i32_0, %c0_i32_1 : i32, i32, i32
  }
  func.func @transform_7(%arg0: i32) -> (i32, i32, i32) {
    %c0_i32 = arith.constant 0 : i32
    %c0_i32_0 = arith.constant 0 : i32
    %c0_i32_1 = arith.constant 0 : i32
    %c0_i32_2 = arith.constant 0 : i32
    return %c0_i32, %c0_i32_0, %c0_i32_1 : i32, i32, i32
  }
  func.func @transform_8(%arg0: i32) -> (i32, i32, i32) {
    %c0_i32 = arith.constant 0 : i32
    %c0_i32_0 = arith.constant 0 : i32
    %c0_i32_1 = arith.constant 0 : i32
    %c0_i32_2 = arith.constant 0 : i32
    return %c0_i32, %c0_i32_0, %c0_i32_1 : i32, i32, i32
  }
  func.func @transform_9(%arg0: i32) -> (i32, i32, i32) {
    %c0_i32 = arith.constant 0 : i32
    %c0_i32_0 = arith.constant 0 : i32
    %c0_i32_1 = arith.constant 0 : i32
    %c0_i32_2 = arith.constant 0 : i32
    return %c0_i32, %c0_i32_0, %c0_i32_1 : i32, i32, i32
  }
  func.func @transform_10(%arg0: i32) -> (i32, i32, i32) {
    %c0_i32 = arith.constant 0 : i32
    %c0_i32_0 = arith.constant 0 : i32
    %c0_i32_1 = arith.constant 0 : i32
    %c0_i32_2 = arith.constant 0 : i32
    return %c0_i32, %c0_i32_0, %c0_i32_1 : i32, i32, i32
  }
  func.func @transform_11(%arg0: i32) -> (i32, i32, i32) {
    %c0_i32 = arith.constant 0 : i32
    %c0_i32_0 = arith.constant 0 : i32
    %c0_i32_1 = arith.constant 0 : i32
    %c0_i32_2 = arith.constant 0 : i32
    return %c0_i32, %c0_i32_0, %c0_i32_1 : i32, i32, i32
  }
  func.func @transform_12(%arg0: i32) -> (i32, i32, i32) {
    %c0_i32 = arith.constant 0 : i32
    %c0_i32_0 = arith.constant 0 : i32
    %c0_i32_1 = arith.constant 0 : i32
    %c0_i32_2 = arith.constant 0 : i32
    return %c0_i32, %c0_i32_0, %c0_i32_1 : i32, i32, i32
  }
  func.func @transform_13(%arg0: i32) -> (i32, i32) {
    %c0_i32 = arith.constant 0 : i32
    %c0_i32_0 = arith.constant 0 : i32
    %c0_i32_1 = arith.constant 0 : i32
    return %c0_i32, %c0_i32_0 : i32, i32
  }
  func.func @transform_14(%arg0: i32) -> (i32, i32) {
    %c0_i32 = arith.constant 0 : i32
    %c0_i32_0 = arith.constant 0 : i32
    %c0_i32_1 = arith.constant 0 : i32
    return %c0_i32, %c0_i32_0 : i32, i32
  }
  func.func @transform_15(%arg0: i32) -> (i32, i32) {
    %c0_i32 = arith.constant 0 : i32
    %c0_i32_0 = arith.constant 0 : i32
    %c0_i32_1 = arith.constant 0 : i32
    return %c0_i32, %c0_i32_0 : i32, i32
  }
}

</mosaic_0001>

<bundles_post_ra>
// kernel: vit_forward.2
= control target key start
LH: loop header
LB: loop body
LE: loop exit
PB: predicated region body
PF: predicated region fallthrough
CT: control target
= control target key end

     0   :  { %vm68_vm0 = vcmask 523264   ;;  %vm124_vm1 = vcmask 261120   ;;  %s219_s1 = inlined_call_operand.vmem [shape: bf16[64,32], index: 1, kind: input, shape index: {}]   ;;  %s220_s0 = inlined_call_operand.vmem [shape: bf16[32,64], index: 0, kind: input, shape index: {}]   ;;  %s221_s2 = inlined_call_operand.vmem [shape: f32[1,32], index: 2, kind: input, shape index: {}]   ;;  %s222_s3 = inlined_call_operand.vmem [shape: f32[32,32], index: 3, kind: output, shape index: {}]  }
   0x1   :  { %v160_v0 = vld [vmem:[%s219_s1] sm:$0xff]   ;;  %v161_v1 = vld [vmem:[%s219_s1 + $0x8] sm:$0xff]   ;;  %v162_v2 = vld [vmem:[%s219_s1 + $0x10] sm:$0xff]  }
   0x2   :  { %148 = vmatprep.subr.bf16.mxu0 %v160_v0  ;;  %v164_v3 = vld [vmem:[%s220_s0] sm:$0xff]   ;;  %v163_v4 = vld [vmem:[%s219_s1 + $0x18] sm:$0xff]   ;;  %v165_v5 = vld [vmem:[%s220_s0 + $0x8] sm:$0xff]  }
   0x3   :  { %149 = vmatpush3.bf16.msra.mxu0 %v160_v0  ;;  %156 = vmatprep.mubr.msk.bf16.mxu0 %vm68_vm0, %v164_v3  ;;  %v133_v6 = vld [vmem:[%s221_s2] ss:$0 sm:$0xff] }
   0x4   :  { %150 = vmatprep.subr.bf16.mxu0 %v161_v1 }
   0x7   :  { %151 = vmatpush3.bf16.msra.mxu0 %v161_v1 }
   0x8   :  { %152 = vmatprep.subr.bf16.mxu0 %v162_v2 }
   0xb   :  { %153 = vmatpush3.bf16.msra.mxu0 %v162_v2 }
   0xc   :  { %154 = vmatprep.subr.bf16.mxu0 %v163_v4 }
   0xf   :  { %155 = vmatpush3.bf16.msra.mxu0 %v163_v4 }
  0x12   :  { %157 = vmatmul.mubr.msk.bf16.vlgmr.msra.gmra.mrb[0].mxu0 %vm68_vm0, %v165_v5 }
  0xe5   :  { %v158_v7 = vpop.f32.mrb[0].mxu0 }
  0xe6   :  { %v118_v8 = vadd.f32 %v158_v7, %v133_v6  ;;  %v109_v9 = vpop.f32.mrb[1].mxu0 }
  0xe7   :  { %v110_v10 = vadd.f32 %v133_v6, %v109_v9  ;;  %v159_v11 = vpop.f32.mrb[2].mxu0 }
  0xe8   :  { %127 = vst.msk [vmem:[%s222_s3 + $0x10] sm:$0xff] %vm124_vm1, %v118_v8  ;;  %v121_v12 = vadd.f32 %v159_v11, %v133_v6  ;;  %v112_v13 = vpop.f32.mrb[3].mxu0 }
  0xe9   :  { %125 = vst.msk [vmem:[%s222_s3] sm:$0xff] %vm124_vm1, %v110_v10  ;;  %v113_v14 = vadd.f32 %v133_v6, %v112_v13 }
  0xea   :  { %128 = vst.msk [vmem:[%s222_s3 + $0x18] sm:$0xff] %vm124_vm1, %v121_v12 }
  0xeb   :  { %126 = vst.msk [vmem:[%s222_s3 + $0x8] sm:$0xff] %vm124_vm1, %v113_v14 }

// kernel: vit_forward.3
= control target key start
LH: loop header
LB: loop body
LE: loop exit
PB: predicated region body
PF: predicated region fallthrough
CT: control target
= control target key end

     0   :  { %v4401_v1 = vmov 0.0   ;;  %vm4402_vm0 = vmmov 0   ;;  %vm147_vm1 = vcmask 261120   ;;  %s5843_s0 = inlined_call_operand.vmem [shape: f32[34,32], index: 0, kind: input, shape index: {}]   ;;  %s5844_s1 = inlined_call_operand.vmem [shape: bf16[2,32,96], index: 1, kind: input, shape index: {}]   ;;  %s5845_s2 = inlined_call_operand.vmem [shape: f32[2,1,96], index: 2, kind: input, shape index: {}]   ;;  %s5846_s3 = inlined_call_operand.vmem [shape: bf16[2,32,32], index: 3, kind: input, shape index: {}]   ;;  %s5847_s4 = inlined_call_operand.vmem [shape: f32[2,1,32], index: 4, kind: input, shape index: {}]   ;;  %s5848_s5 = inlined_call_operand.vmem [shape: f32[2,1,32], index: 5, kind: input, shape index: {}]   ;;  %s5849_s6 = inlined_call_operand.vmem [shape: f32[2,1,32], index: 6, kind: input, shape index: {}]   ;;  %s5850_s7 = inlined_call_operand.vmem [shape: bf16[2,32,128], index: 7, kind: input, shape index: {}]   ;;  %s5851_s8 = inlined_call_operand.vmem [shape: f32[2,1,128], index: 8, kind: input, shape index: {}]   ;;  %s5852_s9 = inlined_call_operand.vmem [shape: bf16[2,128,32], index: 9, kind: input, shape index: {}]   ;;  %s5853_s10 = inlined_call_operand.vmem [shape: f32[2,1,32], index: 10, kind: input, shape index: {}]   ;;  %s5854_s11 = inlined_call_operand.vmem [shape: f32[2,1,32], index: 11, kind: input, shape index: {}]   ;;  %s5855_s12 = inlined_call_operand.vmem [shape: f32[2,1,32], index: 12, kind: input, shape index: {}]   ;;  %s5856_s13 = inlined_call_operand.vmem [shape: bf16[32,128], index: 13, kind: input, shape index: {}]   ;;  %s5857_s14 = inlined_call_operand.vmem [shape: f32[1,128], index: 14, kind: input, shape index: {}]   ;;  %s5858_s15 = inlined_call_operand.hbm [shape: f32[2,128], index: 15, kind: output, shape index: {}]  }
   0x1   :  { %v4148_v0 = vld [vmem:[%s5844_s1] sm:$0xff]   ;;  %3682 = vmatprep.subr.bf16.mxu1 %v4401_v1  ;;  %3716 = vmatprep.subr.bf16.mxu0 %v4401_v1  ;;  %v4149_v2 = vld [vmem:[%s5844_s1 + $0x8] sm:$0xff]   ;;  %v54_v6 = vld [vmem:[%s5843_s0 + $0x10] sm:$0xff] }
   0x2   :  { %3683 = vmatpush3.bf16.msra.mxu1 %v4148_v0  ;;  %3686 = vmatprep.mubr.msk.bf16.mxu1 %vm4402_vm0, %v4401_v1  ;;  %v52_v3 = vld [vmem:[%s5843_s0] sm:$0xff]  ;;  %v53_v4 = vld [vmem:[%s5843_s0 + $0x8] sm:$0xff]  ;;  %v55_v7 = vld [vmem:[%s5843_s0 + $0x18] sm:$0xff] }
   0x3   :  { %3684 = vmatprep.subr.bf16.mxu1 %v4401_v1  ;;  %3722 = vmatprep.mubr.msk.bf16.mxu0 %vm4402_vm0, %v4401_v1  ;;  %v121_v5 = vpack.c.bf16 %v53_v4, %v52_v3  ;;  %v122_v8 = vpack.c.bf16 %v55_v7, %v54_v6  ;;  %v56_v9 = vld [vmem:[%s5843_s0 + $0x20] sm:$0x3] }
   0x4   :  { %v123_v10 = vpack.c.bf16 %v56_v9, %v56_v9 }
   0x6   :  { %3685 = vmatpush3.bf16.msra.mxu1 %v4149_v2 }
   0x7   :  { %3698 = vmatprep.subr.bf16.mxu1 %v4401_v1 }
   0x9   :  { %3687 = vmatmul.mubr.msk.bf16.vlgmr.msra.gmra.mrb[0].mxu1 %vm147_vm1, %v121_v5 }
   0xa   :  { %3690 = vmatprep.mubr.msk.bf16.mxu1 %vm4402_vm0, %v4401_v1 }
  0x11   :  { %3691 = vmatmul.mubr.msk.bf16.gmra.mrb[4].mxu1 %vm147_vm1, %v122_v8 }
  0x12   :  { %3694 = vmatprep.mubr.msk.bf16.mxu1 %vm4402_vm0, %v4401_v1 }
  0x13   :  { %20 = vsyncpa [#allocation4], 0  ;;  %v3381_v11 = vld [vmem:[%s5845_s2] ss:$0 sm:$0xff]  ;;  %s4403_s19 = smov 96   ;;  %s4404_s20 = smov 88   ;;  %v57_v6 = vlaneseq }
  0x14   :  { %s4405_s21 = smov 120   ;;  %s4406_s22 = smov 80   ;;  %vm225_vm2 = vcmask 64512   ;;  %vm387_vm3 = vcmask 1040384   ;;  %vm310_vm11 = vcmask 277504  }
  0x15   :  { %s4407_s23 = smov 112   ;;  %s5863_s24 = smov 72   ;;  %v58_v7 = vshrl.u32 %v57_v6, 7  ;;  %v64_v8 = vand.u32 127, %v57_v6 }
  0x16   :  { %s4409_s25 = smov 104   ;;  %s4410_s26 = smov 64  }
  0x17   :  { %s4411_s27 = smov 56   ;;  %v60_v9 = vadd.s32 16, %v58_v7  ;;  %vm103_vm4 = vcmp.ge.s32.totalorder %v64_v8, 17  ;;  %vm104_vm5 = vcmp.lt.s32.totalorder %v64_v8, 34  ;;  %vm81_vm6 = vcmp.lt.s32.totalorder %v64_v8, 17  ;;  %s5861_s28 = smov 48  }
  0x18   :  { %vm4663_vm9 = vmand %vm103_vm4, %vm104_vm5  ;;  %vm323_vm4 = vcmask 271360   ;;  %s5859_s29 = smov 40   ;;  %vm451_vm5 = vcmask 58368   ;;  %s5869_s30 = smov 8  }
  0x19   :  { %3695 = vmatmul.mubr.msk.bf16.gmra.mrb[8].mxu1 %vm147_vm1, %v123_v10  ;;  %vm72_vm7 = vcmp.lt.s32.totalorder %v60_v9, 17  ;;  %vm90_vm8 = vcmp.ge.s32.totalorder %v60_v9, 17  ;;  %s5867_s16 = smov 16   ;;  %s5880_s17 = smov 24  }
  0x1a   :  { %3704 = vmatprep.mubr.msk.bf16.mxu1 %vm4402_vm0, %v4401_v1  ;;  %vm4669_vm10 = vmand %vm72_vm7, %vm81_vm6  ;;  %vm960_vm7 = vcmask 195712  }
  0x1b   :  { %vm108_vm12 = vmand %vm90_vm8, %vm4663_vm9  ;;  %vm1217_vm8 = vcmask 261312  }
  0x1c   :  { %vm113_vm13 = vmor %vm4669_vm10, %vm108_vm12  ;;  %vm965_vm10 = vcmask 189568   ;;  %vm1222_vm12 = vcmask 255168  }
  0xdc   :  { %v191_v12 = vpop.f32.mrb[0].mxu1 }
  0xdd   :  { %v3688_v13 = vpop.f32.mrb[1].mxu1  ;;  %v192_v15 = vadd.f32 %v3381_v11, %v191_v12  ;;  %v4412_v12 = vmov -1e+09  }
  0xde   :  { %v194_v14 = vpop.f32.mrb[2].mxu1  ;;  %v4667_v13 = vsel %vm81_vm6, 0.0, %v4412_v12  ;;  %vm703_vm6 = vcmask 130112  }
  0xdf   :  { %v195_v16 = vadd.f32 %v3381_v11, %v194_v14  ;;  %v3689_v17 = vpop.f32.mrb[3].mxu1 }
  0xe1   :  { %v4540_v18 = vpack.c.bf16 %v195_v16, %v192_v15 }
  0xe3   :  { %219 = vrot.lane.b32.xlu0 %v4540_v18, %s4403_s19 }
  0xe4   :  { %v199_v19 = vpop.f32.mrb[4].mxu1 }
  0xe5   :  { %v3692_v20 = vpop.f32.mrb[5].mxu1  ;;  %v200_v22 = vadd.f32 %v3381_v11, %v199_v19 }
  0xe6   :  { %v202_v21 = vpop.f32.mrb[6].mxu1 }
  0xe7   :  { %v203_v23 = vadd.f32 %v3381_v11, %v202_v21  ;;  %v3693_v24 = vpop.f32.mrb[7].mxu1 }
  0xe8   :  { %v62_v24 = vadd.s32 32, %v58_v7 }
  0xe9   :  { %v4544_v25 = vpack.c.bf16 %v203_v23, %v200_v22 }
  0xea   :  { %vm97_vm14 = vcmp.lt.s32.totalorder %v62_v24, 34 }
  0xeb   :  { %221 = vrot.lane.b32.xlu0 %v4544_v25, %s4403_s19  ;;  %vm110_vm15 = vmand %vm97_vm14, %vm4663_vm9 }
  0xec   :  { %v207_v26 = vpop.f32.mrb[8].mxu1 }
  0xed   :  { %v208_v27 = vadd.f32 %v3381_v11, %v207_v26  ;;  %v3696_v28 = vpop.f32.mrb[9].mxu1 }
  0xee   :  { %v210_v29 = vpop.f32.mrb[10].mxu1  ;;  %v4687_v28 = vsel %vm113_vm13, 0.0, %v4412_v12  ;;  %vm1339_vm13 = vcmask 254976  }
  0xef   :  { %v4548_v30 = vpack.c.bf16 %v208_v27, %v208_v27  ;;  %461 = vrot.lane.b32.xlu0 %v4544_v25, %s4404_s20  ;;  %v3697_v31 = vpop.f32.mrb[11].mxu1 }
  0xf1   :  { %223 = vrot.lane.b32.xlu1 %v4548_v30, %s4403_s19 }
  0xf3   :  { %453 = vrot.lane.b32.xlu0 %v4540_v18, %s4405_s21 }
  0xf5   :  { %459 = vrot.lane.b32.xlu1 %v4540_v18, %s4404_s20 }
  0xf7   :  { %455 = vrot.lane.b32.xlu0 %v4544_v25, %s4405_s21 }
  0xf9   :  { %463 = vrot.lane.b32.xlu1 %v4548_v30, %s4404_s20 }
  0xfb   :  { %457 = vrot.lane.b32.xlu0 %v4548_v30, %s4405_s21 }
  0xfd   :  { %716 = vrot.lane.b32.xlu1 %v4540_v18, %s4406_s22 }
  0xff   :  { %710 = vrot.lane.b32.xlu0 %v4540_v18, %s4407_s23 }
 0x101   :  { %718 = vrot.lane.b32.xlu1 %v4544_v25, %s4406_s22 }
 0x103   :  { %712 = vrot.lane.b32.xlu0 %v4544_v25, %s4407_s23 }
 0x105   :  { %720 = vrot.lane.b32.xlu1 %v4548_v30, %s4406_s22 }
 0x107   :  { %714 = vrot.lane.b32.xlu0 %v4548_v30, %s4407_s23 }
 0x109   :  { %973 = vrot.lane.b32.xlu1 %v4540_v18, %s5863_s24 }
 0x10b   :  { %967 = vrot.lane.b32.xlu0 %v4540_v18, %s4409_s25 }
 0x10d   :  { %975 = vrot.lane.b32.xlu1 %v4544_v25, %s5863_s24 }
 0x10f   :  { %971 = vrot.lane.b32.xlu0 %v4548_v30, %s4409_s25 }
 0x111   :  { %977 = vrot.lane.b32.xlu1 %v4548_v30, %s5863_s24  ;;  %s5865_s24 = smov 24  }
 0x113   :  { %372 = vrot.lane.b32.xlu0 %v4544_v25, %s4410_s26 }
 0x115   :  { %969 = vrot.lane.b32.xlu1 %v4544_v25, %s4409_s25 }
 0x117   :  { %607 = vrot.lane.b32.xlu0 %v4540_v18, %s4411_s27 }
 0x119   :  { %370 = vrot.lane.b32.xlu1 %v4540_v18, %s4410_s26 }
 0x11d   :  { %374 = vrot.lane.b32.xlu1 %v4548_v30, %s4410_s26 }
 0x155   :  { %v220_v32 = vpop.permute.xlu0 %219 }
 0x156   :  { %v236_v33 = vsel %vm225_vm2, %v220_v32, 0 }
 0x157   :  { %3699 = vmatpush3.bf16.xpose.msra.mxu1 %v236_v33  ;;  %v4691_v33 = vsel %vm4663_vm9, 0.0, %v4412_v12  ;;  %vm708_vm9 = vcmask 123968  }
 0x158   :  { %3700 = vmatprep.subr.bf16.mxu1 %v4401_v1 }
 0x15d   :  { %v222_v34 = vpop.permute.xlu0 %221 }
 0x15e   :  { %v239_v35 = vsel %vm225_vm2, %v222_v34, 0 }
 0x15f   :  { %3701 = vmatpush3.bf16.xpose.msra.mxu1 %v239_v35 }
 0x160   :  { %3702 = vmatprep.subr.bf16.mxu1 %v4401_v1 }
 0x161   :  { %v462_v36 = vpop.permute.xlu0 %461 }
 0x162   :  { %v478_v48 = vsel %vm225_vm2, %v462_v36, 0 }
 0x163   :  { %v224_v37 = vpop.permute.xlu1 %223 }
 0x164   :  { %v242_v38 = vsel %vm225_vm2, %v224_v37, 0 }
 0x165   :  { %v454_v39 = vpop.permute.xlu0 %453 }
 0x167   :  { %3703 = vmatpush3.bf16.xpose.msra.mxu1 %v242_v38  ;;  %v460_v40 = vpop.permute.xlu1 %459 }
 0x168   :  { %3734 = vmatprep.subr.bf16.mxu1 %v4401_v1  ;;  %v475_v44 = vsel %vm225_vm2, %v460_v40, 0 }
 0x169   :  { %v456_v41 = vpop.permute.xlu0 %455 }
 0x16b   :  { %v464_v42 = vpop.permute.xlu1 %463 }
 0x16c   :  { %v481_v53 = vsel %vm225_vm2, %v464_v42, 0 }
 0x16d   :  { %v458_v43 = vpop.permute.xlu0 %457 }
 0x16e   :  { %3705 = vmatmul.mubr.msk.bf16.vlgmr.msra.gmra.mrb[12].mxu1 %vm225_vm2, %v4540_v18 }
 0x16f   :  { %3735 = vmatpush3.bf16.xpose.msra.mxu1 %v475_v44  ;;  %v717_v45 = vpop.permute.xlu1 %716  ;;  %3708 = vmatprep.mubr.msk.bf16.mxu1 %vm4402_vm0, %v4401_v1 }
 0x170   :  { %3736 = vmatprep.subr.bf16.mxu1 %v4401_v1  ;;  %v732_v57 = vsel %vm225_vm2, %v717_v45, 0 }
 0x171   :  { %v711_v46 = vpop.permute.xlu0 %710 }
 0x173   :  { %v719_v47 = vpop.permute.xlu1 %718 }
 0x174   :  { %v735_v61 = vsel %vm225_vm2, %v719_v47, 0 }
 0x175   :  { %v713_v49 = vpop.permute.xlu0 %712 }
 0x176   :  { %3709 = vmatmul.mubr.msk.bf16.gmra.mrb[16].mxu1 %vm225_vm2, %v4544_v25 }
 0x177   :  { %3737 = vmatpush3.bf16.xpose.msra.mxu1 %v478_v48  ;;  %v721_v50 = vpop.permute.xlu1 %720  ;;  %3712 = vmatprep.mubr.msk.bf16.mxu1 %vm4402_vm0, %v4401_v1 }
 0x178   :  { %3738 = vmatprep.subr.bf16.mxu1 %v4401_v1  ;;  %v738_v2 = vsel %vm225_vm2, %v721_v50, 0 }
 0x179   :  { %v715_v52 = vpop.permute.xlu0 %714 }
 0x17b   :  { %v974_v51 = vpop.permute.xlu1 %973 }
 0x17c   :  { %v989_v3 = vsel %vm225_vm2, %v974_v51, 0 }
 0x17d   :  { %v968_v55 = vpop.permute.xlu0 %967 }
 0x17e   :  { %3713 = vmatmul.mubr.msk.bf16.gmra.mrb[20].mxu1 %vm225_vm2, %v4548_v30 }
 0x17f   :  { %3739 = vmatpush3.bf16.xpose.msra.mxu1 %v481_v53  ;;  %v976_v54 = vpop.permute.xlu1 %975  ;;  %3740 = vmatprep.mubr.msk.bf16.mxu1 %vm4402_vm0, %v4401_v1 }
 0x180   :  { %3770 = vmatprep.subr.bf16.mxu1 %v4401_v1  ;;  %v992_v4 = vsel %vm225_vm2, %v976_v54, 0 }
 0x181   :  { %v972_v59 = vpop.permute.xlu0 %971 }
 0x183   :  { %v978_v56 = vpop.permute.xlu1 %977 }
 0x184   :  { %v995_v5 = vsel %vm225_vm2, %v978_v56, 0 }
 0x185   :  { %v373_v62 = vpop.permute.xlu0 %372 }
 0x186   :  { %3741 = vmatmul.mubr.msk.bf16.vlgmr.msra.gmra.mrb[24].mxu1 %vm225_vm2, %v454_v39 }
 0x187   :  { %3771 = vmatpush3.bf16.xpose.msra.mxu1 %v732_v57  ;;  %v970_v58 = vpop.permute.xlu1 %969  ;;  %3744 = vmatprep.mubr.msk.bf16.mxu1 %vm4402_vm0, %v4401_v1 }
 0x188   :  { %3772 = vmatprep.subr.bf16.mxu1 %v4401_v1 }
 0x18b   :  { %v371_v60 = vpop.permute.xlu1 %370 }
 0x18c   :  { %3717 = vmatpush3.bf16.msra.mxu0 %v371_v60 }
 0x18d   :  { %3718 = vmatprep.subr.bf16.mxu0 %v4401_v1 }
 0x18e   :  { %3745 = vmatmul.mubr.msk.bf16.gmra.mrb[28].mxu1 %vm225_vm2, %v456_v41  ;;  %v4705_v41 = vsel %vm110_vm15, 0.0, %v4412_v12 }
 0x18f   :  { %3773 = vmatpush3.bf16.xpose.msra.mxu1 %v735_v61  ;;  %3748 = vmatprep.mubr.msk.bf16.mxu1 %vm4402_vm0, %v4401_v1  ;;  %v375_v63 = vpop.permute.xlu1 %374 }
 0x190   :  { %3719 = vmatpush3.bf16.msra.mxu0 %v373_v62  ;;  %3774 = vmatprep.subr.bf16.mxu1 %v4401_v1  ;;  %v389_v0 = vsel %vm387_vm3, %v375_v63, 0 }
 0x191   :  { %3720 = vmatprep.subr.bf16.mxu0 %v4401_v1 }
 0x194   :  { %3721 = vmatpush3.bf16.msra.mxu0 %v389_v0 }
 0x195   :  { %3752 = vmatprep.subr.bf16.mxu0 %v4401_v1 }
 0x196   :  { %3749 = vmatmul.mubr.msk.bf16.gmra.mrb[32].mxu1 %vm225_vm2, %v458_v43 }
 0x197   :  { %3775 = vmatpush3.bf16.xpose.msra.mxu1 %v738_v2  ;;  %3776 = vmatprep.mubr.msk.bf16.mxu1 %vm4402_vm0, %v4401_v1 }
 0x198   :  { %3806 = vmatprep.subr.bf16.mxu1 %v4401_v1 }
 0x19e   :  { %3777 = vmatmul.mubr.msk.bf16.vlgmr.msra.gmra.mrb[36].mxu1 %vm225_vm2, %v711_v46 }
 0x19f   :  { %3807 = vmatpush3.bf16.xpose.msra.mxu1 %v989_v3  ;;  %3780 = vmatprep.mubr.msk.bf16.mxu1 %vm4402_vm0, %v4401_v1 }
 0x1a0   :  { %3808 = vmatprep.subr.bf16.mxu1 %v4401_v1 }
 0x1a6   :  { %3781 = vmatmul.mubr.msk.bf16.gmra.mrb[40].mxu1 %vm225_vm2, %v713_v49 }
 0x1a7   :  { %3809 = vmatpush3.bf16.xpose.msra.mxu1 %v992_v4  ;;  %3784 = vmatprep.mubr.msk.bf16.mxu1 %vm4402_vm0, %v4401_v1 }
 0x1a8   :  { %3810 = vmatprep.subr.bf16.mxu1 %v4401_v1 }
 0x1ae   :  { %3785 = vmatmul.mubr.msk.bf16.gmra.mrb[44].mxu1 %vm225_vm2, %v715_v52 }
 0x1af   :  { %3811 = vmatpush3.bf16.xpose.msra.mxu1 %v995_v5  ;;  %3812 = vmatprep.mubr.msk.bf16.mxu1 %vm4402_vm0, %v4401_v1 }
 0x1b0   :  { %3842 = vmatprep.subr.bf16.mxu1 %v4401_v1 }
 0x1b6   :  { %3813 = vmatmul.mubr.msk.bf16.vlgmr.msra.gmra.mrb[48].mxu1 %vm225_vm2, %v968_v55 }
 0x1b7   :  { %3816 = vmatprep.mubr.msk.bf16.mxu1 %vm4402_vm0, %v4401_v1 }
 0x1be   :  { %3817 = vmatmul.mubr.msk.bf16.gmra.mrb[52].mxu1 %vm225_vm2, %v970_v58 }
 0x1bf   :  { %3820 = vmatprep.mubr.msk.bf16.mxu1 %vm4402_vm0, %v4401_v1 }
 0x1c6   :  { %3821 = vmatmul.mubr.msk.bf16.gmra.mrb[56].mxu1 %vm225_vm2, %v972_v59 }
 0x1c7   :  { %3846 = vmatprep.mubr.msk.bf16.mxu1 %vm4402_vm0, %v4401_v1 }
 0x241   :  { %v278_v11 = vpop.f32.mrb[12].mxu1 }
 0x242   :  { %v300_v14 = vmul.f32 0.35355338, %v278_v11  ;;  %v3706_v15 = vpop.f32.mrb[13].mxu1 }
 0x243   :  { %v281_v17 = vpop.f32.mrb[14].mxu1 }
 0x244   :  { %v301_v19 = vmul.f32 0.35355338, %v281_v17  ;;  %v3707_v20 = vpop.f32.mrb[15].mxu1  ;;  %v4676_v21 = vadd.f32 %v300_v14, %v4667_v13 }
 0x246   :  { %v311_v22 = vsel %vm310_vm11, %v4676_v21, -inf  ;;  %v4681_v23 = vadd.f32 %v301_v19, %v4667_v13 }
 0x247   :  { %312 = vmax.xlane.f32.xlu1 %v311_v22 }
 0x248   :  { %v314_v26 = vsel %vm310_vm11, %v4681_v23, -inf }
 0x249   :  { %315 = vmax.xlane.f32.xlu0 %v314_v26  ;;  %v286_v27 = vpop.f32.mrb[16].mxu1 }
 0x24a   :  { %v302_v29 = vmul.f32 0.35355338, %v286_v27  ;;  %v3710_v31 = vpop.f32.mrb[17].mxu1 }
 0x24b   :  { %v289_v32 = vpop.f32.mrb[18].mxu1 }
 0x24c   :  { %v303_v34 = vmul.f32 0.35355338, %v289_v32  ;;  %v3711_v35 = vpop.f32.mrb[19].mxu1  ;;  %v4694_v36 = vadd.f32 %v302_v29, %v4687_v28 }
 0x24e   :  { %v317_v37 = vsel %vm310_vm11, %v4694_v36, -inf  ;;  %v4699_v38 = vadd.f32 %v303_v34, %v4691_v33 }
 0x24f   :  { %318 = vmax.xlane.f32.xlu0 %v317_v37 }
 0x250   :  { %v320_v39 = vsel %vm310_vm11, %v4699_v38, -inf }
 0x251   :  { %321 = vmax.xlane.f32.xlu1 %v320_v39  ;;  %v294_v40 = vpop.f32.mrb[20].mxu1 }
 0x252   :  { %v304_v42 = vmul.f32 0.35355338, %v294_v40  ;;  %v3714_v43 = vpop.f32.mrb[21].mxu1 }
 0x253   :  { %v297_v44 = vpop.f32.mrb[22].mxu1 }
 0x254   :  { %v3715_v45 = vpop.f32.mrb[23].mxu1  ;;  %v4708_v46 = vadd.f32 %v304_v42, %v4705_v41 }
 0x256   :  { %v324_v47 = vsel %vm323_vm4, %v4708_v46, -inf }
 0x257   :  { %325 = vmax.xlane.f32.xlu0 %v324_v47 }
 0x259   :  { %v517_v48 = vpop.f32.mrb[24].mxu1 }
 0x25a   :  { %v3742_v49 = vpop.f32.mrb[25].mxu1  ;;  %v539_v17 = vmul.f32 0.35355338, %v517_v48 }
 0x25b   :  { %v520_v50 = vpop.f32.mrb[26].mxu1 }
 0x25c   :  { %v540_v51 = vmul.f32 0.35355338, %v520_v50  ;;  %v3743_v52 = vpop.f32.mrb[27].mxu1  ;;  %v4735_v24 = vadd.f32 %v539_v17, %v4667_v13 }
 0x25e   :  { %v4713_v53 = vadd.f32 %v540_v51, %v4667_v13  ;;  %v549_v35 = vsel %vm310_vm11, %v4735_v24, -inf }
 0x260   :  { %v552_v54 = vsel %vm310_vm11, %v4713_v53, -inf }
 0x261   :  { %553 = vmax.xlane.f32.xlu0 %v552_v54  ;;  %v525_v55 = vpop.f32.mrb[28].mxu1 }
 0x262   :  { %609 = vrot.lane.b32.xlu1 %v4544_v25, %s4411_s27  ;;  %v3746_v56 = vpop.f32.mrb[29].mxu1  ;;  %v541_v20 = vmul.f32 0.35355338, %v525_v55 }
 0x263   :  { %v528_v57 = vpop.f32.mrb[30].mxu1 }
 0x264   :  { %v542_v58 = vmul.f32 0.35355338, %v528_v57  ;;  %v3747_v59 = vpop.f32.mrb[31].mxu1  ;;  %v4743_v37 = vadd.f32 %v541_v20, %v4687_v28 }
 0x266   :  { %v4720_v60 = vadd.f32 %v542_v58, %v4691_v33  ;;  %v555_v43 = vsel %vm310_vm11, %v4743_v37, -inf }
 0x268   :  { %v558_v61 = vsel %vm310_vm11, %v4720_v60, -inf }
 0x269   :  { %559 = vmax.xlane.f32.xlu0 %v558_v61  ;;  %v533_v62 = vpop.f32.mrb[32].mxu1 }
 0x26a   :  { %v3750_v63 = vpop.f32.mrb[33].mxu1  ;;  %v543_v34 = vmul.f32 0.35355338, %v533_v62 }
 0x26b   :  { %v536_v0 = vpop.f32.mrb[34].mxu1 }
 0x26c   :  { %v3751_v2 = vpop.f32.mrb[35].mxu1  ;;  %v4750_v44 = vadd.f32 %v543_v34, %v4705_v41 }
 0x26e   :  { %v561_v51 = vsel %vm323_vm4, %v4750_v44, -inf }
 0x271   :  { %v774_v3 = vpop.f32.mrb[36].mxu1 }
 0x272   :  { %v796_v4 = vmul.f32 0.35355338, %v774_v3  ;;  %v3778_v5 = vpop.f32.mrb[37].mxu1 }
 0x273   :  { %v777_v6 = vpop.f32.mrb[38].mxu1 }
 0x274   :  { %v3779_v7 = vpop.f32.mrb[39].mxu1  ;;  %v4725_v8 = vadd.f32 %v796_v4, %v4667_v13  ;;  %v797_v40 = vmul.f32 0.35355338, %v777_v6 }
 0x276   :  { %v806_v9 = vsel %vm310_vm11, %v4725_v8, -inf  ;;  %v4755_v52 = vadd.f32 %v797_v40, %v4667_v13 }
 0x277   :  { %807 = vmax.xlane.f32.xlu0 %v806_v9 }
 0x278   :  { %v809_v58 = vsel %vm310_vm11, %v4755_v52, -inf }
 0x279   :  { %v782_v10 = vpop.f32.mrb[40].mxu1 }
 0x27a   :  { %v798_v11 = vmul.f32 0.35355338, %v782_v10  ;;  %v3782_v12 = vpop.f32.mrb[41].mxu1 }
 0x27b   :  { %v785_v14 = vpop.f32.mrb[42].mxu1 }
 0x27c   :  { %v3783_v15 = vpop.f32.mrb[43].mxu1  ;;  %v4730_v16 = vadd.f32 %v798_v11, %v4687_v28  ;;  %v799_v50 = vmul.f32 0.35355338, %v785_v14 }
 0x27e   :  { %v812_v19 = vsel %vm310_vm11, %v4730_v16, -inf  ;;  %v4765_v59 = vadd.f32 %v799_v50, %v4691_v33 }
 0x27f   :  { %813 = vmax.xlane.f32.xlu0 %v812_v19 }
 0x280   :  { %v815_v3 = vsel %vm310_vm11, %v4765_v59, -inf }
 0x281   :  { %v790_v22 = vpop.f32.mrb[44].mxu1 }
 0x282   :  { %v800_v26 = vmul.f32 0.35355338, %v790_v22  ;;  %v3786_v27 = vpop.f32.mrb[45].mxu1  ;;  %v4789_v22 = vpop.permute.xlu0 %607 }
 0x283   :  { %v793_v29 = vpop.f32.mrb[46].mxu1 }
 0x284   :  { %v3787_v31 = vpop.f32.mrb[47].mxu1  ;;  %v4738_v32 = vadd.f32 %v800_v26, %v4705_v41 }
 0x286   :  { %550 = vmax.xlane.f32.xlu1 %v549_v35  ;;  %v818_v39 = vsel %vm323_vm4, %v4738_v32, -inf }
 0x287   :  { %819 = vmax.xlane.f32.xlu0 %v818_v39 }
 0x289   :  { %v1031_v42 = vpop.f32.mrb[48].mxu1 }
 0x28a   :  { %556 = vmax.xlane.f32.xlu1 %v555_v43  ;;  %v3814_v45 = vpop.f32.mrb[49].mxu1  ;;  %v1053_v56 = vmul.f32 0.35355338, %v1031_v42 }
 0x28b   :  { %v1034_v47 = vpop.f32.mrb[50].mxu1 }
 0x28c   :  { %v1054_v48 = vmul.f32 0.35355338, %v1034_v47  ;;  %v3815_v49 = vpop.f32.mrb[51].mxu1  ;;  %v4770_v4 = vadd.f32 %v1053_v56, %v4667_v13 }
 0x28e   :  { %562 = vmax.xlane.f32.xlu1 %v561_v51  ;;  %v4758_v54 = vadd.f32 %v1054_v48, %v4667_v13  ;;  %v1063_v9 = vsel %vm310_vm11, %v4770_v4, -inf }
 0x290   :  { %v1066_v55 = vsel %vm310_vm11, %v4758_v54, -inf }
 0x291   :  { %1067 = vmax.xlane.f32.xlu0 %v1066_v55  ;;  %v1039_v57 = vpop.f32.mrb[52].mxu1 }
 0x292   :  { %810 = vmax.xlane.f32.xlu1 %v809_v58  ;;  %v3818_v61 = vpop.f32.mrb[53].mxu1  ;;  %v1055_v2 = vmul.f32 0.35355338, %v1039_v57 }
 0x293   :  { %v1042_v62 = vpop.f32.mrb[54].mxu1 }
 0x294   :  { %v1056_v63 = vmul.f32 0.35355338, %v1042_v62  ;;  %v3819_v0 = vpop.f32.mrb[55].mxu1  ;;  %v4780_v10 = vadd.f32 %v1055_v2, %v4687_v28 }
 0x296   :  { %816 = vmax.xlane.f32.xlu1 %v815_v3  ;;  %v4773_v5 = vadd.f32 %v1056_v63, %v4691_v33  ;;  %v1069_v17 = vsel %vm310_vm11, %v4780_v10, -inf }
 0x298   :  { %v1072_v6 = vsel %vm310_vm11, %v4773_v5, -inf }
 0x299   :  { %1073 = vmax.xlane.f32.xlu0 %v1072_v6  ;;  %v1047_v7 = vpop.f32.mrb[56].mxu1 }
 0x29a   :  { %v1057_v11 = vmul.f32 0.35355338, %v1047_v7  ;;  %1064 = vmax.xlane.f32.xlu1 %v1063_v9  ;;  %v3822_v12 = vpop.f32.mrb[57].mxu1 }
 0x29b   :  { %v1050_v14 = vpop.f32.mrb[58].mxu1 }
 0x29c   :  { %v3823_v15 = vpop.f32.mrb[59].mxu1  ;;  %v4785_v19 = vadd.f32 %v1057_v11, %v4705_v41 }
 0x29e   :  { %1070 = vmax.xlane.f32.xlu1 %v1069_v17  ;;  %v1075_v20 = vsel %vm323_vm4, %v4785_v19, -inf }
 0x2a2   :  { %1076 = vmax.xlane.f32.xlu1 %v1075_v20 }
 0x2d4   :  { %v313_v26 = vpop.xlane.xlu1 %312 }
 0x2d5   :  { %v327_v27 = vsub.f32 %v4676_v21, %v313_v26 }
 0x2d6   :  { %v316_v29 = vpop.xlane.xlu0 %315 }
 0x2d7   :  { %v332_v31 = vmul.f32 1.442695, %v327_v27  ;;  %v328_v34 = vsub.f32 %v4681_v23, %v316_v29 }
 0x2d9   :  { %4178 = vpow2.f32 %v332_v31  ;;  %v334_v35 = vmul.f32 1.442695, %v328_v34 }
 0x2db   :  { %4180 = vpow2.f32 %v334_v35 }
 0x2dc   :  { %v319_v39 = vpop.xlane.xlu0 %318 }
 0x2dd   :  { %v329_v40 = vsub.f32 %v4694_v36, %v319_v39 }
 0x2de   :  { %v322_v50 = vpop.xlane.xlu1 %321 }
 0x2df   :  { %v336_v42 = vmul.f32 1.442695, %v329_v40  ;;  %v330_v55 = vsub.f32 %v4699_v38, %v322_v50 }
 0x2e1   :  { %4182 = vpow2.f32 %v336_v42  ;;  %v338_v57 = vmul.f32 1.442695, %v330_v55 }
 0x2e2   :  { %v4814_v61 = vpop.permute.xlu1 %609 }
 0x2e3   :  { %v4794_v43 = vpop.eup %4178  ;;  %4184 = vpow2.f32 %v338_v57 }
 0x2e4   :  { %v342_v45 = vsel %vm310_vm11, %v4794_v43, 0.0  ;;  %v326_v36 = vpop.xlane.xlu0 %325 }
 0x2e5   :  { %v4798_v47 = vpop.eup %4180  ;;  %343 = vadd.xlane.f32.xlu1 %v342_v45  ;;  %v331_v58 = vsub.f32 %v4708_v46, %v326_v36 }
 0x2e6   :  { %v345_v21 = vsel %vm310_vm11, %v4798_v47, 0.0 }
 0x2e7   :  { %346 = vadd.xlane.f32.xlu0 %v345_v21  ;;  %v340_v0 = vmul.f32 1.442695, %v331_v58 }
 0x2e9   :  { %4186 = vpow2.f32 %v340_v0 }
 0x2eb   :  { %v4802_v23 = vpop.eup %4182 }
 0x2ec   :  { %v348_v48 = vsel %vm310_vm11, %v4802_v23, 0.0 }
 0x2ed   :  { %349 = vadd.xlane.f32.xlu1 %v348_v48  ;;  %v4822_v20 = vpop.eup %4184 }
 0x2ee   :  { %v554_v49 = vpop.xlane.xlu0 %553 }
 0x2ef   :  { %v565_v63 = vsub.f32 %v4713_v53, %v554_v49 }
 0x2f1   :  { %v571_v9 = vmul.f32 1.442695, %v565_v63 }
 0x2f3   :  { %v4828_v31 = vpop.eup %4186 }
 0x2f6   :  { %v560_v51 = vpop.xlane.xlu0 %559 }
 0x2f7   :  { %v567_v15 = vsub.f32 %v4720_v60, %v560_v51 }
 0x2fd   :  { %864 = vrot.lane.b32.xlu0 %v4540_v18, %s5861_s28 }
 0x2fe   :  { %611 = vrot.lane.b32.xlu1 %v4548_v30, %s4411_s27 }
 0x301   :  { %866 = vrot.lane.b32.xlu0 %v4544_v25, %s5861_s28 }
 0x304   :  { %v808_v56 = vpop.xlane.xlu0 %807 }
 0x305   :  { %v821_v2 = vsub.f32 %v4725_v8, %v808_v56 }
 0x307   :  { %v826_v11 = vmul.f32 1.442695, %v821_v2 }
 0x30c   :  { %v814_v62 = vpop.xlane.xlu0 %813 }
 0x30d   :  { %v823_v21 = vsub.f32 %v4730_v16, %v814_v62 }
 0x30f   :  { %v830_v51 = vmul.f32 1.442695, %v823_v21 }
 0x313   :  { %v551_v3 = vpop.xlane.xlu1 %550 }
 0x314   :  { %v564_v6 = vsub.f32 %v4735_v24, %v551_v3  ;;  %v820_v7 = vpop.xlane.xlu0 %819  ;;  %v575_v24 = vmul.f32 1.442695, %v567_v15 }
 0x315   :  { %v825_v38 = vsub.f32 %v4738_v32, %v820_v7 }
 0x316   :  { %v569_v12 = vmul.f32 1.442695, %v564_v6 }
 0x317   :  { %v557_v46 = vpop.xlane.xlu1 %556  ;;  %v834_v53 = vmul.f32 1.442695, %v825_v38 }
 0x318   :  { %4188 = vpow2.f32 %v569_v12  ;;  %v566_v14 = vsub.f32 %v4743_v37, %v557_v46  ;;  %v351_v37 = vsel %vm310_vm11, %v4822_v20, 0.0 }
 0x319   :  { %4190 = vpow2.f32 %v571_v9 }
 0x31a   :  { %4192 = vpow2.f32 %v826_v11  ;;  %v573_v8 = vmul.f32 1.442695, %v566_v14 }
 0x31b   :  { %v563_v17 = vpop.xlane.xlu1 %562  ;;  %4194 = vpow2.f32 %v834_v53 }
 0x31c   :  { %4196 = vpow2.f32 %v573_v8  ;;  %v568_v32 = vsub.f32 %v4750_v44, %v563_v17  ;;  %v354_v44 = vsel %vm323_vm4, %v4828_v31, 0.0 }
 0x31d   :  { %4198 = vpow2.f32 %v575_v24 }
 0x31e   :  { %v1068_v26 = vpop.xlane.xlu0 %1067  ;;  %v577_v35 = vmul.f32 1.442695, %v568_v32 }
 0x31f   :  { %v1079_v27 = vsub.f32 %v4758_v54, %v1068_v26  ;;  %v811_v29 = vpop.xlane.xlu1 %810 }
 0x320   :  { %352 = vadd.xlane.f32.xlu0 %v351_v37  ;;  %v822_v39 = vsub.f32 %v4755_v52, %v811_v29 }
 0x321   :  { %v1085_v60 = vmul.f32 1.442695, %v1079_v27 }
 0x322   :  { %v4830_v34 = vpop.eup %4188  ;;  %v828_v48 = vmul.f32 1.442695, %v822_v39 }
 0x323   :  { %v4833_v40 = vpop.eup %4190  ;;  %4200 = vpow2.f32 %v1085_v60  ;;  %v579_v54 = vsel %vm310_vm11, %v4830_v34, 0.0  ;;  %v817_v45 = vpop.xlane.xlu1 %816 }
 0x324   :  { %v4839_v42 = vpop.eup %4192  ;;  %355 = vadd.xlane.f32.xlu0 %v354_v44  ;;  %580 = vadd.xlane.f32.xlu1 %v579_v54  ;;  %4202 = vpow2.f32 %v577_v35  ;;  %v582_v52 = vsel %vm310_vm11, %v4833_v40, 0.0  ;;  %v824_v55 = vsub.f32 %v4765_v59, %v817_v45 }
 0x325   :  { %v4842_v36 = vpop.eup %4194  ;;  %v836_v49 = vsel %vm310_vm11, %v4839_v42, 0.0  ;;  %4204 = vpow2.f32 %v828_v48 }
 0x326   :  { %v4848_v50 = vpop.eup %4196  ;;  %v848_v57 = vsel %vm323_vm4, %v4842_v36, 0.0  ;;  %4206 = vpow2.f32 %v830_v51  ;;  %v832_v63 = vmul.f32 1.442695, %v824_v55  ;;  %v1074_v32 = vpop.xlane.xlu0 %1073 }
 0x327   :  { %v1065_v56 = vpop.xlane.xlu1 %1064  ;;  %v585_v16 = vsel %vm310_vm11, %v4848_v50, 0.0  ;;  %v4855_v58 = vpop.eup %4198  ;;  %v1081_v27 = vsub.f32 %v4773_v5, %v1074_v32 }
 0x328   :  { %583 = vadd.xlane.f32.xlu0 %v582_v52  ;;  %837 = vadd.xlane.f32.xlu1 %v836_v49  ;;  %v1078_v0 = vsub.f32 %v4770_v4, %v1065_v56  ;;  %v588_v2 = vsel %vm310_vm11, %v4855_v58, 0.0  ;;  %4208 = vpow2.f32 %v832_v63 }
 0x329   :  { %v1089_v29 = vmul.f32 1.442695, %v1081_v27 }
 0x32a   :  { %v1083_v6 = vmul.f32 1.442695, %v1078_v0 }
 0x32b   :  { %v1071_v15 = vpop.xlane.xlu1 %1070 }
 0x32c   :  { %586 = vadd.xlane.f32.xlu0 %v585_v16  ;;  %849 = vadd.xlane.f32.xlu1 %v848_v57  ;;  %4210 = vpow2.f32 %v1083_v6  ;;  %v1080_v8 = vsub.f32 %v4780_v10, %v1071_v15 }
 0x32d   :  { %v4857_v62 = vpop.eup %4200 }
 0x32e   :  { %v1096_v59 = vsel %vm310_vm11, %v4857_v62, 0.0  ;;  %v4864_v3 = vpop.eup %4202  ;;  %v1087_v17 = vmul.f32 1.442695, %v1080_v8 }
 0x32f   :  { %v591_v7 = vsel %vm323_vm4, %v4864_v3, 0.0  ;;  %v4868_v9 = vpop.eup %4204  ;;  %v1077_v10 = vpop.xlane.xlu1 %1076 }
 0x330   :  { %589 = vadd.xlane.f32.xlu0 %v588_v2  ;;  %1097 = vadd.xlane.f32.xlu1 %v1096_v59  ;;  %v839_v4 = vsel %vm310_vm11, %v4868_v9, 0.0  ;;  %v4872_v38 = vpop.eup %4206  ;;  %4212 = vpow2.f32 %v1087_v17 }
 0x331   :  { %v842_v11 = vsel %vm310_vm11, %v4872_v38, 0.0  ;;  %4214 = vpow2.f32 %v1089_v29 }
 0x332   :  { %v4876_v12 = vpop.eup %4208 }
 0x333   :  { %v845_v46 = vsel %vm310_vm11, %v4876_v12, 0.0 }
 0x334   :  { %592 = vadd.xlane.f32.xlu0 %v591_v7 }
 0x336   :  { %v4880_v14 = vpop.eup %4210 }
 0x337   :  { %v1093_v53 = vsel %vm310_vm11, %v4880_v14, 0.0 }
 0x338   :  { %840 = vadd.xlane.f32.xlu0 %v839_v4 }
 0x33a   :  { %v4891_v24 = vpop.eup %4212 }
 0x33b   :  { %v1099_v26 = vsel %vm310_vm11, %v4891_v24, 0.0 }
 0x33c   :  { %843 = vadd.xlane.f32.xlu0 %v842_v11 }
 0x340   :  { %846 = vadd.xlane.f32.xlu0 %v845_v46 }
 0x341   :  { %868 = vrot.lane.b32.xlu1 %v4548_v30, %s5861_s28 }
 0x344   :  { %1094 = vadd.xlane.f32.xlu0 %v1093_v53 }
 0x35a   :  { %1121 = vrot.lane.b32.xlu0 %v4540_v18, %s5859_s29  ;;  %v4896_v18 = vpop.eup %4214 }
 0x35e   :  { %1123 = vrot.lane.b32.xlu0 %v4544_v25, %s5859_s29  ;;  %v1102_v25 = vsel %vm310_vm11, %v4896_v18, 0.0 }
 0x365   :  { %1100 = vadd.xlane.f32.xlu1 %v1099_v26 }
 0x372   :  { %v344_v37 = vpop.xlane.xlu1 %343 }
 0x373   :  { %4216 = vrcp.f32 %v344_v37 }
 0x374   :  { %v347_v60 = vpop.xlane.xlu0 %346 }
 0x375   :  { %4218 = vrcp.f32 %v347_v60 }
 0x378   :  { %v865_v48 = vpop.permute.xlu0 %864 }
 0x37a   :  { %v350_v45 = vpop.xlane.xlu1 %349 }
 0x37c   :  { %v867_v52 = vpop.permute.xlu0 %866 }
 0x37d   :  { %v4217_v35 = vpop.eup %4216  ;;  %1103 = vadd.xlane.f32.xlu0 %v1102_v25 }
 0x37e   :  { %v362_v44 = vmul.f32 %v4217_v35, %v4794_v43  ;;  %v612_v21 = vpop.permute.xlu1 %611 }
 0x37f   :  { %v4219_v39 = vpop.eup %4218  ;;  %v625_v43 = vsel %vm387_vm3, %v612_v21, 0 }
 0x380   :  { %v363_v54 = vmul.f32 %v4219_v39, %v4798_v47 }
 0x382   :  { %v367_v5 = vpack.c.bf16 %v363_v54, %v362_v44 }
 0x384   :  { %3723 = vmatmul.mubr.msk.bf16.vlgmr.msra.gmra.mrb[0].mxu0 %vm310_vm11, %v367_v5 }
 0x385   :  { %3753 = vmatpush3.bf16.msra.mxu0 %v4789_v22  ;;  %3726 = vmatprep.mubr.msk.bf16.mxu0 %vm4402_vm0, %v4401_v1  ;;  %v1082_v22 = vsub.f32 %v4785_v19, %v1077_v10 }
 0x386   :  { %3754 = vmatprep.subr.bf16.mxu0 %v4401_v1 }
 0x387   :  { %v1091_v47 = vmul.f32 1.442695, %v1082_v22 }
 0x389   :  { %3755 = vmatpush3.bf16.msra.mxu0 %v4814_v61  ;;  %4220 = vpow2.f32 %v1091_v47 }
 0x38a   :  { %3756 = vmatprep.subr.bf16.mxu0 %v4401_v1  ;;  %4222 = vrcp.f32 %v350_v45 }
 0x38d   :  { %3757 = vmatpush3.bf16.msra.mxu0 %v625_v43 }
 0x38e   :  { %3788 = vmatprep.subr.bf16.mxu0 %v4401_v1 }
 0x393   :  { %1125 = vrot.lane.b32.xlu0 %v4548_v30, %s5859_s29  ;;  %v4914_v51 = vpop.eup %4220 }
 0x394   :  { %v1105_v55 = vsel %vm323_vm4, %v4914_v51, 0.0  ;;  %v4223_v16 = vpop.eup %4222 }
 0x395   :  { %v364_v63 = vmul.f32 %v4223_v16, %v4802_v23 }
 0x3ad   :  { %v353_v49 = vpop.xlane.xlu0 %352 }
 0x3ae   :  { %4224 = vrcp.f32 %v353_v49 }
 0x3b1   :  { %v356_v61 = vpop.xlane.xlu0 %355  ;;  %v581_v57 = vpop.xlane.xlu1 %580 }
 0x3b2   :  { %4226 = vrcp.f32 %v356_v61  ;;  %1106 = vadd.xlane.f32.xlu0 %v1105_v55 }
 0x3b5   :  { %v584_v56 = vpop.xlane.xlu0 %583  ;;  %v838_v4 = vpop.xlane.xlu1 %837 }
 0x3b6   :  { %4228 = vrcp.f32 %v584_v56 }
 0x3b7   :  { %4230 = vrcp.f32 %v581_v57 }
 0x3b8   :  { %v4225_v30 = vpop.eup %4224 }
 0x3b9   :  { %v587_v19 = vpop.xlane.xlu0 %586  ;;  %v365_v0 = vmul.f32 %v4225_v30, %v4822_v20  ;;  %v850_v53 = vpop.xlane.xlu1 %849 }
 0x3bb   :  { %v368_v59 = vpack.c.bf16 %v365_v0, %v364_v63 }
 0x3bc   :  { %v4227_v2 = vpop.eup %4226 }
 0x3bd   :  { %3727 = vmatmul.mubr.msk.bf16.gmra.mrb[4].mxu0 %vm310_vm11, %v368_v59  ;;  %v590_v6 = vpop.xlane.xlu0 %589  ;;  %v366_v7 = vmul.f32 %v4227_v2, %v4828_v31  ;;  %v1098_v26 = vpop.xlane.xlu1 %1097 }
 0x3be   :  { %3730 = vmatprep.mubr.msk.bf16.mxu0 %vm4402_vm0, %v4401_v1  ;;  %4232 = vrcp.f32 %v590_v6 }
 0x3bf   :  { %v369_v11 = vpack.c.bf16 %v366_v7, %v366_v7  ;;  %4234 = vrcp.f32 %v587_v19 }
 0x3c0   :  { %v4229_v46 = vpop.eup %4228 }
 0x3c1   :  { %v593_v23 = vpop.xlane.xlu0 %592  ;;  %v4231_v20 = vpop.eup %4230  ;;  %v600_v15 = vmul.f32 %v4229_v46, %v4833_v40 }
 0x3c2   :  { %v599_v8 = vmul.f32 %v4231_v20, %v4830_v34  ;;  %4236 = vrcp.f32 %v593_v23  ;;  %v869_v34 = vpop.permute.xlu1 %868 }
 0x3c3   :  { %v882_v25 = vsel %vm387_vm3, %v869_v34, 0 }
 0x3c4   :  { %v604_v17 = vpack.c.bf16 %v600_v15, %v599_v8 }
 0x3c5   :  { %3731 = vmatmul.mubr.msk.bf16.gmra.mrb[8].mxu0 %vm310_vm11, %v369_v11  ;;  %v841_v31 = vpop.xlane.xlu0 %840 }
 0x3c6   :  { %3758 = vmatprep.mubr.msk.bf16.mxu0 %vm4402_vm0, %v4401_v1  ;;  %4238 = vrcp.f32 %v841_v31 }
 0x3c7   :  { %4240 = vrcp.f32 %v838_v4 }
 0x3c8   :  { %v4233_v32 = vpop.eup %4232 }
 0x3c9   :  { %v4235_v27 = vpop.eup %4234  ;;  %v602_v29 = vmul.f32 %v4233_v32, %v4855_v58  ;;  %v844_v10 = vpop.xlane.xlu0 %843 }
 0x3ca   :  { %v601_v40 = vmul.f32 %v4235_v27, %v4848_v50 }
 0x3cc   :  { %v605_v37 = vpack.c.bf16 %v602_v29, %v601_v40  ;;  %v4237_v60 = vpop.eup %4236 }
 0x3cd   :  { %3759 = vmatmul.mubr.msk.bf16.vlgmr.msra.gmra.mrb[12].mxu0 %vm310_vm11, %v604_v17  ;;  %v847_v58 = vpop.xlane.xlu0 %846  ;;  %v603_v35 = vmul.f32 %v4237_v60, %v4864_v3 }
 0x3ce   :  { %3789 = vmatpush3.bf16.msra.mxu0 %v865_v48  ;;  %3762 = vmatprep.mubr.msk.bf16.mxu0 %vm4402_vm0, %v4401_v1  ;;  %4242 = vrcp.f32 %v847_v58 }
 0x3cf   :  { %3790 = vmatprep.subr.bf16.mxu0 %v4401_v1  ;;  %v606_v50 = vpack.c.bf16 %v603_v35, %v603_v35  ;;  %4244 = vrcp.f32 %v844_v10 }
 0x3d0   :  { %v4239_v39 = vpop.eup %4238  ;;  %4246 = vrcp.f32 %v850_v53 }
 0x3d1   :  { %v1095_v44 = vpop.xlane.xlu0 %1094  ;;  %v4241_v54 = vpop.eup %4240  ;;  %v857_v5 = vmul.f32 %v4239_v39, %v4868_v9 }
 0x3d2   :  { %3791 = vmatpush3.bf16.msra.mxu0 %v867_v52  ;;  %v856_v45 = vmul.f32 %v4241_v54, %v4839_v42  ;;  %4248 = vrcp.f32 %v1095_v44 }
 0x3d3   :  { %3792 = vmatprep.subr.bf16.mxu0 %v4401_v1  ;;  %4250 = vrcp.f32 %v1098_v26 }
 0x3d4   :  { %v861_v21 = vpack.c.bf16 %v857_v5, %v856_v45 }
 0x3d5   :  { %3763 = vmatmul.mubr.msk.bf16.gmra.mrb[16].mxu0 %vm310_vm11, %v605_v37  ;;  %v1122_v3 = vpop.permute.xlu0 %1121 }
 0x3d6   :  { %3793 = vmatpush3.bf16.msra.mxu0 %v882_v25  ;;  %3766 = vmatprep.mubr.msk.bf16.mxu0 %vm4402_vm0, %v4401_v1 }
 0x3d7   :  { %3824 = vmatprep.subr.bf16.mxu0 %v4401_v1 }
 0x3d8   :  { %v4243_v43 = vpop.eup %4242 }
 0x3d9   :  { %v4245_v22 = vpop.eup %4244  ;;  %v859_v47 = vmul.f32 %v4243_v43, %v4876_v12  ;;  %v1124_v48 = vpop.permute.xlu0 %1123 }
 0x3da   :  { %v858_v9 = vmul.f32 %v4245_v22, %v4872_v38  ;;  %v4247_v52 = vpop.eup %4246 }
 0x3db   :  { %v860_v49 = vmul.f32 %v4247_v52, %v4842_v36 }
 0x3dc   :  { %v862_v42 = vpack.c.bf16 %v859_v47, %v858_v9  ;;  %v4249_v12 = vpop.eup %4248  ;;  %v4150_v9 = vld [vmem:[%s5846_s3] sm:$0xff]  }
 0x3dd   :  { %3767 = vmatmul.mubr.msk.bf16.gmra.mrb[20].mxu0 %vm310_vm11, %v606_v50  ;;  %v863_v61 = vpack.c.bf16 %v860_v49, %v860_v49  ;;  %v4251_v56 = vpop.eup %4250  ;;  %v1113_v16 = vmul.f32 %v4249_v12, %v4880_v14  ;;  %3843 = vmatpush3.bf16.msra.mxu1 %v4150_v9  ;;  %v4375_v9 = vld [vmem:[%s5843_s0 + $0x18] sm:$0xff] }
 0x3de   :  { %3794 = vmatprep.mubr.msk.bf16.mxu0 %vm4402_vm0, %v4401_v1  ;;  %v1114_v57 = vmul.f32 %v4251_v56, %v4857_v62  ;;  %3844 = vmatprep.subr.bf16.mxu1 %v4401_v1 }
 0x3e0   :  { %v1118_v19 = vpack.c.bf16 %v1114_v57, %v1113_v16 }
 0x3e5   :  { %3795 = vmatmul.mubr.msk.bf16.vlgmr.msra.gmra.mrb[24].mxu0 %vm310_vm11, %v861_v21 }
 0x3e6   :  { %3825 = vmatpush3.bf16.msra.mxu0 %v1122_v3  ;;  %3798 = vmatprep.mubr.msk.bf16.mxu0 %vm4402_vm0, %v4401_v1 }
 0x3e7   :  { %3826 = vmatprep.subr.bf16.mxu0 %v4401_v1 }
 0x3ea   :  { %3827 = vmatpush3.bf16.msra.mxu0 %v1124_v48 }
 0x3eb   :  { %3828 = vmatprep.subr.bf16.mxu0 %v4401_v1 }
 0x3ed   :  { %3799 = vmatmul.mubr.msk.bf16.gmra.mrb[28].mxu0 %vm310_vm11, %v862_v42  ;;  %v4151_v42 = vld [vmem:[%s5846_s3 + $0x8] sm:$0xff]  }
 0x3ee   :  { %3802 = vmatprep.mubr.msk.bf16.mxu0 %vm4402_vm0, %v4401_v1  ;;  %3845 = vmatpush3.bf16.msra.mxu1 %v4151_v42 }
 0x3ef   :  { %3874 = vmatprep.subr.bf16.mxu1 %v4401_v1 }
 0x3f2   :  { %v1101_v38 = vpop.xlane.xlu1 %1100 }
 0x3f3   :  { %4252 = vrcp.f32 %v1101_v38 }
 0x3f5   :  { %3803 = vmatmul.mubr.msk.bf16.gmra.mrb[32].mxu0 %vm310_vm11, %v863_v61 }
 0x3f6   :  { %3830 = vmatprep.mubr.msk.bf16.mxu0 %vm4402_vm0, %v4401_v1 }
 0x3fd   :  { %v4253_v63 = vpop.eup %4252 }
 0x3fe   :  { %v1115_v59 = vmul.f32 %v4253_v63, %v4891_v24 }
 0x40a   :  { %v1104_v55 = vpop.xlane.xlu0 %1103 }
 0x40b   :  { %4254 = vrcp.f32 %v1104_v55 }
 0x40e   :  { %v1126_v30 = vpop.permute.xlu0 %1125 }
 0x40f   :  { %v1139_v36 = vsel %vm387_vm3, %v1126_v30, 0 }
 0x410   :  { %3829 = vmatpush3.bf16.msra.mxu0 %v1139_v36 }
 0x411   :  { %3858 = vmatprep.subr.bf16.mxu0 %v4401_v1 }
 0x413   :  { %3831 = vmatmul.mubr.msk.bf16.vlgmr.msra.gmra.mrb[36].mxu0 %vm310_vm11, %v1118_v19 }
 0x414   :  { %3834 = vmatprep.mubr.msk.bf16.mxu0 %vm4402_vm0, %v4401_v1 }
 0x415   :  { %v4255_v0 = vpop.eup %4254 }
 0x416   :  { %v1116_v14 = vmul.f32 %v4255_v0, %v4896_v18 }
 0x418   :  { %v1119_v2 = vpack.c.bf16 %v1116_v14, %v1115_v59 }
 0x41b   :  { %3835 = vmatmul.mubr.msk.bf16.gmra.mrb[40].mxu0 %vm310_vm11, %v1119_v2 }
 0x41c   :  { %3838 = vmatprep.mubr.msk.bf16.mxu0 %vm4402_vm0, %v4401_v1 }
 0x43f   :  { %v1107_v62 = vpop.xlane.xlu0 %1106 }
 0x440   :  { %4256 = vrcp.f32 %v1107_v62 }
 0x44a   :  { %v4257_v6 = vpop.eup %4256 }
 0x44b   :  { %v1117_v7 = vmul.f32 %v4257_v6, %v4914_v51 }
 0x44d   :  { %v1120_v4 = vpack.c.bf16 %v1117_v7, %v1117_v7 }
 0x44f   :  { %3839 = vmatmul.mubr.msk.bf16.gmra.mrb[44].mxu0 %vm310_vm11, %v1120_v4 }
 0x450   :  { %3862 = vmatprep.mubr.msk.bf16.mxu0 %vm4402_vm0, %v4401_v1 }
 0x457   :  { %v425_v24 = vpop.f32.mrb[0].mxu0 }
 0x458   :  { %447 = vst.msk [vmem:[#allocation2] sm:$0xff] %vm225_vm2, %v425_v24  ;;  %v3724_v18 = vpop.f32.mrb[1].mxu0 }
 0x459   :  { %v428_v11 = vpop.f32.mrb[2].mxu0 }
 0x45a   :  { %448 = vst.msk [vmem:[#allocation2 + $0x8] sm:$0xff] %vm225_vm2, %v428_v11  ;;  %v3725_v46 = vpop.f32.mrb[3].mxu0 }
 0x490   :  { %v433_v23 = vpop.f32.mrb[4].mxu0 }
 0x491   :  { %449 = vst.msk [vmem:[#allocation2 + $0x10] sm:$0xff] %vm225_vm2, %v433_v23  ;;  %v3728_v20 = vpop.f32.mrb[5].mxu0 }
 0x492   :  { %v436_v53 = vpop.f32.mrb[6].mxu0 }
 0x493   :  { %450 = vst.msk [vmem:[#allocation2 + $0x18] sm:$0xff] %vm225_vm2, %v436_v53  ;;  %v3729_v51 = vpop.f32.mrb[7].mxu0 }
 0x498   :  { %v441_v15 = vpop.f32.mrb[8].mxu0 }
 0x499   :  { %452 = vst.msk [vmem:[#allocation2 + $0x20] sm:$0x3] %vm451_vm5, %v441_v15  ;;  %v3732_v8 = vpop.f32.mrb[9].mxu0 }
 0x49a   :  { %v444_v17 = vpop.f32.mrb[10].mxu0 }
 0x49b   :  { %v3733_v31 = vpop.f32.mrb[11].mxu0 }
 0x4a0   :  { %v661_v32 = vpop.f32.mrb[12].mxu0 }
 0x4a1   :  { %688 = vrot.lane.b32.xlu1 %v661_v32, %s5869_s30  ;;  %v3760_v26 = vpop.f32.mrb[13].mxu0 }
 0x4a2   :  { %v664_v27 = vpop.f32.mrb[14].mxu0 }
 0x4a3   :  { %v3761_v29 = vpop.f32.mrb[15].mxu0 }
 0x4a5   :  { %690 = vrot.lane.b32.xlu1 %v664_v27, %s5869_s30  ;;  %v3411_v27 = vld [vmem:[%s5847_s4] ss:$0 sm:$0xff] }
 0x4a8   :  { %v669_v10 = vpop.f32.mrb[16].mxu0 }
 0x4a9   :  { %v3764_v40 = vpop.f32.mrb[17].mxu0 }
 0x4aa   :  { %v672_v34 = vpop.f32.mrb[18].mxu0 }
 0x4ab   :  { %v3765_v37 = vpop.f32.mrb[19].mxu0 }
 0x4b0   :  { %v677_v60 = vpop.f32.mrb[20].mxu0 }
 0x4b1   :  { %v3768_v25 = vpop.f32.mrb[21].mxu0 }
 0x4b2   :  { %v680_v58 = vpop.f32.mrb[22].mxu0  ;;  %v4372_v25 = vld [vmem:[%s5843_s0] sm:$0xff] }
 0x4b3   :  { %v3769_v35 = vpop.f32.mrb[23].mxu0 }
 0x4b8   :  { %v918_v50 = vpop.f32.mrb[24].mxu0 }
 0x4b9   :  { %945 = vrot.lane.b32.xlu1 %v918_v50, %s5867_s16  ;;  %v3796_v39 = vpop.f32.mrb[25].mxu0  ;;  %v4373_v50 = vld [vmem:[%s5843_s0 + $0x8] sm:$0xff] }
 0x4ba   :  { %v921_v44 = vpop.f32.mrb[26].mxu0 }
 0x4bb   :  { %v3797_v54 = vpop.f32.mrb[27].mxu0 }
 0x4bd   :  { %947 = vrot.lane.b32.xlu1 %v921_v44, %s5867_s16 }
 0x4c0   :  { %v926_v5 = vpop.f32.mrb[28].mxu0 }
 0x4c1   :  { %v3800_v45 = vpop.f32.mrb[29].mxu0 }
 0x4c2   :  { %v929_v21 = vpop.f32.mrb[30].mxu0 }
 0x4c3   :  { %v3801_v3 = vpop.f32.mrb[31].mxu0 }
 0x4c8   :  { %v934_v43 = vpop.f32.mrb[32].mxu0 }
 0x4c9   :  { %v3804_v22 = vpop.f32.mrb[33].mxu0 }
 0x4ca   :  { %v937_v47 = vpop.f32.mrb[34].mxu0  ;;  %v4374_v22 = vld [vmem:[%s5843_s0 + $0x10] sm:$0xff] }
 0x4cb   :  { %v3805_v48 = vpop.f32.mrb[35].mxu0 }
 0x4e6   :  { %v1175_v52 = vpop.f32.mrb[36].mxu0 }
 0x4e7   :  { %1202 = vrot.lane.b32.xlu1 %v1175_v52, %s5865_s24  ;;  %v3832_v49 = vpop.f32.mrb[37].mxu0 }
 0x4e8   :  { %v1178_v61 = vpop.f32.mrb[38].mxu0 }
 0x4e9   :  { %1204 = vrot.lane.b32.xlu0 %v1178_v61, %s5865_s24  ;;  %v3833_v38 = vpop.f32.mrb[39].mxu0 }
 0x4eb   :  { %692 = vrot.lane.b32.xlu1 %v669_v10, %s5869_s30 }
 0x4ee   :  { %v1183_v12 = vpop.f32.mrb[40].mxu0 }
 0x4ef   :  { %694 = vrot.lane.b32.xlu1 %v672_v34, %s5869_s30  ;;  %v3836_v55 = vpop.f32.mrb[41].mxu0 }
 0x4f0   :  { %v1186_v56 = vpop.f32.mrb[42].mxu0 }
 0x4f1   :  { %1208 = vrot.lane.b32.xlu0 %v1186_v56, %s5865_s24  ;;  %v3837_v16 = vpop.f32.mrb[43].mxu0  ;;  %v4376_v56 = vld [vmem:[%s5843_s0 + $0x20] sm:$0x3] }
 0x4f3   :  { %949 = vrot.lane.b32.xlu1 %v926_v5, %s5867_s16 }
 0x4f5   :  { %953 = vrot.lane.b32.xlu0 %v934_v43, %s5867_s16 }
 0x4f7   :  { %951 = vrot.lane.b32.xlu1 %v929_v21, %s5867_s16 }
 0x4fb   :  { %1206 = vrot.lane.b32.xlu1 %v1183_v12, %s5865_s24 }
 0x4ff   :  { %696 = vrot.lane.b32.xlu1 %v677_v60, %s5869_s30 }
 0x513   :  { %v689_v30 = vpop.permute.xlu1 %688 }
 0x514   :  { %704 = vst.msk [vmem:[#allocation2] sm:$0xff] %vm703_vm6, %v689_v30 }
 0x517   :  { %v691_v57 = vpop.permute.xlu1 %690 }
 0x518   :  { %705 = vst.msk [vmem:[#allocation2 + $0x8] sm:$0xff] %vm703_vm6, %v691_v57 }
 0x522   :  { %v1191_v36 = vpop.f32.mrb[44].mxu0 }
 0x523   :  { %1210 = vrot.lane.b32.xlu1 %v1191_v36, %s5865_s24  ;;  %v3840_v19 = vpop.f32.mrb[45].mxu0 }
 0x524   :  { %v1194_v63 = vpop.f32.mrb[46].mxu0 }
 0x525   :  { %v3841_v0 = vpop.f32.mrb[47].mxu0 }
 0x52b   :  { %v946_v59 = vpop.permute.xlu1 %945 }
 0x52c   :  { %961 = vst.msk [vmem:[#allocation2] sm:$0xff] %vm960_vm7, %v946_v59 }
 0x52f   :  { %v948_v14 = vpop.permute.xlu1 %947 }
 0x530   :  { %962 = vst.msk [vmem:[#allocation2 + $0x8] sm:$0xff] %vm960_vm7, %v948_v14 }
 0x559   :  { %v1203_v2 = vpop.permute.xlu1 %1202 }
 0x55a   :  { %1218 = vst.msk [vmem:[#allocation2] sm:$0xff] %vm1217_vm8, %v1203_v2 }
 0x55b   :  { %v1205_v62 = vpop.permute.xlu0 %1204 }
 0x55c   :  { %1219 = vst.msk [vmem:[#allocation2 + $0x8] sm:$0xff] %vm1217_vm8, %v1205_v62 }
 0x55d   :  { %v693_v6 = vpop.permute.xlu1 %692 }
 0x55e   :  { %706 = vst.msk [vmem:[#allocation2 + $0x10] sm:$0xff] %vm703_vm6, %v693_v6 }
 0x561   :  { %v695_v7 = vpop.permute.xlu1 %694  ;;  %v1224_v4 = vld [vmem:[#allocation2] sm:$0xff] }
 0x562   :  { %707 = vst.msk [vmem:[#allocation2 + $0x18] sm:$0xff] %vm703_vm6, %v695_v7 }
 0x563   :  { %v1225_v24 = vld [vmem:[#allocation2 + $0x8] sm:$0xff]  ;;  %v1209_v23 = vpop.permute.xlu0 %1208 }
 0x564   :  { %v1229_v18 = vpack.c.bf16 %v1225_v24, %v1224_v4 }
 0x565   :  { %v950_v11 = vpop.permute.xlu1 %949 }
 0x566   :  { %963 = vst.msk [vmem:[#allocation2 + $0x10] sm:$0xff] %vm960_vm7, %v950_v11  ;;  %3847 = vmatmul.mubr.msk.bf16.vlgmr.msra.gmra.mrb[60].mxu1 %vm147_vm1, %v1229_v18 }
 0x567   :  { %3850 = vmatprep.mubr.msk.bf16.mxu1 %vm4402_vm0, %v4401_v1  ;;  %v954_v51 = vpop.permute.xlu0 %953 }
 0x569   :  { %v952_v46 = vpop.permute.xlu1 %951 }
 0x56a   :  { %964 = vst.msk [vmem:[#allocation2 + $0x18] sm:$0xff] %vm960_vm7, %v952_v46 }
 0x56b   :  { %1221 = vst.msk [vmem:[#allocation2 + $0x18] sm:$0xff] %vm1217_vm8, %v1209_v23 }
 0x56d   :  { %v1207_v20 = vpop.permute.xlu1 %1206 }
 0x56e   :  { %1220 = vst.msk [vmem:[#allocation2 + $0x10] sm:$0xff] %vm1217_vm8, %v1207_v20 }
 0x571   :  { %v697_v53 = vpop.permute.xlu1 %696 }
 0x572   :  { %709 = vst.msk [vmem:[#allocation2 + $0x20] sm:$0x3] %vm708_vm9, %v697_v53  ;;  %v1227_v8 = vld [vmem:[#allocation2 + $0x18] sm:$0xff] }
 0x573   :  { %966 = vst.msk [vmem:[#allocation2 + $0x20] sm:$0x3] %vm965_vm10, %v954_v51 }
 0x575   :  { %v1226_v15 = vld [vmem:[#allocation2 + $0x10] sm:$0xff] }
 0x576   :  { %v1230_v17 = vpack.c.bf16 %v1227_v8, %v1226_v15  ;;  %v4152_v15 = vld [vmem:[%s5850_s7] sm:$0xff]   ;;  %v4153_v8 = vld [vmem:[%s5850_s7 + $0x8] sm:$0xff]  }
 0x577   :  { %3859 = vmatpush3.bf16.msra.mxu0 %v4152_v15 }
 0x578   :  { %3851 = vmatmul.mubr.msk.bf16.gmra.mrb[64].mxu1 %vm147_vm1, %v1230_v17  ;;  %3860 = vmatprep.subr.bf16.mxu0 %v4401_v1 }
 0x579   :  { %3854 = vmatprep.mubr.msk.bf16.mxu1 %vm4402_vm0, %v4401_v1 }
 0x57b   :  { %3861 = vmatpush3.bf16.msra.mxu0 %v4153_v8 }
 0x57c   :  { %3902 = vmatprep.subr.bf16.mxu0 %v4401_v1 }
 0x595   :  { %v1211_v31 = vpop.permute.xlu1 %1210 }
 0x596   :  { %1223 = vst.msk [vmem:[#allocation2 + $0x20] sm:$0x3] %vm1222_vm12, %v1211_v31 }
 0x59d   :  { %v1228_v32 = vld [vmem:[#allocation2 + $0x20] sm:$0x3] }
 0x59e   :  { %v1231_v26 = vpack.c.bf16 %v1228_v32, %v1228_v32 }
 0x5a0   :  { %3855 = vmatmul.mubr.msk.bf16.gmra.mrb[68].mxu1 %vm147_vm1, %v1231_v26 }
 0x5a1   :  { %3890 = vmatprep.mubr.msk.bf16.mxu1 %vm4402_vm0, %v4401_v1 }
 0x639   :  { %v1298_v29 = vpop.f32.mrb[60].mxu1 }
 0x63a   :  { %v1299_v10 = vadd.f32 %v3411_v27, %v1298_v29  ;;  %v3848_v40 = vpop.f32.mrb[61].mxu1  ;;  %v4154_v29 = vld [vmem:[%s5852_s9] sm:$0xff]  }
 0x63b   :  { %v1301_v34 = vpop.f32.mrb[62].mxu1  ;;  %3875 = vmatpush3.bf16.msra.mxu1 %v4154_v29  ;;  %v4156_v40 = vld [vmem:[%s5852_s9 + $0x10] sm:$0xff]  }
 0x63c   :  { %v1302_v37 = vadd.f32 %v3411_v27, %v1301_v34  ;;  %v3849_v60 = vpop.f32.mrb[63].mxu1  ;;  %v1320_v58 = vadd.f32 %v4372_v25, %v1299_v10  ;;  %v4155_v10 = vld [vmem:[%s5852_s9 + $0x8] sm:$0xff]   ;;  %3876 = vmatprep.subr.bf16.mxu1 %v4401_v1  ;;  %v4157_v34 = vld [vmem:[%s5852_s9 + $0x18] sm:$0xff]  }
 0x63d   :  { %v4159_v60 = vld [vmem:[%s5852_s9 + $0x28] sm:$0xff]  }
 0x63e   :  { %v1327_v35 = vsel %vm147_vm1, %v1320_v58, 0.0  ;;  %v1321_v39 = vadd.f32 %v4373_v50, %v1302_v37  ;;  %v4158_v37 = vld [vmem:[%s5852_s9 + $0x20] sm:$0xff]  }
 0x63f   :  { %1328 = vadd.xlane.f32.xlu0 %v1327_v35  ;;  %3877 = vmatpush3.bf16.msra.mxu1 %v4155_v10 }
 0x640   :  { %v1330_v44 = vsel %vm147_vm1, %v1321_v39, 0.0  ;;  %3878 = vmatprep.subr.bf16.mxu1 %v4401_v1 }
 0x641   :  { %1331 = vadd.xlane.f32.xlu1 %v1330_v44 }
 0x643   :  { %3879 = vmatpush3.bf16.msra.mxu1 %v4156_v40 }
 0x644   :  { %3880 = vmatprep.subr.bf16.mxu1 %v4401_v1 }
 0x647   :  { %3881 = vmatpush3.bf16.msra.mxu1 %v4157_v34 }
 0x648   :  { %3882 = vmatprep.subr.bf16.mxu1 %v4401_v1 }
 0x64b   :  { %v1306_v54 = vpop.f32.mrb[64].mxu1  ;;  %3883 = vmatpush3.bf16.msra.mxu1 %v4158_v37 }
 0x64c   :  { %v1307_v5 = vadd.f32 %v3411_v27, %v1306_v54  ;;  %v3852_v45 = vpop.f32.mrb[65].mxu1  ;;  %3884 = vmatprep.subr.bf16.mxu1 %v4401_v1 }
 0x64d   :  { %v1309_v21 = vpop.f32.mrb[66].mxu1 }
 0x64e   :  { %v1310_v3 = vadd.f32 %v3411_v27, %v1309_v21  ;;  %v3853_v43 = vpop.f32.mrb[67].mxu1  ;;  %v1322_v47 = vadd.f32 %v4374_v22, %v1307_v5  ;;  %v3417_v5 = vld [vmem:[%s5848_s5] ss:$0 sm:$0xff] }
 0x64f   :  { %3885 = vmatpush3.bf16.msra.mxu1 %v4159_v60 }
 0x650   :  { %v1333_v48 = vsel %vm147_vm1, %v1322_v47, 0.0  ;;  %v1323_v42 = vadd.f32 %v4375_v9, %v1310_v3  ;;  %3886 = vmatprep.subr.bf16.mxu1 %v4401_v1 }
 0x651   :  { %1334 = vadd.xlane.f32.xlu0 %v1333_v48 }
 0x652   :  { %v1336_v52 = vsel %vm147_vm1, %v1323_v42, 0.0 }
 0x655   :  { %1337 = vadd.xlane.f32.xlu0 %v1336_v52 }
 0x673   :  { %v1314_v49 = vpop.f32.mrb[68].mxu1 }
 0x674   :  { %v1315_v61 = vadd.f32 %v3411_v27, %v1314_v49  ;;  %v3856_v38 = vpop.f32.mrb[69].mxu1 }
 0x675   :  { %v1317_v12 = vpop.f32.mrb[70].mxu1 }
 0x676   :  { %v3857_v55 = vpop.f32.mrb[71].mxu1  ;;  %v1324_v16 = vadd.f32 %v4376_v56, %v1315_v61 }
 0x678   :  { %v1340_v30 = vsel %vm1339_vm13, %v1324_v16, 0.0 }
 0x679   :  { %1341 = vadd.xlane.f32.xlu1 %v1340_v30 }
 0x6cc   :  { %v1329_v57 = vpop.xlane.xlu0 %1328 }
 0x6cd   :  { %v1344_v36 = vmul.f32 0.03125, %v1329_v57 }
 0x6ce   :  { %v1332_v19 = vpop.xlane.xlu1 %1331 }
 0x6cf   :  { %v1349_v63 = vsub.f32 %v1320_v58, %v1344_v36  ;;  %v1345_v0 = vmul.f32 0.03125, %v1332_v19 }
 0x6d1   :  { %v1350_v59 = vsub.f32 %v1321_v39, %v1345_v0  ;;  %v1354_v14 = vmul.f32 %v1349_v63, %v1349_v63 }
 0x6d3   :  { %v1359_v2 = vsel %vm147_vm1, %v1354_v14, 0.0  ;;  %v1355_v62 = vmul.f32 %v1350_v59, %v1350_v59 }
 0x6d4   :  { %1360 = vadd.xlane.f32.xlu0 %v1359_v2 }
 0x6d5   :  { %v1362_v6 = vsel %vm147_vm1, %v1355_v62, 0.0 }
 0x6d6   :  { %1363 = vadd.xlane.f32.xlu1 %v1362_v6 }
 0x6de   :  { %v1335_v7 = vpop.xlane.xlu0 %1334 }
 0x6df   :  { %v1346_v4 = vmul.f32 0.03125, %v1335_v7 }
 0x6e1   :  { %v5054_v24 = vsub.f32 %v1322_v47, %v1346_v4  ;;  %v3418_v47 = vld [vmem:[%s5849_s6] ss:$0 sm:$0xff] }
 0x6e2   :  { %v1338_v18 = vpop.xlane.xlu0 %1337 }
 0x6e3   :  { %v1347_v11 = vmul.f32 0.03125, %v1338_v18  ;;  %v1356_v46 = vmul.f32 %v5054_v24, %v5054_v24 }
 0x6e5   :  { %v5058_v23 = vsub.f32 %v1323_v42, %v1347_v11  ;;  %v1365_v20 = vsel %vm147_vm1, %v1356_v46, 0.0  ;;  %v4160_v11 = vld [vmem:[%s5852_s9 + $0x30] sm:$0xff]   ;;  %v4161_v46 = vld [vmem:[%s5852_s9 + $0x38] sm:$0xff]  }
 0x6e6   :  { %1366 = vadd.xlane.f32.xlu0 %v1365_v20  ;;  %3887 = vmatpush3.bf16.msra.mxu1 %v4160_v11 }
 0x6e7   :  { %v1357_v53 = vmul.f32 %v5058_v23, %v5058_v23  ;;  %3888 = vmatprep.subr.bf16.mxu1 %v4401_v1 }
 0x6e9   :  { %v1368_v51 = vsel %vm147_vm1, %v1357_v53, 0.0 }
 0x6ea   :  { %1369 = vadd.xlane.f32.xlu1 %v1368_v51  ;;  %3889 = vmatpush3.bf16.msra.mxu1 %v4161_v46 }
 0x6eb   :  { %3936 = vmatprep.subr.bf16.mxu1 %v4401_v1 }
 0x706   :  { %v1342_v17 = vpop.xlane.xlu1 %1341 }
 0x707   :  { %v1348_v31 = vmul.f32 0.03125, %v1342_v17 }
 0x709   :  { %v5072_v32 = vsub.f32 %v1324_v16, %v1348_v31 }
 0x70b   :  { %v1358_v26 = vmul.f32 %v5072_v32, %v5072_v32 }
 0x70d   :  { %v1371_v27 = vsel %vm1339_vm13, %v1358_v26, 0.0 }
 0x70e   :  { %1372 = vadd.xlane.f32.xlu0 %v1371_v27 }
 0x761   :  { %v1361_v25 = vpop.xlane.xlu0 %1360 }
 0x762   :  { %v1374_v58 = vmul.f32 0.03125, %v1361_v25 }
 0x763   :  { %v1364_v35 = vpop.xlane.xlu1 %1363 }
 0x764   :  { %v1379_v50 = vadd.f32 1e-05, %v1374_v58  ;;  %v1375_v39 = vmul.f32 0.03125, %v1364_v35 }
 0x766   :  { %4258 = vrsqrt.f32 %v1379_v50  ;;  %v1380_v44 = vadd.f32 1e-05, %v1375_v39 }
 0x768   :  { %4260 = vrsqrt.f32 %v1380_v44 }
 0x770   :  { %v4259_v54 = vpop.eup %4258 }
 0x771   :  { %v1389_v45 = vmul.f32 %v4259_v54, %v1349_v63 }
 0x772   :  { %v4261_v21 = vpop.eup %4260 }
 0x773   :  { %v1400_v3 = vmul.f32 %v3417_v5, %v1389_v45  ;;  %v1390_v43 = vmul.f32 %v4261_v21, %v1350_v59  ;;  %v1367_v22 = vpop.xlane.xlu0 %1366  ;;  %v3425_v21 = vld [vmem:[%s5853_s10] ss:$0 sm:$0xff] }
 0x774   :  { %v1376_v48 = vmul.f32 0.03125, %v1367_v22 }
 0x775   :  { %v1401_v9 = vmul.f32 %v3417_v5, %v1390_v43  ;;  %v5107_v52 = vadd.f32 %v3418_v47, %v1400_v3 }
 0x776   :  { %v1381_v42 = vadd.f32 1e-05, %v1376_v48 }
 0x777   :  { %v5109_v49 = vadd.f32 %v3418_v47, %v1401_v9  ;;  %v1370_v61 = vpop.xlane.xlu1 %1369 }
 0x778   :  { %4262 = vrsqrt.f32 %v1381_v42  ;;  %v1377_v38 = vmul.f32 0.03125, %v1370_v61 }
 0x779   :  { %v1416_v12 = vpack.c.bf16 %v5109_v49, %v5107_v52 }
 0x77a   :  { %v1382_v55 = vadd.f32 1e-05, %v1377_v38 }
 0x77b   :  { %3863 = vmatmul.mubr.msk.bf16.vlgmr.msra.gmra.mrb[48].mxu0 %vm147_vm1, %v1416_v12 }
 0x77c   :  { %4264 = vrsqrt.f32 %v1382_v55  ;;  %3866 = vmatprep.mubr.msk.bf16.mxu0 %vm4402_vm0, %v4401_v1 }
 0x782   :  { %v4263_v56 = vpop.eup %4262 }
 0x783   :  { %v1391_v16 = vmul.f32 %v4263_v56, %v5054_v24 }
 0x785   :  { %v1402_v36 = vmul.f32 %v3417_v5, %v1391_v16 }
 0x786   :  { %v4265_v30 = vpop.eup %4264 }
 0x787   :  { %v1392_v57 = vmul.f32 %v4265_v30, %v5058_v23  ;;  %v5118_v63 = vadd.f32 %v3418_v47, %v1402_v36  ;;  %v3419_v23 = vld [vmem:[%s5851_s8] ss:$0 sm:$0xff] }
 0x789   :  { %v1403_v19 = vmul.f32 %v3417_v5, %v1392_v57 }
 0x78b   :  { %v5120_v0 = vadd.f32 %v3418_v47, %v1403_v19 }
 0x78d   :  { %v1417_v59 = vpack.c.bf16 %v5120_v0, %v5118_v63 }
 0x78f   :  { %3867 = vmatmul.mubr.msk.bf16.gmra.mrb[52].mxu0 %vm147_vm1, %v1417_v59 }
 0x790   :  { %3870 = vmatprep.mubr.msk.bf16.mxu0 %vm4402_vm0, %v4401_v1 }
 0x79b   :  { %v1373_v14 = vpop.xlane.xlu0 %1372 }
 0x79c   :  { %v1378_v2 = vmul.f32 0.03125, %v1373_v14 }
 0x79e   :  { %v1383_v62 = vadd.f32 1e-05, %v1378_v2 }
 0x7a0   :  { %4266 = vrsqrt.f32 %v1383_v62 }
 0x7aa   :  { %v4267_v6 = vpop.eup %4266 }
 0x7ab   :  { %v1393_v7 = vmul.f32 %v4267_v6, %v5072_v32 }
 0x7ad   :  { %v1404_v4 = vmul.f32 %v3417_v5, %v1393_v7 }
 0x7af   :  { %v5128_v24 = vadd.f32 %v3418_v47, %v1404_v4 }
 0x7b1   :  { %v1418_v18 = vpack.c.bf16 %v5128_v24, %v5128_v24 }
 0x7b3   :  { %3871 = vmatmul.mubr.msk.bf16.gmra.mrb[56].mxu0 %vm147_vm1, %v1418_v18 }
 0x7b4   :  { %3906 = vmatprep.mubr.msk.bf16.mxu0 %vm4402_vm0, %v4401_v1 }
 0x84e   :  { %v1485_v20 = vpop.f32.mrb[48].mxu0 }
 0x84f   :  { %v1486_v53 = vadd.f32 %v3419_v23, %v1485_v20  ;;  %v3864_v51 = vpop.f32.mrb[49].mxu0 }
 0x850   :  { %v1488_v15 = vpop.f32.mrb[50].mxu0 }
 0x851   :  { %v1489_v8 = vadd.f32 %v3419_v23, %v1488_v15  ;;  %v3865_v17 = vpop.f32.mrb[51].mxu0  ;;  %v1507_v31 = vmax.f32 %v1486_v53, 0.0 }
 0x853   :  { %v1508_v32 = vmax.f32 %v1489_v8, 0.0 }
 0x855   :  { %v1512_v26 = vpack.c.bf16 %v1508_v32, %v1507_v31 }
 0x857   :  { %3891 = vmatmul.mubr.bf16.vlgmr.msra.gmra.mrb[72].mxu1 %v1512_v26 }
 0x858   :  { %3894 = vmatprep.mubr.msk.bf16.mxu1 %vm4402_vm0, %v4401_v1 }
 0x862   :  { %v1493_v27 = vpop.f32.mrb[52].mxu0 }
 0x863   :  { %v1494_v29 = vadd.f32 %v3419_v23, %v1493_v27  ;;  %v3868_v10 = vpop.f32.mrb[53].mxu0 }
 0x864   :  { %v1496_v40 = vpop.f32.mrb[54].mxu0 }
 0x865   :  { %v1497_v34 = vadd.f32 %v3419_v23, %v1496_v40  ;;  %v3869_v37 = vpop.f32.mrb[55].mxu0  ;;  %v1509_v60 = vmax.f32 %v1494_v29, 0.0 }
 0x866   :  { %v4162_v37 = vld [vmem:[%s5844_s1 + $0x10] sm:$0xff]  }
 0x867   :  { %v1510_v25 = vmax.f32 %v1497_v34, 0.0  ;;  %3903 = vmatpush3.bf16.msra.mxu0 %v4162_v37 }
 0x868   :  { %3904 = vmatprep.subr.bf16.mxu0 %v4401_v1 }
 0x869   :  { %v1513_v58 = vpack.c.bf16 %v1510_v25, %v1509_v60  ;;  %v4163_v60 = vld [vmem:[%s5844_s1 + $0x18] sm:$0xff]  }
 0x86b   :  { %3895 = vmatmul.mubr.bf16.gmra.mrb[76].mxu1 %v1513_v58  ;;  %3905 = vmatpush3.bf16.msra.mxu0 %v4163_v60 }
 0x86c   :  { %3898 = vmatprep.mubr.msk.bf16.mxu1 %vm4402_vm0, %v4401_v1  ;;  %3918 = vmatprep.subr.bf16.mxu0 %v4401_v1 }
 0x886   :  { %v1501_v35 = vpop.f32.mrb[56].mxu0 }
 0x887   :  { %v1502_v50 = vadd.f32 %v3419_v23, %v1501_v35  ;;  %v3872_v39 = vpop.f32.mrb[57].mxu0 }
 0x888   :  { %v1504_v44 = vpop.f32.mrb[58].mxu0 }
 0x889   :  { %v1511_v54 = vmax.f32 %v1502_v50, 0.0  ;;  %v3873_v5 = vpop.f32.mrb[59].mxu0 }
 0x88b   :  { %v1514_v45 = vpack.c.bf16 %v1511_v54, %v1511_v54 }
 0x88d   :  { %3899 = vmatmul.mubr.bf16.gmra.mrb[80].mxu1 %v1514_v45 }
 0x88e   :  { %3942 = vmatprep.mubr.msk.bf16.mxu1 %vm4402_vm0, %v4401_v1 }
 0x92a   :  { %v1620_v3 = vpop.f32.mrb[72].mxu1 }
 0x92b   :  { %v1621_v43 = vadd.f32 %v3425_v21, %v1620_v3  ;;  %v3892_v22 = vpop.f32.mrb[73].mxu1 }
 0x92c   :  { %v1623_v47 = vpop.f32.mrb[74].mxu1  ;;  %v3434_v22 = vld [vmem:[%s5854_s11] ss:$0 sm:$0xff] }
 0x92d   :  { %v1624_v48 = vadd.f32 %v3425_v21, %v1623_v47  ;;  %v3893_v9 = vpop.f32.mrb[75].mxu1  ;;  %v1642_v42 = vadd.f32 %v1621_v43, %v5107_v52 }
 0x92f   :  { %v1643_v61 = vadd.f32 %v1624_v48, %v5109_v49  ;;  %v1649_v38 = vsel %vm147_vm1, %v1642_v42, 0.0 }
 0x930   :  { %1650 = vadd.xlane.f32.xlu1 %v1649_v38 }
 0x931   :  { %v1652_v12 = vsel %vm147_vm1, %v1643_v61, 0.0 }
 0x932   :  { %1653 = vadd.xlane.f32.xlu0 %v1652_v12 }
 0x93e   :  { %v1628_v55 = vpop.f32.mrb[76].mxu1 }
 0x93f   :  { %v1629_v56 = vadd.f32 %v3425_v21, %v1628_v55  ;;  %v3896_v16 = vpop.f32.mrb[77].mxu1 }
 0x940   :  { %v1631_v30 = vpop.f32.mrb[78].mxu1 }
 0x941   :  { %v1644_v57 = vadd.f32 %v1629_v56, %v5118_v63  ;;  %v1632_v36 = vadd.f32 %v3425_v21, %v1631_v30  ;;  %v3897_v19 = vpop.f32.mrb[79].mxu1 }
 0x943   :  { %v1645_v59 = vadd.f32 %v1632_v36, %v5120_v0  ;;  %v1655_v52 = vsel %vm147_vm1, %v1644_v57, 0.0 }
 0x944   :  { %1656 = vadd.xlane.f32.xlu1 %v1655_v52 }
 0x945   :  { %v1658_v49 = vsel %vm147_vm1, %v1645_v59, 0.0 }
 0x946   :  { %1659 = vadd.xlane.f32.xlu0 %v1658_v49 }
 0x960   :  { %v1636_v14 = vpop.f32.mrb[80].mxu1 }
 0x961   :  { %v1637_v2 = vadd.f32 %v3425_v21, %v1636_v14  ;;  %v3900_v62 = vpop.f32.mrb[81].mxu1 }
 0x962   :  { %v1639_v6 = vpop.f32.mrb[82].mxu1 }
 0x963   :  { %v1646_v7 = vadd.f32 %v1637_v2, %v5128_v24  ;;  %v3901_v4 = vpop.f32.mrb[83].mxu1 }
 0x965   :  { %v1661_v18 = vsel %vm1339_vm13, %v1646_v7, 0.0 }
 0x966   :  { %1662 = vadd.xlane.f32.xlu1 %v1661_v18 }
 0x9bd   :  { %v1651_v63 = vpop.xlane.xlu1 %1650 }
 0x9be   :  { %v1664_v11 = vmul.f32 0.03125, %v1651_v63 }
 0x9bf   :  { %v1654_v46 = vpop.xlane.xlu0 %1653 }
 0x9c0   :  { %v1669_v0 = vsub.f32 %v1642_v42, %v1664_v11  ;;  %v1665_v23 = vmul.f32 0.03125, %v1654_v46 }
 0x9c2   :  { %v1670_v20 = vsub.f32 %v1643_v61, %v1665_v23  ;;  %v1674_v53 = vmul.f32 %v1669_v0, %v1669_v0  ;;  %v3435_v61 = vld [vmem:[%s5855_s12] ss:$0 sm:$0xff] }
 0x9c4   :  { %v1679_v51 = vsel %vm147_vm1, %v1674_v53, 0.0  ;;  %v1675_v15 = vmul.f32 %v1670_v20, %v1670_v20 }
 0x9c5   :  { %1680 = vadd.xlane.f32.xlu0 %v1679_v51 }
 0x9c6   :  { %v1682_v8 = vsel %vm147_vm1, %v1675_v15, 0.0  ;;  %v3441_v15 = vld [vmem:[%s5845_s2 + $0x1] ss:$0 sm:$0xff]  ;;  %s5875_s2 = smov 72  }
 0x9c7   :  { %1683 = vadd.xlane.f32.xlu1 %v1682_v8 }
 0x9d1   :  { %v1657_v17 = vpop.xlane.xlu1 %1656 }
 0x9d2   :  { %v1666_v24 = vmul.f32 0.03125, %v1657_v17 }
 0x9d3   :  { %v1660_v31 = vpop.xlane.xlu0 %1659 }
 0x9d4   :  { %v1671_v32 = vsub.f32 %v1644_v57, %v1666_v24  ;;  %v1667_v26 = vmul.f32 0.03125, %v1660_v31 }
 0x9d6   :  { %v1672_v27 = vsub.f32 %v1645_v59, %v1667_v26  ;;  %v1676_v29 = vmul.f32 %v1671_v32, %v1671_v32 }
 0x9d8   :  { %v1685_v10 = vsel %vm147_vm1, %v1676_v29, 0.0  ;;  %v1677_v40 = vmul.f32 %v1672_v27, %v1672_v27 }
 0x9d9   :  { %1686 = vadd.xlane.f32.xlu0 %v1685_v10 }
 0x9da   :  { %v1688_v34 = vsel %vm147_vm1, %v1677_v40, 0.0 }
 0x9db   :  { %1689 = vadd.xlane.f32.xlu1 %v1688_v34 }
 0x9f3   :  { %v1663_v25 = vpop.xlane.xlu1 %1662 }
 0x9f4   :  { %v1668_v58 = vmul.f32 0.03125, %v1663_v25 }
 0x9f6   :  { %v1673_v35 = vsub.f32 %v1646_v7, %v1668_v58 }
 0x9f8   :  { %v1678_v50 = vmul.f32 %v1673_v35, %v1673_v35 }
 0x9fa   :  { %v1691_v39 = vsel %vm1339_vm13, %v1678_v50, 0.0 }
 0x9fb   :  { %1692 = vadd.xlane.f32.xlu0 %v1691_v39 }
 0xa52   :  { %v1681_v44 = vpop.xlane.xlu0 %1680 }
 0xa53   :  { %v1694_v54 = vmul.f32 0.03125, %v1681_v44 }
 0xa54   :  { %v1684_v5 = vpop.xlane.xlu1 %1683 }
 0xa55   :  { %v1699_v45 = vadd.f32 1e-05, %v1694_v54  ;;  %v1695_v21 = vmul.f32 0.03125, %v1684_v5 }
 0xa57   :  { %4268 = vrsqrt.f32 %v1699_v45  ;;  %v1700_v3 = vadd.f32 1e-05, %v1695_v21 }
 0xa59   :  { %4270 = vrsqrt.f32 %v1700_v3 }
 0xa61   :  { %v4269_v43 = vpop.eup %4268 }
 0xa62   :  { %v1709_v47 = vmul.f32 %v4269_v43, %v1669_v0 }
 0xa63   :  { %v4271_v48 = vpop.eup %4270 }
 0xa64   :  { %v1720_v9 = vmul.f32 %v3434_v22, %v1709_v47  ;;  %v1710_v42 = vmul.f32 %v4271_v48, %v1670_v20 }
 0xa66   :  { %v1721_v38 = vmul.f32 %v3434_v22, %v1710_v42  ;;  %v1687_v12 = vpop.xlane.xlu0 %1686  ;;  %v5184_v56 = vadd.f32 %v3435_v61, %v1720_v9 }
 0xa67   :  { %v1696_v55 = vmul.f32 0.03125, %v1687_v12 }
 0xa68   :  { %v5186_v16 = vadd.f32 %v3435_v61, %v1721_v38  ;;  %v1690_v30 = vpop.xlane.xlu1 %1689 }
 0xa69   :  { %v1701_v57 = vadd.f32 1e-05, %v1696_v55  ;;  %v1697_v36 = vmul.f32 0.03125, %v1690_v30 }
 0xa6a   :  { %v1736_v19 = vpack.c.bf16 %v5186_v16, %v5184_v56 }
 0xa6b   :  { %4272 = vrsqrt.f32 %v1701_v57  ;;  %v1702_v59 = vadd.f32 1e-05, %v1697_v36 }
 0xa6c   :  { %3907 = vmatmul.mubr.msk.bf16.vlgmr.msra.gmra.mrb[60].mxu0 %vm147_vm1, %v1736_v19 }
 0xa6d   :  { %4274 = vrsqrt.f32 %v1702_v59  ;;  %3910 = vmatprep.mubr.msk.bf16.mxu0 %vm4402_vm0, %v4401_v1 }
 0xa75   :  { %v4273_v52 = vpop.eup %4272 }
 0xa76   :  { %v1711_v49 = vmul.f32 %v4273_v52, %v1671_v32 }
 0xa77   :  { %v4275_v14 = vpop.eup %4274 }
 0xa78   :  { %v1712_v2 = vmul.f32 %v4275_v14, %v1672_v27  ;;  %v1722_v62 = vmul.f32 %v3434_v22, %v1711_v49 }
 0xa7a   :  { %v1723_v6 = vmul.f32 %v3434_v22, %v1712_v2  ;;  %v5193_v7 = vadd.f32 %v3435_v61, %v1722_v62 }
 0xa7c   :  { %v5195_v4 = vadd.f32 %v3435_v61, %v1723_v6 }
 0xa7e   :  { %v1737_v18 = vpack.c.bf16 %v5195_v4, %v5193_v7 }
 0xa80   :  { %3911 = vmatmul.mubr.msk.bf16.gmra.mrb[64].mxu0 %vm147_vm1, %v1737_v18 }
 0xa81   :  { %3914 = vmatprep.mubr.msk.bf16.mxu0 %vm4402_vm0, %v4401_v1 }
 0xa88   :  { %v1693_v63 = vpop.xlane.xlu0 %1692 }
 0xa89   :  { %v1698_v11 = vmul.f32 0.03125, %v1693_v63 }
 0xa8b   :  { %v1703_v46 = vadd.f32 1e-05, %v1698_v11 }
 0xa8d   :  { %4276 = vrsqrt.f32 %v1703_v46 }
 0xa97   :  { %v4277_v0 = vpop.eup %4276 }
 0xa98   :  { %v1713_v23 = vmul.f32 %v4277_v0, %v1673_v35 }
 0xa9a   :  { %v1724_v20 = vmul.f32 %v3434_v22, %v1713_v23 }
 0xa9c   :  { %v5202_v53 = vadd.f32 %v3435_v61, %v1724_v20 }
 0xa9e   :  { %v1738_v51 = vpack.c.bf16 %v5202_v53, %v5202_v53 }
 0xaa0   :  { %3915 = vmatmul.mubr.msk.bf16.gmra.mrb[68].mxu0 %vm147_vm1, %v1738_v51 }
 0xaa1   :  { %3924 = vmatprep.mubr.msk.bf16.mxu0 %vm4402_vm0, %v4401_v1 }
 0xb3f   :  { %v1807_v8 = vpop.f32.mrb[60].mxu0 }
 0xb40   :  { %v3908_v17 = vpop.f32.mrb[61].mxu0  ;;  %v1808_v31 = vadd.f32 %v3441_v15, %v1807_v8 }
 0xb41   :  { %v1810_v24 = vpop.f32.mrb[62].mxu0 }
 0xb42   :  { %v1811_v32 = vadd.f32 %v3441_v15, %v1810_v24  ;;  %v3909_v26 = vpop.f32.mrb[63].mxu0 }
 0xb44   :  { %v5212_v27 = vpack.c.bf16 %v1811_v32, %v1808_v31 }
 0xb46   :  { %1835 = vrot.lane.b32.xlu1 %v5212_v27, %s4403_s19 }
 0xb53   :  { %v1815_v29 = vpop.f32.mrb[64].mxu0 }
 0xb54   :  { %v3912_v10 = vpop.f32.mrb[65].mxu0  ;;  %v1816_v34 = vadd.f32 %v3441_v15, %v1815_v29 }
 0xb55   :  { %v1818_v40 = vpop.f32.mrb[66].mxu0 }
 0xb56   :  { %v1819_v37 = vadd.f32 %v3441_v15, %v1818_v40  ;;  %v3913_v60 = vpop.f32.mrb[67].mxu0 }
 0xb58   :  { %v5216_v25 = vpack.c.bf16 %v1819_v37, %v1816_v34 }
 0xb5a   :  { %1837 = vrot.lane.b32.xlu0 %v5216_v25, %s4403_s19 }
 0xb5e   :  { %2072 = vrot.lane.b32.xlu0 %v5216_v25, %s4404_s20 }
 0xb62   :  { %2064 = vrot.lane.b32.xlu0 %v5212_v27, %s4405_s21 }
 0xb66   :  { %2066 = vrot.lane.b32.xlu0 %v5216_v25, %s4405_s21 }
 0xb73   :  { %v1823_v58 = vpop.f32.mrb[68].mxu0 }
 0xb74   :  { %v1824_v35 = vadd.f32 %v3441_v15, %v1823_v58  ;;  %v3916_v50 = vpop.f32.mrb[69].mxu0 }
 0xb75   :  { %v1826_v39 = vpop.f32.mrb[70].mxu0 }
 0xb76   :  { %v5226_v44 = vpack.c.bf16 %v1824_v35, %v1824_v35  ;;  %v3917_v54 = vpop.f32.mrb[71].mxu0 }
 0xb78   :  { %2068 = vrot.lane.b32.xlu0 %v5226_v44, %s4405_s21  ;;  %1839 = vrot.lane.b32.xlu1 %v5226_v44, %s4403_s19  ;;  %s5876_s19 = smov 48   ;;  %s5878_s21 = smov 8  }
 0xb7c   :  { %2319 = vrot.lane.b32.xlu0 %v5212_v27, %s4407_s23  ;;  %2070 = vrot.lane.b32.xlu1 %v5212_v27, %s4404_s20 }
 0xb80   :  { %2321 = vrot.lane.b32.xlu0 %v5216_v25, %s4407_s23  ;;  %2074 = vrot.lane.b32.xlu1 %v5226_v44, %s4404_s20  ;;  %s5877_s20 = smov 40  }
 0xb84   :  { %2323 = vrot.lane.b32.xlu0 %v5226_v44, %s4407_s23  ;;  %2325 = vrot.lane.b32.xlu1 %v5212_v27, %s4406_s22 }
 0xb88   :  { %2574 = vrot.lane.b32.xlu0 %v5212_v27, %s4409_s25  ;;  %2327 = vrot.lane.b32.xlu1 %v5216_v25, %s4406_s22 }
 0xb8c   :  { %1985 = vrot.lane.b32.xlu0 %v5216_v25, %s4410_s26  ;;  %2329 = vrot.lane.b32.xlu1 %v5226_v44, %s4406_s22 }
 0xb90   :  { %2218 = vrot.lane.b32.xlu0 %v5212_v27, %s4411_s27  ;;  %2580 = vrot.lane.b32.xlu1 %v5212_v27, %s5875_s2 }
 0xb94   :  { %2582 = vrot.lane.b32.xlu1 %v5216_v25, %s5875_s2 }
 0xb98   :  { %2584 = vrot.lane.b32.xlu1 %v5226_v44, %s5875_s2 }
 0xb9c   :  { %2576 = vrot.lane.b32.xlu1 %v5216_v25, %s4409_s25 }
 0xba0   :  { %1983 = vrot.lane.b32.xlu1 %v5212_v27, %s4410_s26 }
 0xba4   :  { %1987 = vrot.lane.b32.xlu1 %v5226_v44, %s4410_s26 }
 0xbb8   :  { %v1836_v5 = vpop.permute.xlu1 %1835 }
 0xbb9   :  { %v1851_v45 = vsel %vm225_vm2, %v1836_v5, 0 }
 0xbba   :  { %3919 = vmatpush3.bf16.xpose.msra.mxu0 %v1851_v45 }
 0xbbb   :  { %3920 = vmatprep.subr.bf16.mxu0 %v4401_v1 }
 0xbcc   :  { %v1838_v21 = vpop.permute.xlu0 %1837 }
 0xbcd   :  { %v1854_v3 = vsel %vm225_vm2, %v1838_v21, 0 }
 0xbce   :  { %3921 = vmatpush3.bf16.xpose.msra.mxu0 %v1854_v3 }
 0xbcf   :  { %3922 = vmatprep.subr.bf16.mxu0 %v4401_v1 }
 0xbd0   :  { %v2073_v43 = vpop.permute.xlu0 %2072 }
 0xbd1   :  { %v2089_v57 = vsel %vm225_vm2, %v2073_v43, 0 }
 0xbd4   :  { %v2065_v48 = vpop.permute.xlu0 %2064 }
 0xbd8   :  { %v2067_v38 = vpop.permute.xlu0 %2066 }
 0xbea   :  { %v1840_v22 = vpop.permute.xlu1 %1839  ;;  %v2069_v55 = vpop.permute.xlu0 %2068 }
 0xbeb   :  { %v1857_v47 = vsel %vm225_vm2, %v1840_v22, 0 }
 0xbec   :  { %3923 = vmatpush3.bf16.xpose.msra.mxu0 %v1857_v47 }
 0xbed   :  { %3954 = vmatprep.subr.bf16.mxu0 %v4401_v1 }
 0xbee   :  { %v2071_v9 = vpop.permute.xlu1 %2070  ;;  %v2320_v36 = vpop.permute.xlu0 %2319 }
 0xbef   :  { %v2086_v61 = vsel %vm225_vm2, %v2071_v9, 0 }
 0xbf2   :  { %v2075_v42 = vpop.permute.xlu1 %2074  ;;  %v2322_v49 = vpop.permute.xlu0 %2321 }
 0xbf3   :  { %3925 = vmatmul.mubr.msk.bf16.vlgmr.msra.gmra.mrb[72].mxu0 %vm225_vm2, %v5212_v27  ;;  %v2092_v52 = vsel %vm225_vm2, %v2075_v42, 0 }
 0xbf4   :  { %3955 = vmatpush3.bf16.xpose.msra.mxu0 %v2086_v61  ;;  %3928 = vmatprep.mubr.msk.bf16.mxu0 %vm4402_vm0, %v4401_v1 }
 0xbf5   :  { %3956 = vmatprep.subr.bf16.mxu0 %v4401_v1 }
 0xbf6   :  { %v2326_v12 = vpop.permute.xlu1 %2325  ;;  %v2324_v2 = vpop.permute.xlu0 %2323 }
 0xbf7   :  { %v2341_v6 = vsel %vm225_vm2, %v2326_v12, 0 }
 0xbfa   :  { %v2328_v30 = vpop.permute.xlu1 %2327  ;;  %v2575_v63 = vpop.permute.xlu0 %2574 }
 0xbfb   :  { %3929 = vmatmul.mubr.msk.bf16.gmra.mrb[76].mxu0 %vm225_vm2, %v5216_v25  ;;  %v2344_v46 = vsel %vm225_vm2, %v2328_v30, 0 }
 0xbfc   :  { %3957 = vmatpush3.bf16.xpose.msra.mxu0 %v2089_v57  ;;  %3932 = vmatprep.mubr.msk.bf16.mxu0 %vm4402_vm0, %v4401_v1 }
 0xbfd   :  { %3958 = vmatprep.subr.bf16.mxu0 %v4401_v1 }
 0xbfe   :  { %v2330_v19 = vpop.permute.xlu1 %2329  ;;  %v1986_v0 = vpop.permute.xlu0 %1985 }
 0xbff   :  { %v2347_v51 = vsel %vm225_vm2, %v2330_v19, 0 }
 0xc02   :  { %v2581_v59 = vpop.permute.xlu1 %2580 }
 0xc03   :  { %3933 = vmatmul.mubr.msk.bf16.gmra.mrb[80].mxu0 %vm225_vm2, %v5226_v44  ;;  %v2596_v15 = vsel %vm225_vm2, %v2581_v59, 0 }
 0xc04   :  { %3959 = vmatpush3.bf16.xpose.msra.mxu0 %v2092_v52  ;;  %3960 = vmatprep.mubr.msk.bf16.mxu0 %vm4402_vm0, %v4401_v1 }
 0xc05   :  { %3990 = vmatprep.subr.bf16.mxu0 %v4401_v1 }
 0xc06   :  { %v2583_v14 = vpop.permute.xlu1 %2582 }
 0xc07   :  { %v2599_v8 = vsel %vm225_vm2, %v2583_v14, 0 }
 0xc0a   :  { %v2585_v62 = vpop.permute.xlu1 %2584 }
 0xc0b   :  { %3961 = vmatmul.mubr.msk.bf16.vlgmr.msra.gmra.mrb[84].mxu0 %vm225_vm2, %v2065_v48  ;;  %v2602_v17 = vsel %vm225_vm2, %v2585_v62, 0 }
 0xc0c   :  { %3991 = vmatpush3.bf16.xpose.msra.mxu0 %v2341_v6  ;;  %3964 = vmatprep.mubr.msk.bf16.mxu0 %vm4402_vm0, %v4401_v1 }
 0xc0d   :  { %3992 = vmatprep.subr.bf16.mxu0 %v4401_v1 }
 0xc0e   :  { %v2577_v18 = vpop.permute.xlu1 %2576 }
 0xc12   :  { %v1984_v11 = vpop.permute.xlu1 %1983 }
 0xc13   :  { %3937 = vmatpush3.bf16.msra.mxu1 %v1984_v11  ;;  %3965 = vmatmul.mubr.msk.bf16.gmra.mrb[88].mxu0 %vm225_vm2, %v2067_v38 }
 0xc14   :  { %3993 = vmatpush3.bf16.xpose.msra.mxu0 %v2344_v46  ;;  %3938 = vmatprep.subr.bf16.mxu1 %v4401_v1 }
 0xc15   :  { %3968 = vmatprep.mubr.msk.bf16.mxu0 %vm4402_vm0, %v4401_v1  ;;  %3994 = vmatprep.subr.bf16.mxu0 %v4401_v1 }
 0xc16   :  { %v1988_v23 = vpop.permute.xlu1 %1987 }
 0xc17   :  { %3939 = vmatpush3.bf16.msra.mxu1 %v1986_v0  ;;  %v2001_v20 = vsel %vm387_vm3, %v1988_v23, 0 }
 0xc18   :  { %3940 = vmatprep.subr.bf16.mxu1 %v4401_v1 }
 0xc1b   :  { %3941 = vmatpush3.bf16.msra.mxu1 %v2001_v20  ;;  %3969 = vmatmul.mubr.msk.bf16.gmra.mrb[92].mxu0 %vm225_vm2, %v2069_v55 }
 0xc1c   :  { %3995 = vmatpush3.bf16.xpose.msra.mxu0 %v2347_v51  ;;  %3996 = vmatprep.mubr.msk.bf16.mxu0 %vm4402_vm0, %v4401_v1 }
 0xc1d   :  { %4026 = vmatprep.subr.bf16.mxu0 %v4401_v1  ;;  %3972 = vmatprep.subr.bf16.mxu1 %v4401_v1 }
 0xc23   :  { %3997 = vmatmul.mubr.msk.bf16.vlgmr.msra.gmra.mrb[96].mxu0 %vm225_vm2, %v2320_v36 }
 0xc24   :  { %4027 = vmatpush3.bf16.xpose.msra.mxu0 %v2596_v15  ;;  %4000 = vmatprep.mubr.msk.bf16.mxu0 %vm4402_vm0, %v4401_v1 }
 0xc25   :  { %4028 = vmatprep.subr.bf16.mxu0 %v4401_v1 }
 0xc2b   :  { %4001 = vmatmul.mubr.msk.bf16.gmra.mrb[100].mxu0 %vm225_vm2, %v2322_v49 }
 0xc2c   :  { %4029 = vmatpush3.bf16.xpose.msra.mxu0 %v2599_v8  ;;  %4004 = vmatprep.mubr.msk.bf16.mxu0 %vm4402_vm0, %v4401_v1 }
 0xc2d   :  { %4030 = vmatprep.subr.bf16.mxu0 %v4401_v1 }
 0xc33   :  { %4005 = vmatmul.mubr.msk.bf16.gmra.mrb[104].mxu0 %vm225_vm2, %v2324_v2 }
 0xc34   :  { %4031 = vmatpush3.bf16.xpose.msra.mxu0 %v2602_v17  ;;  %4032 = vmatprep.mubr.msk.bf16.mxu0 %vm4402_vm0, %v4401_v1 }
 0xc35   :  { %4062 = vmatprep.subr.bf16.mxu0 %v4401_v1 }
 0xc3b   :  { %4033 = vmatmul.mubr.msk.bf16.vlgmr.msra.gmra.mrb[108].mxu0 %vm225_vm2, %v2575_v63 }
 0xc3c   :  { %4036 = vmatprep.mubr.msk.bf16.mxu0 %vm4402_vm0, %v4401_v1 }
 0xc43   :  { %4037 = vmatmul.mubr.msk.bf16.gmra.mrb[112].mxu0 %vm225_vm2, %v2577_v18 }
 0xc44   :  { %4040 = vmatprep.mubr.msk.bf16.mxu0 %vm4402_vm0, %v4401_v1 }
 0xcc6   :  { %v1893_v24 = vpop.f32.mrb[72].mxu0 }
 0xcc7   :  { %v1915_v31 = vmul.f32 0.35355338, %v1893_v24  ;;  %v3926_v32 = vpop.f32.mrb[73].mxu0 }
 0xcc8   :  { %v1896_v26 = vpop.f32.mrb[74].mxu0 }
 0xcc9   :  { %v5331_v29 = vadd.f32 %v1915_v31, %v4667_v13  ;;  %v1916_v10 = vmul.f32 0.35355338, %v1896_v26  ;;  %v3927_v40 = vpop.f32.mrb[75].mxu0 }
 0xccb   :  { %v5334_v34 = vadd.f32 %v1916_v10, %v4667_v13  ;;  %v1925_v37 = vsel %vm310_vm11, %v5331_v29, -inf }
 0xccc   :  { %1926 = vmax.xlane.f32.xlu0 %v1925_v37 }
 0xccd   :  { %v1928_v60 = vsel %vm310_vm11, %v5334_v34, -inf }
 0xcce   :  { %1929 = vmax.xlane.f32.xlu1 %v1928_v60  ;;  %v1901_v58 = vpop.f32.mrb[76].mxu0 }
 0xccf   :  { %v1917_v35 = vmul.f32 0.35355338, %v1901_v58  ;;  %v3930_v50 = vpop.f32.mrb[77].mxu0 }
 0xcd0   :  { %v1904_v39 = vpop.f32.mrb[78].mxu0 }
 0xcd1   :  { %v5341_v54 = vadd.f32 %v1917_v35, %v4687_v28  ;;  %v1918_v5 = vmul.f32 0.35355338, %v1904_v39  ;;  %v3931_v45 = vpop.f32.mrb[79].mxu0 }
 0xcd3   :  { %v5344_v21 = vadd.f32 %v1918_v5, %v4691_v33  ;;  %v1931_v3 = vsel %vm310_vm11, %v5341_v54, -inf }
 0xcd4   :  { %1932 = vmax.xlane.f32.xlu0 %v1931_v3 }
 0xcd5   :  { %v1934_v47 = vsel %vm310_vm11, %v5344_v21, -inf }
 0xcd6   :  { %v1909_v43 = vpop.f32.mrb[80].mxu0 }
 0xcd7   :  { %v3934_v22 = vpop.f32.mrb[81].mxu0  ;;  %v1919_v17 = vmul.f32 0.35355338, %v1909_v43 }
 0xcd8   :  { %1935 = vmax.xlane.f32.xlu0 %v1934_v47  ;;  %v1912_v48 = vpop.f32.mrb[82].mxu0 }
 0xcd9   :  { %v3935_v9 = vpop.f32.mrb[83].mxu0  ;;  %v5373_v32 = vadd.f32 %v1919_v17, %v4705_v41 }
 0xcdb   :  { %v1937_v39 = vsel %vm323_vm4, %v5373_v32, -inf }
 0xcde   :  { %v2128_v42 = vpop.f32.mrb[84].mxu0 }
 0xcdf   :  { %v2150_v61 = vmul.f32 0.35355338, %v2128_v42  ;;  %2220 = vrot.lane.b32.xlu1 %v5216_v25, %s4411_s27  ;;  %v3962_v38 = vpop.f32.mrb[85].mxu0 }
 0xce0   :  { %v2131_v12 = vpop.f32.mrb[86].mxu0 }
 0xce1   :  { %v5353_v55 = vadd.f32 %v2150_v61, %v4667_v13  ;;  %v3963_v30 = vpop.f32.mrb[87].mxu0  ;;  %v2151_v26 = vmul.f32 0.35355338, %v2131_v12 }
 0xce3   :  { %v2160_v57 = vsel %vm310_vm11, %v5353_v55, -inf  ;;  %v5376_v35 = vadd.f32 %v2151_v26, %v4667_v13 }
 0xce4   :  { %2161 = vmax.xlane.f32.xlu0 %v2160_v57 }
 0xce5   :  { %v2163_v47 = vsel %vm310_vm11, %v5376_v35, -inf }
 0xce6   :  { %v2136_v36 = vpop.f32.mrb[88].mxu0 }
 0xce7   :  { %v2152_v19 = vmul.f32 0.35355338, %v2136_v36  ;;  %v3966_v59 = vpop.f32.mrb[89].mxu0 }
 0xce8   :  { %v2139_v52 = vpop.f32.mrb[90].mxu0 }
 0xce9   :  { %v5358_v49 = vadd.f32 %v2152_v19, %v4687_v28  ;;  %v3967_v14 = vpop.f32.mrb[91].mxu0  ;;  %v2153_v50 = vmul.f32 0.35355338, %v2139_v52 }
 0xceb   :  { %v2166_v2 = vsel %vm310_vm11, %v5358_v49, -inf  ;;  %v5386_v3 = vadd.f32 %v2153_v50, %v4691_v33 }
 0xcec   :  { %2167 = vmax.xlane.f32.xlu0 %v2166_v2 }
 0xced   :  { %v2169_v12 = vsel %vm310_vm11, %v5386_v3, -inf }
 0xcee   :  { %v2144_v62 = vpop.f32.mrb[92].mxu0 }
 0xcef   :  { %v2154_v6 = vmul.f32 0.35355338, %v2144_v62  ;;  %v3970_v18 = vpop.f32.mrb[93].mxu0 }
 0xcf0   :  { %v2147_v63 = vpop.f32.mrb[94].mxu0 }
 0xcf1   :  { %v5363_v11 = vadd.f32 %v2154_v6, %v4705_v41  ;;  %v3971_v46 = vpop.f32.mrb[95].mxu0 }
 0xcf3   :  { %v2172_v0 = vsel %vm323_vm4, %v5363_v11, -inf }
 0xcf4   :  { %2173 = vmax.xlane.f32.xlu0 %v2172_v0 }
 0xcf6   :  { %v2383_v23 = vpop.f32.mrb[96].mxu0 }
 0xcf7   :  { %v3998_v20 = vpop.f32.mrb[97].mxu0  ;;  %v2405_v43 = vmul.f32 0.35355338, %v2383_v23 }
 0xcf8   :  { %v2386_v51 = vpop.f32.mrb[98].mxu0 }
 0xcf9   :  { %v2406_v15 = vmul.f32 0.35355338, %v2386_v51  ;;  %v3999_v8 = vpop.f32.mrb[99].mxu0  ;;  %v5391_v61 = vadd.f32 %v2405_v43, %v4667_v13 }
 0xcfb   :  { %v5368_v24 = vadd.f32 %v2406_v15, %v4667_v13  ;;  %v2415_v19 = vsel %vm310_vm11, %v5391_v61, -inf }
 0xcfd   :  { %v2418_v31 = vsel %vm310_vm11, %v5368_v24, -inf }
 0xcfe   :  { %2419 = vmax.xlane.f32.xlu0 %v2418_v31  ;;  %v2391_v10 = vpop.f32.mrb[100].mxu0 }
 0xcff   :  { %v4002_v40 = vpop.f32.mrb[101].mxu0  ;;  %v2407_v38 = vmul.f32 0.35355338, %v2391_v10 }
 0xd00   :  { %v2394_v37 = vpop.f32.mrb[102].mxu0 }
 0xd01   :  { %v2408_v60 = vmul.f32 0.35355338, %v2394_v37  ;;  %v4003_v58 = vpop.f32.mrb[103].mxu0  ;;  %v5396_v30 = vadd.f32 %v2407_v38, %v4687_v28 }
 0xd03   :  { %v5381_v5 = vadd.f32 %v2408_v60, %v4691_v33  ;;  %1938 = vmax.xlane.f32.xlu1 %v1937_v39  ;;  %v2421_v63 = vsel %vm310_vm11, %v5396_v30, -inf  ;;  %v5427_v60 = vpop.permute.xlu0 %2218 }
 0xd05   :  { %v2424_v45 = vsel %vm310_vm11, %v5381_v5, -inf }
 0xd06   :  { %2425 = vmax.xlane.f32.xlu0 %v2424_v45  ;;  %v2399_v22 = vpop.f32.mrb[104].mxu0 }
 0xd07   :  { %2164 = vmax.xlane.f32.xlu1 %v2163_v47  ;;  %v4006_v48 = vpop.f32.mrb[105].mxu0  ;;  %v2409_v57 = vmul.f32 0.35355338, %v2399_v22 }
 0xd08   :  { %v2402_v9 = vpop.f32.mrb[106].mxu0 }
 0xd09   :  { %v4007_v42 = vpop.f32.mrb[107].mxu0  ;;  %v5404_v6 = vadd.f32 %v2409_v57, %v4705_v41 }
 0xd0b   :  { %2170 = vmax.xlane.f32.xlu1 %v2169_v12  ;;  %v2427_v20 = vsel %vm323_vm4, %v5404_v6, -inf }
 0xd0e   :  { %v2638_v36 = vpop.f32.mrb[108].mxu0 }
 0xd0f   :  { %v2660_v59 = vmul.f32 0.35355338, %v2638_v36  ;;  %2416 = vmax.xlane.f32.xlu1 %v2415_v19  ;;  %v4034_v52 = vpop.f32.mrb[109].mxu0 }
 0xd10   :  { %v2641_v14 = vpop.f32.mrb[110].mxu0 }
 0xd11   :  { %v5401_v2 = vadd.f32 %v2660_v59, %v4667_v13  ;;  %v4035_v62 = vpop.f32.mrb[111].mxu0  ;;  %v2661_v18 = vmul.f32 0.35355338, %v2641_v14 }
 0xd13   :  { %2422 = vmax.xlane.f32.xlu1 %v2421_v63  ;;  %v2670_v46 = vsel %vm310_vm11, %v5401_v2, -inf  ;;  %v5411_v0 = vadd.f32 %v2661_v18, %v4667_v13 }
 0xd14   :  { %2671 = vmax.xlane.f32.xlu0 %v2670_v46 }
 0xd15   :  { %v2673_v10 = vsel %vm310_vm11, %v5411_v0, -inf }
 0xd16   :  { %v2646_v23 = vpop.f32.mrb[112].mxu0 }
 0xd17   :  { %v2662_v51 = vmul.f32 0.35355338, %v2646_v23  ;;  %2428 = vmax.xlane.f32.xlu1 %v2427_v20  ;;  %v4038_v15 = vpop.f32.mrb[113].mxu0 }
 0xd18   :  { %v2649_v8 = vpop.f32.mrb[114].mxu0 }
 0xd19   :  { %v5416_v17 = vadd.f32 %v2662_v51, %v4687_v28  ;;  %v2663_v31 = vmul.f32 0.35355338, %v2649_v8  ;;  %v4039_v26 = vpop.f32.mrb[115].mxu0 }
 0xd1b   :  { %v5421_v40 = vadd.f32 %v2663_v31, %v4691_v33  ;;  %2674 = vmax.xlane.f32.xlu1 %v2673_v10  ;;  %v2676_v13 = vsel %vm310_vm11, %v5416_v17, -inf }
 0xd1c   :  { %2677 = vmax.xlane.f32.xlu0 %v2676_v13 }
 0xd1d   :  { %v2679_v37 = vsel %vm310_vm11, %v5421_v40, -inf }
 0xd1f   :  { %2680 = vmax.xlane.f32.xlu1 %v2679_v37 }
 0xd59   :  { %v1927_v28 = vpop.xlane.xlu0 %1926 }
 0xd5a   :  { %v1940_v58 = vsub.f32 %v5331_v29, %v1927_v28 }
 0xd5b   :  { %v1930_v50 = vpop.xlane.xlu1 %1929 }
 0xd5c   :  { %v1945_v39 = vmul.f32 1.442695, %v1940_v58  ;;  %v1941_v45 = vsub.f32 %v5334_v34, %v1930_v50 }
 0xd5e   :  { %4278 = vpow2.f32 %v1945_v39  ;;  %v1947_v33 = vmul.f32 1.442695, %v1941_v45 }
 0xd5f   :  { %v5453_v19 = vpop.permute.xlu1 %2220 }
 0xd60   :  { %4280 = vpow2.f32 %v1947_v33 }
 0xd61   :  { %v1933_v43 = vpop.xlane.xlu0 %1932 }
 0xd62   :  { %v1942_v22 = vsub.f32 %v5341_v54, %v1933_v43 }
 0xd64   :  { %v1949_v47 = vmul.f32 1.442695, %v1942_v22 }
 0xd65   :  { %v1936_v48 = vpop.xlane.xlu0 %1935 }
 0xd66   :  { %4282 = vpow2.f32 %v1949_v47  ;;  %v1943_v9 = vsub.f32 %v5344_v21, %v1936_v48 }
 0xd68   :  { %v5433_v42 = vpop.eup %4278  ;;  %v1951_v38 = vmul.f32 1.442695, %v1943_v9 }
 0xd69   :  { %v1955_v29 = vsel %vm310_vm11, %v5433_v42, 0.0 }
 0xd6a   :  { %v5437_v12 = vpop.eup %4280  ;;  %4284 = vpow2.f32 %v1951_v38  ;;  %1956 = vadd.xlane.f32.xlu0 %v1955_v29 }
 0xd6b   :  { %v1958_v34 = vsel %vm310_vm11, %v5437_v12, 0.0 }
 0xd6c   :  { %1959 = vadd.xlane.f32.xlu1 %v1958_v34 }
 0xd70   :  { %v5441_v54 = vpop.eup %4282 }
 0xd71   :  { %v1961_v57 = vsel %vm310_vm11, %v5441_v54, 0.0  ;;  %v2162_v52 = vpop.xlane.xlu0 %2161 }
 0xd72   :  { %1962 = vadd.xlane.f32.xlu0 %v1961_v57  ;;  %v2175_v14 = vsub.f32 %v5353_v55, %v2162_v52 }
 0xd74   :  { %v5445_v21 = vpop.eup %4284  ;;  %v2180_v63 = vmul.f32 1.442695, %v2175_v14 }
 0xd75   :  { %v1964_v36 = vsel %vm310_vm11, %v5445_v21, 0.0 }
 0xd76   :  { %1965 = vadd.xlane.f32.xlu1 %v1964_v36  ;;  %4286 = vpow2.f32 %v2180_v63 }
 0xd79   :  { %v2168_v51 = vpop.xlane.xlu0 %2167 }
 0xd7a   :  { %v2177_v31 = vsub.f32 %v5358_v49, %v2168_v51 }
 0xd80   :  { %v5465_v39 = vpop.eup %4286 }
 0xd81   :  { %v2174_v37 = vpop.xlane.xlu0 %2173  ;;  %v2190_v47 = vsel %vm310_vm11, %v5465_v39, 0.0 }
 0xd87   :  { %2222 = vrot.lane.b32.xlu1 %v5226_v44, %s4411_s27 }
 0xd88   :  { %2473 = vrot.lane.b32.xlu0 %v5212_v27, %s5876_s19 }
 0xd8b   :  { %v2420_v49 = vpop.xlane.xlu0 %2419 }
 0xd8c   :  { %2475 = vrot.lane.b32.xlu0 %v5216_v25, %s5876_s19  ;;  %v2431_v43 = vsub.f32 %v5368_v24, %v2420_v49 }
 0xd8e   :  { %v2437_v38 = vmul.f32 1.442695, %v2431_v43 }
 0xd90   :  { %v1939_v59 = vpop.xlane.xlu1 %1938 }
 0xd91   :  { %v1944_v18 = vsub.f32 %v5373_v32, %v1939_v59  ;;  %v2184_v32 = vmul.f32 1.442695, %v2177_v31 }
 0xd93   :  { %v1953_v20 = vmul.f32 1.442695, %v1944_v18  ;;  %v2426_v29 = vpop.xlane.xlu0 %2425 }
 0xd94   :  { %v2165_v62 = vpop.xlane.xlu1 %2164  ;;  %v2433_v36 = vsub.f32 %v5381_v5, %v2426_v29 }
 0xd95   :  { %v2176_v46 = vsub.f32 %v5376_v35, %v2165_v62  ;;  %4288 = vpow2.f32 %v1953_v20  ;;  %v2179_v35 = vsub.f32 %v5363_v11, %v2174_v37 }
 0xd96   :  { %v2441_v63 = vmul.f32 1.442695, %v2433_v36 }
 0xd97   :  { %v2182_v15 = vmul.f32 1.442695, %v2176_v46  ;;  %v2188_v33 = vmul.f32 1.442695, %v2179_v35 }
 0xd98   :  { %v2171_v23 = vpop.xlane.xlu1 %2170 }
 0xd99   :  { %4290 = vpow2.f32 %v2182_v15  ;;  %v2178_v55 = vsub.f32 %v5386_v3, %v2171_v23 }
 0xd9b   :  { %v2186_v28 = vmul.f32 1.442695, %v2178_v55 }
 0xd9c   :  { %v2417_v8 = vpop.xlane.xlu1 %2416 }
 0xd9d   :  { %v2430_v26 = vsub.f32 %v5391_v61, %v2417_v8 }
 0xd9f   :  { %v2435_v10 = vmul.f32 1.442695, %v2430_v26  ;;  %v5467_v45 = vpop.eup %4288 }
 0xda0   :  { %v2423_v13 = vpop.xlane.xlu1 %2422 }
 0xda1   :  { %4292 = vpow2.f32 %v2435_v10  ;;  %v2432_v24 = vsub.f32 %v5396_v30, %v2423_v13  ;;  %v2672_v14 = vpop.xlane.xlu0 %2671 }
 0xda2   :  { %4294 = vpow2.f32 %v2184_v32  ;;  %v2685_v46 = vsub.f32 %v5401_v2, %v2672_v14 }
 0xda3   :  { %4296 = vpow2.f32 %v2186_v28  ;;  %v5471_v11 = vpop.eup %4290  ;;  %v2439_v59 = vmul.f32 1.442695, %v2432_v24 }
 0xda4   :  { %v2429_v58 = vpop.xlane.xlu1 %2428  ;;  %v2690_v15 = vmul.f32 1.442695, %v2685_v46 }
 0xda5   :  { %v2434_v50 = vsub.f32 %v5404_v6, %v2429_v58  ;;  %v1967_v6 = vsel %vm323_vm4, %v5467_v45, 0.0 }
 0xda7   :  { %v2443_v61 = vmul.f32 1.442695, %v2434_v50 }
 0xda8   :  { %v2675_v3 = vpop.xlane.xlu1 %2674 }
 0xda9   :  { %4298 = vpow2.f32 %v2443_v61  ;;  %v2686_v22 = vsub.f32 %v5411_v0, %v2675_v3  ;;  %v2193_v0 = vsel %vm310_vm11, %v5471_v11, 0.0  ;;  %v2678_v35 = vpop.xlane.xlu0 %2677 }
 0xdaa   :  { %4300 = vpow2.f32 %v2188_v33  ;;  %v2687_v28 = vsub.f32 %v5416_v17, %v2678_v35 }
 0xdab   :  { %v5477_v48 = vpop.eup %4292  ;;  %v2692_v9 = vmul.f32 1.442695, %v2686_v22  ;;  %2191 = vadd.xlane.f32.xlu1 %v2190_v47  ;;  %1968 = vadd.xlane.f32.xlu0 %v1967_v6 }
 0xdac   :  { %v2445_v34 = vsel %vm310_vm11, %v5477_v48, 0.0  ;;  %v5484_v57 = vpop.eup %4294  ;;  %v2694_v58 = vmul.f32 1.442695, %v2687_v28  ;;  %v2681_v49 = vpop.xlane.xlu1 %2680 }
 0xdad   :  { %4302 = vpow2.f32 %v2692_v9  ;;  %v5487_v52 = vpop.eup %4296  ;;  %v2196_v30 = vsel %vm310_vm11, %v5484_v57, 0.0  ;;  %v2688_v33 = vsub.f32 %v5421_v40, %v2681_v49 }
 0xdae   :  { %4304 = vpow2.f32 %v2437_v38  ;;  %v2199_v5 = vsel %vm310_vm11, %v5487_v52, 0.0 }
 0xdaf   :  { %2194 = vadd.xlane.f32.xlu0 %v2193_v0  ;;  %2446 = vadd.xlane.f32.xlu1 %v2445_v34  ;;  %4306 = vpow2.f32 %v2439_v59  ;;  %v2696_v3 = vmul.f32 1.442695, %v2688_v33 }
 0xdb0   :  { %4308 = vpow2.f32 %v2441_v63 }
 0xdb1   :  { %4310 = vpow2.f32 %v2690_v15 }
 0xdb2   :  { %4312 = vpow2.f32 %v2694_v58 }
 0xdb3   :  { %v5491_v62 = vpop.eup %4298  ;;  %2197 = vadd.xlane.f32.xlu0 %v2196_v30  ;;  %4314 = vpow2.f32 %v2696_v3 }
 0xdb4   :  { %v2457_v18 = vsel %vm323_vm4, %v5491_v62, 0.0  ;;  %v5496_v23 = vpop.eup %4300 }
 0xdb5   :  { %2458 = vadd.xlane.f32.xlu1 %v2457_v18  ;;  %v2202_v8 = vsel %vm323_vm4, %v5496_v23, 0.0 }
 0xdb7   :  { %v5500_v20 = vpop.eup %4302  ;;  %2200 = vadd.xlane.f32.xlu0 %v2199_v5 }
 0xdb8   :  { %v2703_v51 = vsel %vm310_vm11, %v5500_v20, 0.0  ;;  %v5506_v31 = vpop.eup %4304 }
 0xdb9   :  { %2704 = vadd.xlane.f32.xlu1 %v2703_v51  ;;  %v2448_v2 = vsel %vm310_vm11, %v5506_v31, 0.0  ;;  %v5510_v26 = vpop.eup %4306 }
 0xdba   :  { %v2451_v10 = vsel %vm310_vm11, %v5510_v26, 0.0  ;;  %v5514_v55 = vpop.eup %4308 }
 0xdbb   :  { %2203 = vadd.xlane.f32.xlu0 %v2202_v8  ;;  %v2454_v13 = vsel %vm310_vm11, %v5514_v55, 0.0  ;;  %v5518_v32 = vpop.eup %4310 }
 0xdbc   :  { %v2700_v37 = vsel %vm310_vm11, %v5518_v32, 0.0  ;;  %v5529_v50 = vpop.eup %4312 }
 0xdbd   :  { %v2706_v61 = vsel %vm310_vm11, %v5529_v50, 0.0 }
 0xdbf   :  { %2449 = vadd.xlane.f32.xlu0 %v2448_v2 }
 0xdc3   :  { %2452 = vadd.xlane.f32.xlu0 %v2451_v10 }
 0xdc7   :  { %2455 = vadd.xlane.f32.xlu0 %v2454_v13 }
 0xdca   :  { %2477 = vrot.lane.b32.xlu1 %v5226_v44, %s5876_s19  ;;  %s4418_s19 = smov [#allocation3]  }
 0xdcb   :  { %2701 = vadd.xlane.f32.xlu0 %v2700_v37 }
 0xde1   :  { %2728 = vrot.lane.b32.xlu0 %v5212_v27, %s5877_s20  ;;  %v5534_v27 = vpop.eup %4314 }
 0xde2   :  { %v2709_v6 = vsel %vm310_vm11, %v5534_v27, 0.0 }
 0xde5   :  { %2730 = vrot.lane.b32.xlu0 %v5216_v25, %s5877_s20 }
 0xdee   :  { %2707 = vadd.xlane.f32.xlu1 %v2706_v61 }
 0xdf7   :  { %v1957_v17 = vpop.xlane.xlu0 %1956 }
 0xdf8   :  { %4316 = vrcp.f32 %v1957_v17 }
 0xdf9   :  { %v1960_v43 = vpop.xlane.xlu1 %1959 }
 0xdfa   :  { %4318 = vrcp.f32 %v1960_v43 }
 0xdff   :  { %v1963_v22 = vpop.xlane.xlu0 %1962 }
 0xe00   :  { %4320 = vrcp.f32 %v1963_v22 }
 0xe02   :  { %v4317_v47 = vpop.eup %4316 }
 0xe03   :  { %v1966_v25 = vpop.xlane.xlu1 %1965  ;;  %v1975_v40 = vmul.f32 %v4317_v47, %v5433_v42 }
 0xe04   :  { %v4319_v9 = vpop.eup %4318  ;;  %4322 = vrcp.f32 %v1966_v25  ;;  %2710 = vadd.xlane.f32.xlu0 %v2709_v6 }
 0xe05   :  { %v1976_v38 = vmul.f32 %v4319_v9, %v5437_v12 }
 0xe07   :  { %v1980_v24 = vpack.c.bf16 %v1976_v38, %v1975_v40  ;;  %v2223_v34 = vpop.permute.xlu1 %2222 }
 0xe08   :  { %v2236_v36 = vsel %vm387_vm3, %v2223_v34, 0 }
 0xe09   :  { %3943 = vmatmul.mubr.msk.bf16.vlgmr.msra.gmra.mrb[84].mxu1 %vm310_vm11, %v1980_v24 }
 0xe0a   :  { %3973 = vmatpush3.bf16.msra.mxu1 %v5427_v60  ;;  %3946 = vmatprep.mubr.msk.bf16.mxu1 %vm4402_vm0, %v4401_v1  ;;  %v4321_v29 = vpop.eup %4320  ;;  %v2474_v60 = vpop.permute.xlu0 %2473 }
 0xe0b   :  { %3974 = vmatprep.subr.bf16.mxu1 %v4401_v1  ;;  %v1977_v42 = vmul.f32 %v4321_v29, %v5441_v54 }
 0xe0e   :  { %v4323_v0 = vpop.eup %4322  ;;  %3975 = vmatpush3.bf16.msra.mxu1 %v5453_v19  ;;  %v2476_v54 = vpop.permute.xlu0 %2475 }
 0xe0f   :  { %3976 = vmatprep.subr.bf16.mxu1 %v4401_v1  ;;  %v1978_v12 = vmul.f32 %v4323_v0, %v5445_v21 }
 0xe11   :  { %v1981_v59 = vpack.c.bf16 %v1978_v12, %v1977_v42 }
 0xe12   :  { %3977 = vmatpush3.bf16.msra.mxu1 %v2236_v36 }
 0xe13   :  { %3947 = vmatmul.mubr.msk.bf16.gmra.mrb[88].mxu1 %vm310_vm11, %v1981_v59  ;;  %4008 = vmatprep.subr.bf16.mxu1 %v4401_v1 }
 0xe14   :  { %3950 = vmatprep.mubr.msk.bf16.mxu1 %vm4402_vm0, %v4401_v1 }
 0xe1a   :  { %2732 = vrot.lane.b32.xlu0 %v5226_v44, %s5877_s20  ;;  %s3373_s20 = sshll.u32 %s4418_s19, 4  ;;  %s3374_s20 = int_to_ptr.vmem [resolvable:$true] %s3373_s20 }
 0xe1b   :  { %p4382_p1 = scmp.lt.s32.totalorder %s3374_s20, %s3374_s20 }
 0xe1e   :  { %2578 = vrot.lane.b32.xlu0 %v5226_v44, %s4409_s25  ;;  %s5879_s25 = smov 16  }
 0xe38   :  { %v1969_v21 = vpop.xlane.xlu0 %1968  ;;  %v2192_v19 = vpop.xlane.xlu1 %2191 }
 0xe39   :  { %4324 = vrcp.f32 %v1969_v21 }
 0xe3c   :  { %v2195_v14 = vpop.xlane.xlu0 %2194  ;;  %v2447_v5 = vpop.xlane.xlu1 %2446 }
 0xe3d   :  { %4326 = vrcp.f32 %v2195_v14 }
 0xe3e   :  { %4328 = vrcp.f32 %v2192_v19 }
 0xe40   :  { %v2198_v30 = vpop.xlane.xlu0 %2197 }
 0xe42   :  { %v2459_v2 = vpop.xlane.xlu1 %2458 }
 0xe43   :  { %v4325_v18 = vpop.eup %4324 }
 0xe44   :  { %v2201_v63 = vpop.xlane.xlu0 %2200  ;;  %v1979_v46 = vmul.f32 %v4325_v18, %v5467_v45 }
 0xe45   :  { %4330 = vrcp.f32 %v2201_v63 }
 0xe46   :  { %v1982_v51 = vpack.c.bf16 %v1979_v46, %v1979_v46  ;;  %4332 = vrcp.f32 %v2198_v30  ;;  %v2705_v28 = vpop.xlane.xlu1 %2704 }
 0xe47   :  { %v4327_v15 = vpop.eup %4326 }
 0xe48   :  { %v2204_v8 = vpop.xlane.xlu0 %2203  ;;  %3951 = vmatmul.mubr.msk.bf16.gmra.mrb[92].mxu1 %vm310_vm11, %v1982_v51  ;;  %v4329_v44 = vpop.eup %4328  ;;  %v2211_v10 = vmul.f32 %v4327_v15, %v5471_v11 }
 0xe49   :  { %3978 = vmatprep.mubr.msk.bf16.mxu1 %vm4402_vm0, %v4401_v1  ;;  %v2210_v13 = vmul.f32 %v4329_v44, %v5465_v39  ;;  %4334 = vrcp.f32 %v2204_v8 }
 0xe4a   :  { %v2478_v39 = vpop.permute.xlu1 %2477 }
 0xe4b   :  { %v2215_v37 = vpack.c.bf16 %v2211_v10, %v2210_v13  ;;  %v2491_v17 = vsel %vm387_vm3, %v2478_v39, 0 }
 0xe4c   :  { %v2450_v45 = vpop.xlane.xlu0 %2449 }
 0xe4d   :  { %4336 = vrcp.f32 %v2450_v45 }
 0xe4e   :  { %4338 = vrcp.f32 %v2447_v5 }
 0xe4f   :  { %v4331_v35 = vpop.eup %4330 }
 0xe50   :  { %3979 = vmatmul.mubr.msk.bf16.vlgmr.msra.gmra.mrb[96].mxu1 %vm310_vm11, %v2215_v37  ;;  %v4333_v58 = vpop.eup %4332  ;;  %v2213_v49 = vmul.f32 %v4331_v35, %v5487_v52  ;;  %v2453_v61 = vpop.xlane.xlu0 %2452 }
 0xe51   :  { %4009 = vmatpush3.bf16.msra.mxu1 %v2474_v60  ;;  %3982 = vmatprep.mubr.msk.bf16.mxu1 %vm4402_vm0, %v4401_v1  ;;  %v2212_v11 = vmul.f32 %v4333_v58, %v5484_v57 }
 0xe52   :  { %4010 = vmatprep.subr.bf16.mxu1 %v4401_v1 }
 0xe53   :  { %v2216_v33 = vpack.c.bf16 %v2213_v49, %v2212_v11  ;;  %v4335_v3 = vpop.eup %4334 }
 0xe54   :  { %v2456_v52 = vpop.xlane.xlu0 %2455  ;;  %v2214_v43 = vmul.f32 %v4335_v3, %v5496_v23 }
 0xe55   :  { %4011 = vmatpush3.bf16.msra.mxu1 %v2476_v54  ;;  %4340 = vrcp.f32 %v2456_v52 }
 0xe56   :  { %4012 = vmatprep.subr.bf16.mxu1 %v4401_v1  ;;  %v2217_v57 = vpack.c.bf16 %v2214_v43, %v2214_v43  ;;  %4342 = vrcp.f32 %v2453_v61  ;;  %v4164_v43 = vld [vmem:[%s5846_s3 + $0x10] sm:$0xff]  }
 0xe57   :  { %v4337_v22 = vpop.eup %4336  ;;  %4344 = vrcp.f32 %v2459_v2  ;;  %4063 = vmatpush3.bf16.msra.mxu0 %v4164_v43 }
 0xe58   :  { %3983 = vmatmul.mubr.msk.bf16.gmra.mrb[100].mxu1 %vm310_vm11, %v2216_v33  ;;  %v2702_v47 = vpop.xlane.xlu0 %2701  ;;  %v4339_v25 = vpop.eup %4338  ;;  %v2466_v6 = vmul.f32 %v4337_v22, %v5506_v31  ;;  %4064 = vmatprep.subr.bf16.mxu0 %v4401_v1 }
 0xe59   :  { %4013 = vmatpush3.bf16.msra.mxu1 %v2491_v17  ;;  %3986 = vmatprep.mubr.msk.bf16.mxu1 %vm4402_vm0, %v4401_v1  ;;  %v2465_v9 = vmul.f32 %v4339_v25, %v5477_v48  ;;  %4346 = vrcp.f32 %v2702_v47 }
 0xe5a   :  { %4044 = vmatprep.subr.bf16.mxu1 %v4401_v1  ;;  %4348 = vrcp.f32 %v2705_v28 }
 0xe5b   :  { %v2470_v40 = vpack.c.bf16 %v2466_v6, %v2465_v9 }
 0xe5c   :  { %v2729_v23 = vpop.permute.xlu0 %2728 }
 0xe5f   :  { %v4341_v38 = vpop.eup %4340 }
 0xe60   :  { %3987 = vmatmul.mubr.msk.bf16.gmra.mrb[104].mxu1 %vm310_vm11, %v2217_v57  ;;  %v4343_v24 = vpop.eup %4342  ;;  %v2468_v29 = vmul.f32 %v4341_v38, %v5514_v55  ;;  %v2731_v0 = vpop.permute.xlu0 %2730 }
 0xe61   :  { %4014 = vmatprep.mubr.msk.bf16.mxu1 %vm4402_vm0, %v4401_v1  ;;  %v2467_v31 = vmul.f32 %v4343_v24, %v5510_v26  ;;  %v4345_v34 = vpop.eup %4344 }
 0xe62   :  { %v2469_v42 = vmul.f32 %v4345_v34, %v5491_v62 }
 0xe63   :  { %v2471_v48 = vpack.c.bf16 %v2468_v29, %v2467_v31  ;;  %v4347_v55 = vpop.eup %4346  ;;  %v4165_v31 = vld [vmem:[%s5846_s3 + $0x18] sm:$0xff]  }
 0xe64   :  { %v2472_v12 = vpack.c.bf16 %v2469_v42, %v2469_v42  ;;  %v4349_v59 = vpop.eup %4348  ;;  %v2720_v60 = vmul.f32 %v4347_v55, %v5518_v32  ;;  %4065 = vmatpush3.bf16.msra.mxu0 %v4165_v31 }
 0xe65   :  { %v2721_v21 = vmul.f32 %v4349_v59, %v5500_v20  ;;  %4094 = vmatprep.subr.bf16.mxu0 %v4401_v1 }
 0xe67   :  { %v2725_v19 = vpack.c.bf16 %v2721_v21, %v2720_v60 }
 0xe68   :  { %4015 = vmatmul.mubr.msk.bf16.vlgmr.msra.gmra.mrb[108].mxu1 %vm310_vm11, %v2470_v40 }
 0xe69   :  { %4045 = vmatpush3.bf16.msra.mxu1 %v2729_v23  ;;  %4018 = vmatprep.mubr.msk.bf16.mxu1 %vm4402_vm0, %v4401_v1 }
 0xe6a   :  { %4046 = vmatprep.subr.bf16.mxu1 %v4401_v1 }
 0xe6d   :  { %4047 = vmatpush3.bf16.msra.mxu1 %v2731_v0 }
 0xe6e   :  { %4048 = vmatprep.subr.bf16.mxu1 %v4401_v1 }
 0xe70   :  { %4019 = vmatmul.mubr.msk.bf16.gmra.mrb[112].mxu1 %vm310_vm11, %v2471_v48 }
 0xe71   :  { %4022 = vmatprep.mubr.msk.bf16.mxu1 %vm4402_vm0, %v4401_v1 }
 0xe78   :  { %4023 = vmatmul.mubr.msk.bf16.gmra.mrb[116].mxu1 %vm310_vm11, %v2472_v12 }
 0xe79   :  { %4050 = vmatprep.mubr.msk.bf16.mxu1 %vm4402_vm0, %v4401_v1 }
 0xe7b   :  { %v2708_v26 = vpop.xlane.xlu1 %2707 }
 0xe7c   :  { %4350 = vrcp.f32 %v2708_v26 }
 0xe86   :  { %v4351_v30 = vpop.eup %4350 }
 0xe87   :  { %v2722_v20 = vmul.f32 %v4351_v30, %v5529_v50 }
 0xe91   :  { %v2711_v36 = vpop.xlane.xlu0 %2710 }
 0xe92   :  { %4352 = vrcp.f32 %v2711_v36 }
 0xe95   :  { %v2733_v54 = vpop.permute.xlu0 %2732 }
 0xe96   :  { %v2746_v62 = vsel %vm387_vm3, %v2733_v54, 0 }
 0xe97   :  { %4049 = vmatpush3.bf16.msra.mxu1 %v2746_v62 }
 0xe98   :  { %4078 = vmatprep.subr.bf16.mxu1 %v4401_v1 }
 0xe99   :  { %v2579_v14 = vpop.permute.xlu0 %2578 }
 0xe9a   :  { %4041 = vmatmul.mubr.msk.bf16.gmra.mrb[116].mxu0 %vm225_vm2, %v2579_v14  ;;  %4051 = vmatmul.mubr.msk.bf16.vlgmr.msra.gmra.mrb[120].mxu1 %vm310_vm11, %v2725_v19 }
 0xe9b   :  { %4054 = vmatprep.mubr.msk.bf16.mxu1 %vm4402_vm0, %v4401_v1  ;;  %4066 = vmatprep.mubr.msk.bf16.mxu0 %vm4402_vm0, %v4401_v1 }
 0xe9c   :  { %v4353_v32 = vpop.eup %4352 }
 0xe9d   :  { %v2723_v18 = vmul.f32 %v4353_v32, %v5534_v27 }
 0xe9f   :  { %v2726_v63 = vpack.c.bf16 %v2723_v18, %v2722_v20 }
 0xea2   :  { %4055 = vmatmul.mubr.msk.bf16.gmra.mrb[124].mxu1 %vm310_vm11, %v2726_v63 }
 0xea3   :  { %4058 = vmatprep.mubr.msk.bf16.mxu1 %vm4402_vm0, %v4401_v1 }
 0xedc   :  { %v2037_v46 = vpop.f32.mrb[84].mxu1 }
 0xedd   :  { %2059 = vst.msk [vmem:[#allocation2] sm:$0xff] %vm225_vm2, %v2037_v46  ;;  %v3944_v5 = vpop.f32.mrb[85].mxu1 }
 0xede   :  { %v2040_v51 = vpop.f32.mrb[86].mxu1 }
 0xedf   :  { %2060 = vst.msk [vmem:[#allocation2 + $0x8] sm:$0xff] %vm225_vm2, %v2040_v51  ;;  %v3945_v15 = vpop.f32.mrb[87].mxu1 }
 0xee6   :  { %v2045_v8 = vpop.f32.mrb[88].mxu1 }
 0xee7   :  { %2061 = vst.msk [vmem:[#allocation2 + $0x10] sm:$0xff] %vm225_vm2, %v2045_v8  ;;  %v3948_v50 = vpop.f32.mrb[89].mxu1 }
 0xee8   :  { %v2048_v44 = vpop.f32.mrb[90].mxu1 }
 0xee9   :  { %2062 = vst.msk [vmem:[#allocation2 + $0x18] sm:$0xff] %vm225_vm2, %v2048_v44  ;;  %v3949_v27 = vpop.f32.mrb[91].mxu1 }
 0xf1b   :  { %v2053_v2 = vpop.f32.mrb[92].mxu1 }
 0xf1c   :  { %2063 = vst.msk [vmem:[#allocation2 + $0x20] sm:$0x3] %vm451_vm5, %v2053_v2  ;;  %v3952_v10 = vpop.f32.mrb[93].mxu1 }
 0xf1d   :  { %v2056_v13 = vpop.f32.mrb[94].mxu1 }
 0xf1e   :  { %v3953_v37 = vpop.f32.mrb[95].mxu1 }
 0xf23   :  { %v2272_v45 = vpop.f32.mrb[96].mxu1 }
 0xf24   :  { %2299 = vrot.lane.b32.xlu1 %v2272_v45, %s5878_s21  ;;  %v3980_v35 = vpop.f32.mrb[97].mxu1 }
 0xf25   :  { %v2275_v28 = vpop.f32.mrb[98].mxu1 }
 0xf26   :  { %2301 = vrot.lane.b32.xlu0 %v2275_v28, %s5878_s21  ;;  %v3981_v58 = vpop.f32.mrb[99].mxu1 }
 0xf2b   :  { %v2280_v49 = vpop.f32.mrb[100].mxu1 }
 0xf2c   :  { %2303 = vrot.lane.b32.xlu0 %v2280_v49, %s5878_s21  ;;  %v3984_v61 = vpop.f32.mrb[101].mxu1 }
 0xf2d   :  { %v2283_v11 = vpop.f32.mrb[102].mxu1 }
 0xf2e   :  { %2305 = vrot.lane.b32.xlu1 %v2283_v11, %s5878_s21  ;;  %v3985_v39 = vpop.f32.mrb[103].mxu1  ;;  %v5664_v11 = vld [vmem:[%s5847_s4 + $0x1] ss:$0 sm:$0xff] }
 0xf33   :  { %v5620_v33 = vpop.f32.mrb[104].mxu1 }
 0xf34   :  { %v3988_v3 = vpop.f32.mrb[105].mxu1 }
 0xf35   :  { %v2291_v17 = vpop.f32.mrb[106].mxu1 }
 0xf36   :  { %v3989_v52 = vpop.f32.mrb[107].mxu1 }
 0xf3b   :  { %v2527_v57 = vpop.f32.mrb[108].mxu1 }
 0xf3c   :  { %2554 = vrot.lane.b32.xlu0 %v2527_v57, %s5879_s25  ;;  %v4016_v22 = vpop.f32.mrb[109].mxu1 }
 0xf3d   :  { %v2530_v47 = vpop.f32.mrb[110].mxu1 }
 0xf3e   :  { %v4017_v25 = vpop.f32.mrb[111].mxu1 }
 0xf40   :  { %2556 = vrot.lane.b32.xlu0 %v2530_v47, %s5879_s25 }
 0xf43   :  { %v2535_v6 = vpop.f32.mrb[112].mxu1 }
 0xf44   :  { %2558 = vrot.lane.b32.xlu0 %v2535_v6, %s5879_s25  ;;  %v4020_v9 = vpop.f32.mrb[113].mxu1 }
 0xf45   :  { %v2538_v40 = vpop.f32.mrb[114].mxu1 }
 0xf46   :  { %v4021_v23 = vpop.f32.mrb[115].mxu1 }
 0xf4b   :  { %v5629_v38 = vpop.f32.mrb[116].mxu1 }
 0xf4c   :  { %v4024_v24 = vpop.f32.mrb[117].mxu1 }
 0xf4d   :  { %v2546_v29 = vpop.f32.mrb[118].mxu1 }
 0xf4e   :  { %v4025_v0 = vpop.f32.mrb[119].mxu1 }
 0xf6d   :  { %v2654_v48 = vpop.f32.mrb[116].mxu0  ;;  %v2782_v34 = vpop.f32.mrb[120].mxu1 }
 0xf6e   :  { %v4042_v42 = vpop.f32.mrb[117].mxu0  ;;  %2809 = vrot.lane.b32.xlu0 %v2782_v34, %s5880_s17  ;;  %v4052_v12 = vpop.f32.mrb[121].mxu1  ;;  %v2664_v19 = vmul.f32 0.35355338, %v2654_v48 }
 0xf6f   :  { %v2657_v26 = vpop.f32.mrb[118].mxu0  ;;  %v2785_v55 = vpop.f32.mrb[122].mxu1 }
 0xf70   :  { %v4043_v36 = vpop.f32.mrb[119].mxu0  ;;  %2811 = vrot.lane.b32.xlu1 %v2785_v55, %s5880_s17  ;;  %v4053_v59 = vpop.f32.mrb[123].mxu1  ;;  %v2669_v14 = vadd.f32 %v2664_v19, %v4705_v41 }
 0xf72   :  { %v2682_v30 = vsel %vm323_vm4, %v2669_v14, -inf }
 0xf74   :  { %2560 = vrot.lane.b32.xlu1 %v2538_v40, %s5879_s25 }
 0xf75   :  { %v2790_v60 = vpop.f32.mrb[124].mxu1 }
 0xf76   :  { %2813 = vrot.lane.b32.xlu0 %v2790_v60, %s5880_s17  ;;  %v4056_v54 = vpop.f32.mrb[125].mxu1 }
 0xf77   :  { %v2793_v21 = vpop.f32.mrb[126].mxu1 }
 0xf78   :  { %2815 = vrot.lane.b32.xlu1 %v2793_v21, %s5880_s17  ;;  %v4057_v62 = vpop.f32.mrb[127].mxu1 }
 0xf95   :  { %2683 = vmax.xlane.f32.xlu0 %v2682_v30 }
 0xf96   :  { %v2300_v32 = vpop.permute.xlu1 %2299 }
 0xf97   :  { %2314 = vst.msk [vmem:[#allocation2] sm:$0xff] %vm703_vm6, %v2300_v32 }
 0xf98   :  { %v2302_v20 = vpop.permute.xlu0 %2301 }
 0xf99   :  { %2315 = vst.msk [vmem:[#allocation2 + $0x8] sm:$0xff] %vm703_vm6, %v2302_v20 }
 0xf9e   :  { %v2304_v18 = vpop.permute.xlu0 %2303 }
 0xf9f   :  { %2316 = vst.msk [vmem:[#allocation2 + $0x10] sm:$0xff] %vm703_vm6, %v2304_v18 }
 0xfa0   :  { %v2306_v63 = vpop.permute.xlu1 %2305 }
 0xfa1   :  { %2317 = vst.msk [vmem:[#allocation2 + $0x18] sm:$0xff] %vm703_vm6, %v2306_v63  ;;  %v4166_v63 = vld [vmem:[%s5850_s7 + $0x10] sm:$0xff]  }
 0xfa2   :  { %4079 = vmatpush3.bf16.msra.mxu1 %v4166_v63 }
 0xfa3   :  { %4080 = vmatprep.subr.bf16.mxu1 %v4401_v1 }
 0xfae   :  { %v2555_v46 = vpop.permute.xlu0 %2554 }
 0xfaf   :  { %2569 = vst.msk [vmem:[#allocation2] sm:$0xff] %vm960_vm7, %v2555_v46 }
 0xfb2   :  { %v2557_v5 = vpop.permute.xlu0 %2556 }
 0xfb3   :  { %2570 = vst.msk [vmem:[#allocation2 + $0x8] sm:$0xff] %vm960_vm7, %v2557_v5  ;;  %v4167_v5 = vld [vmem:[%s5850_s7 + $0x18] sm:$0xff]  }
 0xfb4   :  { %4081 = vmatpush3.bf16.msra.mxu1 %v4167_v5 }
 0xfb5   :  { %4122 = vmatprep.subr.bf16.mxu1 %v4401_v1 }
 0xfb6   :  { %v2559_v41 = vpop.permute.xlu0 %2558 }
 0xfb7   :  { %2571 = vst.msk [vmem:[#allocation2 + $0x10] sm:$0xff] %vm960_vm7, %v2559_v41 }
 0xfe0   :  { %v2810_v51 = vpop.permute.xlu0 %2809 }
 0xfe1   :  { %2824 = vst.msk [vmem:[#allocation2] sm:$0xff] %vm1217_vm8, %v2810_v51 }
 0xfe2   :  { %v2812_v15 = vpop.permute.xlu1 %2811 }
 0xfe3   :  { %2825 = vst.msk [vmem:[#allocation2 + $0x8] sm:$0xff] %vm1217_vm8, %v2812_v15 }
 0xfe6   :  { %v2561_v8 = vpop.permute.xlu1 %2560 }
 0xfe7   :  { %2572 = vst.msk [vmem:[#allocation2 + $0x18] sm:$0xff] %vm960_vm7, %v2561_v8 }
 0xfe8   :  { %v2814_v50 = vpop.permute.xlu0 %2813  ;;  %v2829_v27 = vld [vmem:[#allocation2] sm:$0xff] }
 0xfe9   :  { %2826 = vst.msk [vmem:[#allocation2 + $0x10] sm:$0xff] %vm1217_vm8, %v2814_v50 }
 0xfea   :  { %v2816_v44 = vpop.permute.xlu1 %2815  ;;  %v2830_v2 = vld [vmem:[#allocation2 + $0x8] sm:$0xff] }
 0xfeb   :  { %2827 = vst.msk [vmem:[#allocation2 + $0x18] sm:$0xff] %vm1217_vm8, %v2816_v44  ;;  %v2834_v10 = vpack.c.bf16 %v2830_v2, %v2829_v27  ;;  %v4168_v27 = vld [vmem:[%s5852_s9 + $0x40] sm:$0xff]   ;;  %v4169_v2 = vld [vmem:[%s5852_s9 + $0x48] sm:$0xff]  }
 0xfed   :  { %4067 = vmatmul.mubr.msk.bf16.vlgmr.msra.gmra.mrb[120].mxu0 %vm147_vm1, %v2834_v10  ;;  %v4170_v10 = vld [vmem:[%s5852_s9 + $0x50] sm:$0xff]  }
 0xfee   :  { %4070 = vmatprep.mubr.msk.bf16.mxu0 %vm4402_vm0, %v4401_v1  ;;  %4095 = vmatpush3.bf16.msra.mxu0 %v4168_v27 }
 0xfef   :  { %4096 = vmatprep.subr.bf16.mxu0 %v4401_v1 }
 0xff0   :  { %v2831_v13 = vld [vmem:[#allocation2 + $0x10] sm:$0xff] }
 0xff2   :  { %v2832_v37 = vld [vmem:[#allocation2 + $0x18] sm:$0xff]  ;;  %4097 = vmatpush3.bf16.msra.mxu0 %v4169_v2 }
 0xff3   :  { %v2835_v45 = vpack.c.bf16 %v2832_v37, %v2831_v13  ;;  %4098 = vmatprep.subr.bf16.mxu0 %v4401_v1  ;;  %v4171_v13 = vld [vmem:[%s5852_s9 + $0x58] sm:$0xff]   ;;  %v4172_v37 = vld [vmem:[%s5852_s9 + $0x60] sm:$0xff]  }
 0xff5   :  { %4071 = vmatmul.mubr.msk.bf16.gmra.mrb[124].mxu0 %vm147_vm1, %v2835_v45  ;;  %v4173_v45 = vld [vmem:[%s5852_s9 + $0x68] sm:$0xff]  }
 0xff6   :  { %4074 = vmatprep.mubr.msk.bf16.mxu0 %vm4402_vm0, %v4401_v1  ;;  %4099 = vmatpush3.bf16.msra.mxu0 %v4170_v10 }
 0xff7   :  { %4100 = vmatprep.subr.bf16.mxu0 %v4401_v1 }
 0xffa   :  { %4101 = vmatpush3.bf16.msra.mxu0 %v4171_v13 }
 0xffb   :  { %4102 = vmatprep.subr.bf16.mxu0 %v4401_v1 }
 0xffe   :  { %4103 = vmatpush3.bf16.msra.mxu0 %v4172_v37 }
 0xfff   :  { %4104 = vmatprep.subr.bf16.mxu0 %v4401_v1 }
0x1002   :  { %4105 = vmatpush3.bf16.msra.mxu0 %v4173_v45 }
0x1003   :  { %4106 = vmatprep.subr.bf16.mxu0 %v4401_v1 }
0x1022   :  { %v2684_v35 = vpop.xlane.xlu0 %2683 }
0x1023   :  { %v2689_v28 = vsub.f32 %v2669_v14, %v2684_v35 }
0x1025   :  { %v2698_v58 = vmul.f32 1.442695, %v2689_v28 }
0x1027   :  { %4354 = vpow2.f32 %v2698_v58 }
0x1031   :  { %v4355_v49 = vpop.eup %4354 }
0x1032   :  { %v2712_v61 = vsel %vm323_vm4, %v4355_v49, 0.0 }
0x1033   :  { %2713 = vadd.xlane.f32.xlu1 %v2712_v61 }
0x10c0   :  { %v2905_v39 = vpop.f32.mrb[120].mxu0  ;;  %v2714_v3 = vpop.xlane.xlu1 %2713 }
0x10c1   :  { %v2906_v17 = vadd.f32 %v5664_v11, %v2905_v39  ;;  %4356 = vrcp.f32 %v2714_v3  ;;  %v4068_v52 = vpop.f32.mrb[121].mxu0 }
0x10c2   :  { %v2908_v43 = vpop.f32.mrb[122].mxu0 }
0x10c3   :  { %v2927_v57 = vadd.f32 %v2906_v17, %v5184_v56  ;;  %v2909_v22 = vadd.f32 %v5664_v11, %v2908_v43  ;;  %v4069_v47 = vpop.f32.mrb[123].mxu0 }
0x10c5   :  { %v2928_v25 = vadd.f32 %v2909_v22, %v5186_v16  ;;  %v2936_v6 = vsel %vm147_vm1, %v2927_v57, 0.0  ;;  %v5744_v22 = vld [vmem:[%s5848_s5 + $0x1] ss:$0 sm:$0xff] }
0x10c6   :  { %2937 = vadd.xlane.f32.xlu0 %v2936_v6 }
0x10c7   :  { %v2939_v24 = vsel %vm147_vm1, %v2928_v25, 0.0 }
0x10c8   :  { %v2913_v9 = vpop.f32.mrb[124].mxu0 }
0x10c9   :  { %v2914_v40 = vadd.f32 %v5664_v11, %v2913_v9  ;;  %v4072_v23 = vpop.f32.mrb[125].mxu0  ;;  %v5751_v9 = vld [vmem:[%s5849_s6 + $0x1] ss:$0 sm:$0xff] }
0x10ca   :  { %2940 = vadd.xlane.f32.xlu0 %v2939_v24  ;;  %v2916_v29 = vpop.f32.mrb[126].mxu0 }
0x10cb   :  { %v4357_v0 = vpop.eup %4356  ;;  %v2929_v31 = vadd.f32 %v2914_v40, %v5193_v7  ;;  %v2917_v56 = vadd.f32 %v5664_v11, %v2916_v29  ;;  %v4073_v48 = vpop.f32.mrb[127].mxu0 }
0x10cc   :  { %v2724_v34 = vmul.f32 %v4357_v0, %v4355_v49 }
0x10cd   :  { %v2930_v16 = vadd.f32 %v2917_v56, %v5195_v4  ;;  %v2942_v42 = vsel %vm147_vm1, %v2929_v31, 0.0 }
0x10ce   :  { %2943 = vadd.xlane.f32.xlu1 %v2942_v42  ;;  %v2727_v12 = vpack.c.bf16 %v2724_v34, %v2724_v34 }
0x10cf   :  { %v2945_v26 = vsel %vm147_vm1, %v2930_v16, 0.0 }
0x10d0   :  { %2946 = vadd.xlane.f32.xlu0 %v2945_v26  ;;  %4059 = vmatmul.mubr.msk.bf16.gmra.mrb[128].mxu1 %vm310_vm11, %v2727_v12 }
0x10d1   :  { %4082 = vmatprep.mubr.msk.bf16.mxu1 %vm4402_vm0, %v4401_v1 }
0x1153   :  { %v2938_v55 = vpop.xlane.xlu0 %2937 }
0x1154   :  { %v2951_v7 = vmul.f32 0.03125, %v2938_v55 }
0x1156   :  { %v5681_v36 = vsub.f32 %v2927_v57, %v2951_v7 }
0x1157   :  { %v2941_v59 = vpop.xlane.xlu0 %2940 }
0x1158   :  { %v2952_v60 = vmul.f32 0.03125, %v2941_v59  ;;  %v2961_v4 = vmul.f32 %v5681_v36, %v5681_v36 }
0x115a   :  { %v5685_v54 = vsub.f32 %v2928_v25, %v2952_v60  ;;  %v2966_v21 = vsel %vm147_vm1, %v2961_v4, 0.0 }
0x115b   :  { %2967 = vadd.xlane.f32.xlu1 %v2966_v21  ;;  %v2944_v46 = vpop.xlane.xlu1 %2943 }
0x115c   :  { %v2962_v62 = vmul.f32 %v5685_v54, %v5685_v54  ;;  %v2953_v41 = vmul.f32 0.03125, %v2944_v46 }
0x115d   :  { %v2947_v19 = vpop.xlane.xlu0 %2946 }
0x115e   :  { %v2954_v14 = vmul.f32 0.03125, %v2947_v19  ;;  %v2969_v30 = vsel %vm147_vm1, %v2962_v62, 0.0  ;;  %v4174_v62 = vld [vmem:[%s5852_s9 + $0x70] sm:$0xff]   ;;  %v4175_v19 = vld [vmem:[%s5852_s9 + $0x78] sm:$0xff]  }
0x115f   :  { %2970 = vadd.xlane.f32.xlu0 %v2969_v30  ;;  %4107 = vmatpush3.bf16.msra.mxu0 %v4174_v62 }
0x1160   :  { %v5691_v32 = vsub.f32 %v2930_v16, %v2954_v14  ;;  %4108 = vmatprep.subr.bf16.mxu0 %v4401_v1  ;;  %v5785_v14 = vld [vmem:[%s5851_s8 + $0x1] ss:$0 sm:$0xff] }
0x1162   :  { %v2964_v20 = vmul.f32 %v5691_v32, %v5691_v32 }
0x1163   :  { %4109 = vmatpush3.bf16.msra.mxu0 %v4175_v19 }
0x1164   :  { %v2975_v18 = vsel %vm147_vm1, %v2964_v20, 0.0 }
0x1165   :  { %2976 = vadd.xlane.f32.xlu0 %v2975_v18 }
0x116c   :  { %2307 = vrot.lane.b32.xlu1 %v5620_v33, %s5878_s21  ;;  %v5708_v33 = vsub.f32 %v2929_v31, %v2953_v41 }
0x117b   :  { %2562 = vrot.lane.b32.xlu0 %v5629_v38, %s5879_s25  ;;  %v2963_v38 = vmul.f32 %v5708_v33, %v5708_v33 }
0x117d   :  { %v2972_v51 = vsel %vm147_vm1, %v2963_v38, 0.0 }
0x1190   :  { %2973 = vadd.xlane.f32.xlu1 %v2972_v51 }
0x11a3   :  { %v2798_v15 = vpop.f32.mrb[128].mxu1 }
0x11a4   :  { %2817 = vrot.lane.b32.xlu1 %v2798_v15, %s5880_s17  ;;  %v4060_v8 = vpop.f32.mrb[129].mxu1 }
0x11a5   :  { %v2801_v50 = vpop.f32.mrb[130].mxu1 }
0x11a6   :  { %v4061_v44 = vpop.f32.mrb[131].mxu1 }
0x11e8   :  { %v2968_v35 = vpop.xlane.xlu1 %2967 }
0x11e9   :  { %v2981_v28 = vmul.f32 0.03125, %v2968_v35 }
0x11eb   :  { %v2986_v58 = vadd.f32 1e-05, %v2981_v28 }
0x11ec   :  { %v2971_v49 = vpop.xlane.xlu0 %2970  ;;  %v2308_v61 = vpop.permute.xlu1 %2307 }
0x11ed   :  { %4358 = vrsqrt.f32 %v2986_v58  ;;  %v2982_v39 = vmul.f32 0.03125, %v2971_v49  ;;  %2318 = vst.msk [vmem:[#allocation2 + $0x20] sm:$0x3] %vm708_vm9, %v2308_v61 }
0x11ef   :  { %v2987_v3 = vadd.f32 1e-05, %v2982_v39 }
0x11f1   :  { %4360 = vrsqrt.f32 %v2987_v3 }
0x11f2   :  { %v2977_v17 = vpop.xlane.xlu0 %2976 }
0x11f3   :  { %v2984_v0 = vmul.f32 0.03125, %v2977_v17  ;;  %v3514_v17 = vld [vmem:[%s5853_s10 + $0x1] ss:$0 sm:$0xff] }
0x11f5   :  { %v2989_v31 = vadd.f32 1e-05, %v2984_v0 }
0x11f6   :  { %v2563_v52 = vpop.permute.xlu0 %2562 }
0x11f7   :  { %v4359_v43 = vpop.eup %4358  ;;  %2573 = vst.msk [vmem:[#allocation2 + $0x20] sm:$0x3] %vm965_vm10, %v2563_v52  ;;  %4362 = vrsqrt.f32 %v2989_v31 }
0x11f8   :  { %v2996_v57 = vmul.f32 %v4359_v43, %v5681_v36 }
0x11fa   :  { %v3007_v25 = vmul.f32 %v5744_v22, %v2996_v57 }
0x11fb   :  { %v4361_v47 = vpop.eup %4360 }
0x11fc   :  { %v2997_v6 = vmul.f32 %v4361_v47, %v5685_v54  ;;  %v5755_v23 = vadd.f32 %v5751_v9, %v3007_v25 }
0x11fe   :  { %v3008_v40 = vmul.f32 %v5744_v22, %v2997_v6 }
0x1200   :  { %v3019_v24 = vadd.f32 %v5751_v9, %v3008_v40 }
0x1201   :  { %v4363_v42 = vpop.eup %4362 }
0x1202   :  { %v3023_v29 = vpack.c.bf16 %v3019_v24, %v5755_v23  ;;  %v2999_v12 = vmul.f32 %v4363_v42, %v5691_v32 }
0x1204   :  { %4083 = vmatmul.mubr.msk.bf16.vlgmr.msra.gmra.mrb[132].mxu1 %vm147_vm1, %v3023_v29  ;;  %v3010_v59 = vmul.f32 %v5744_v22, %v2999_v12 }
0x1205   :  { %4086 = vmatprep.mubr.msk.bf16.mxu1 %vm4402_vm0, %v4401_v1 }
0x1206   :  { %v3021_v54 = vadd.f32 %v5751_v9, %v3010_v59 }
0x121d   :  { %v2974_v56 = vpop.xlane.xlu1 %2973 }
0x121e   :  { %v2983_v48 = vmul.f32 0.03125, %v2974_v56 }
0x1220   :  { %v2988_v34 = vadd.f32 1e-05, %v2983_v48 }
0x1221   :  { %v2818_v16 = vpop.permute.xlu1 %2817 }
0x1222   :  { %4364 = vrsqrt.f32 %v2988_v34  ;;  %2828 = vst.msk [vmem:[#allocation2 + $0x20] sm:$0x3] %vm1222_vm12, %v2818_v16 }
0x1229   :  { %v2833_v26 = vld [vmem:[#allocation2 + $0x20] sm:$0x3] }
0x122a   :  { %v2836_v55 = vpack.c.bf16 %v2833_v26, %v2833_v26 }
0x122c   :  { %v4365_v7 = vpop.eup %4364  ;;  %4075 = vmatmul.mubr.msk.bf16.gmra.mrb[128].mxu0 %vm147_vm1, %v2836_v55 }
0x122d   :  { %v2998_v36 = vmul.f32 %v4365_v7, %v5708_v33  ;;  %4110 = vmatprep.mubr.msk.bf16.mxu0 %vm4402_vm0, %v4401_v1 }
0x122f   :  { %v3009_v60 = vmul.f32 %v5744_v22, %v2998_v36 }
0x1231   :  { %v3020_v4 = vadd.f32 %v5751_v9, %v3009_v60 }
0x1233   :  { %v3024_v21 = vpack.c.bf16 %v3021_v54, %v3020_v4 }
0x1235   :  { %4087 = vmatmul.mubr.msk.bf16.gmra.mrb[136].mxu1 %vm147_vm1, %v3024_v21 }
0x1236   :  { %4090 = vmatprep.mubr.msk.bf16.mxu1 %vm4402_vm0, %v4401_v1 }
0x12d7   :  { %v3094_v30 = vpop.f32.mrb[132].mxu1 }
0x12d8   :  { %v3095_v32 = vadd.f32 %v5785_v14, %v3094_v30  ;;  %v4084_v20 = vpop.f32.mrb[133].mxu1 }
0x12d9   :  { %v3097_v18 = vpop.f32.mrb[134].mxu1  ;;  %v4177_v20 = vld [vmem:[%s5856_s13 + $0x8] sm:$0xff]  }
0x12da   :  { %v3098_v63 = vadd.f32 %v5785_v14, %v3097_v18  ;;  %v4085_v46 = vpop.f32.mrb[135].mxu1  ;;  %v3116_v5 = vmax.f32 %v3095_v32, 0.0 }
0x12dc   :  { %v3117_v41 = vmax.f32 %v3098_v63, 0.0 }
0x12de   :  { %v3121_v33 = vpack.c.bf16 %v3117_v41, %v3116_v5 }
0x12e0   :  { %4111 = vmatmul.mubr.bf16.vlgmr.msra.gmra.mrb[132].mxu0 %v3121_v33 }
0x12e1   :  { %4114 = vmatprep.mubr.msk.bf16.mxu0 %vm4402_vm0, %v4401_v1 }
0x12ff   :  { %v2921_v38 = vpop.f32.mrb[128].mxu0 }
0x1300   :  { %v2922_v51 = vadd.f32 %v5664_v11, %v2921_v38  ;;  %v4076_v15 = vpop.f32.mrb[129].mxu0 }
0x1301   :  { %v2924_v8 = vpop.f32.mrb[130].mxu0 }
0x1302   :  { %v2931_v50 = vadd.f32 %v2922_v51, %v5202_v53  ;;  %v4077_v44 = vpop.f32.mrb[131].mxu0 }
0x1304   :  { %v2948_v27 = vsel %vm1339_vm13, %v2931_v50, 0.0 }
0x1305   :  { %2949 = vadd.xlane.f32.xlu1 %v2948_v27 }
0x1308   :  { %v3102_v2 = vpop.f32.mrb[136].mxu1 }
0x1309   :  { %v3103_v10 = vadd.f32 %v5785_v14, %v3102_v2  ;;  %v4088_v13 = vpop.f32.mrb[137].mxu1 }
0x130a   :  { %v3105_v37 = vpop.f32.mrb[138].mxu1 }
0x130b   :  { %v3106_v45 = vadd.f32 %v5785_v14, %v3105_v37  ;;  %v4089_v35 = vpop.f32.mrb[139].mxu1  ;;  %v3118_v28 = vmax.f32 %v3103_v10, 0.0  ;;  %v3525_v10 = vld [vmem:[%s5854_s11 + $0x1] ss:$0 sm:$0xff] }
0x130c   :  { %v3526_v35 = vld [vmem:[%s5855_s12 + $0x1] ss:$0 sm:$0xff]  ;;  %s4377_s12 = scalar_lea.vmem %s3374_s20, 32 }
0x130d   :  { %v3119_v58 = vmax.f32 %v3106_v45, 0.0  ;;  %p4378_p0 = scmp.ne.s32.totalorder %s3374_s20, %s4377_s12  ;;  %p4383_p2 = scmp.lt.s32.totalorder %s4377_s12, %s4377_s12 }
0x130f   :  { %v3122_v49 = vpack.c.bf16 %v3119_v58, %v3118_v28  ;;  %p4384_p3 = por %p4383_p2, %p4382_p1 }
0x1311   :  { %4115 = vmatmul.mubr.bf16.gmra.mrb[136].mxu0 %v3122_v49  ;;  %p4385_p4 = pnand %p4384_p3, %p4378_p0 }
0x1312   :  { %4118 = vmatprep.mubr.msk.bf16.mxu0 %vm4402_vm0, %v4401_v1 }
0x1392   :  { %v2950_v53 = vpop.xlane.xlu1 %2949 }
0x1393   :  { %v2955_v11 = vmul.f32 0.03125, %v2950_v53 }
0x1395   :  { %v2960_v61 = vsub.f32 %v2931_v50, %v2955_v11 }
0x1397   :  { %v2965_v39 = vmul.f32 %v2960_v61, %v2960_v61 }
0x1399   :  { %v2978_v3 = vsel %vm1339_vm13, %v2965_v39, 0.0 }
0x139a   :  { %2979 = vadd.xlane.f32.xlu0 %v2978_v3 }
0x13b3   :  { %v3231_v52 = vpop.f32.mrb[132].mxu0 }
0x13b4   :  { %v3232_v43 = vadd.f32 %v3514_v17, %v3231_v52  ;;  %v4112_v57 = vpop.f32.mrb[133].mxu0 }
0x13b5   :  { %v3234_v47 = vpop.f32.mrb[134].mxu0 }
0x13b6   :  { %v3250_v25 = vadd.f32 %v3232_v43, %v5755_v23  ;;  %v4113_v6 = vpop.f32.mrb[135].mxu0 }
0x13b8   :  { %v3256_v40 = vsel %vm147_vm1, %v3250_v25, 0.0 }
0x13b9   :  { %3257 = vadd.xlane.f32.xlu0 %v3256_v40 }
0x13e4   :  { %v3238_v24 = vpop.f32.mrb[136].mxu0 }
0x13e5   :  { %v3239_v29 = vadd.f32 %v3514_v17, %v3238_v24  ;;  %v4116_v0 = vpop.f32.mrb[137].mxu0  ;;  %v3527_v17 = vld [vmem:[%s5857_s14] ss:$0 sm:$0xff] }
0x13e6   :  { %v3241_v31 = vpop.f32.mrb[138].mxu0 }
0x13e7   :  { %v3251_v56 = vadd.f32 %v3239_v29, %v3020_v4  ;;  %v4117_v48 = vpop.f32.mrb[139].mxu0 }
0x13e9   :  { %v3259_v34 = vsel %vm147_vm1, %v3251_v56, 0.0 }
0x13ea   :  { %3260 = vadd.xlane.f32.xlu1 %v3259_v34 }
0x1427   :  { %v2980_v16 = vpop.xlane.xlu0 %2979 }
0x1428   :  { %v2985_v42 = vmul.f32 0.03125, %v2980_v16 }
0x142a   :  { %v2990_v12 = vadd.f32 1e-05, %v2985_v42 }
0x142c   :  { %4366 = vrsqrt.f32 %v2990_v12 }
0x1436   :  { %v4367_v26 = vpop.eup %4366 }
0x1437   :  { %v3000_v55 = vmul.f32 %v4367_v26, %v2960_v61 }
0x1439   :  { %v3011_v23 = vmul.f32 %v5744_v22, %v3000_v55 }
0x143b   :  { %v3022_v7 = vadd.f32 %v5751_v9, %v3011_v23  ;;  %v4176_v9 = vld [vmem:[%s5856_s13] sm:$0xff]  }
0x143c   :  { %4123 = vmatpush3.bf16.msra.mxu1 %v4176_v9 }
0x143d   :  { %v3025_v36 = vpack.c.bf16 %v3022_v7, %v3022_v7  ;;  %4124 = vmatprep.subr.bf16.mxu1 %v4401_v1 }
0x143f   :  { %4091 = vmatmul.mubr.msk.bf16.gmra.mrb[140].mxu1 %vm147_vm1, %v3025_v36 }
0x1440   :  { %4126 = vmatprep.mubr.msk.bf16.mxu1 %vm4402_vm0, %v4401_v1  ;;  %4125 = vmatpush3.bf16.msra.mxu1 %v4177_v20 }
0x1446   :  { %v3258_v59 = vpop.xlane.xlu0 %3257 }
0x1447   :  { %v3262_v60 = vmul.f32 0.03125, %v3258_v59 }
0x1449   :  { %v3264_v4 = vsub.f32 %v3250_v25, %v3262_v60 }
0x144b   :  { %v3266_v54 = vmul.f32 %v3264_v4, %v3264_v4 }
0x144d   :  { %v3268_v21 = vsel %vm147_vm1, %v3266_v54, 0.0 }
0x144e   :  { %3269 = vadd.xlane.f32.xlu0 %v3268_v21 }
0x1477   :  { %v3261_v62 = vpop.xlane.xlu1 %3260 }
0x1478   :  { %v3263_v19 = vmul.f32 0.03125, %v3261_v62 }
0x147a   :  { %v3265_v30 = vsub.f32 %v3251_v56, %v3263_v19 }
0x147c   :  { %v3267_v32 = vmul.f32 %v3265_v30, %v3265_v30 }
0x147e   :  { %v3271_v22 = vsel %vm147_vm1, %v3267_v32, 0.0 }
0x147f   :  { %3272 = vadd.xlane.f32.xlu1 %v3271_v22 }
0x14db   :  { %v3270_v18 = vpop.xlane.xlu0 %3269 }
0x14dc   :  { %v3274_v63 = vmul.f32 0.03125, %v3270_v18 }
0x14de   :  { %v3276_v46 = vadd.f32 1e-05, %v3274_v63 }
0x14e0   :  { %4368 = vrsqrt.f32 %v3276_v46 }
0x14ea   :  { %v4369_v50 = vpop.eup %4368 }
0x14eb   :  { %v3280_v2 = vmul.f32 %v4369_v50, %v3264_v4 }
0x14ed   :  { %v3288_v37 = vmul.f32 %v3525_v10, %v3280_v2 }
0x14ef   :  { %v3296_v28 = vadd.f32 %v3526_v35, %v3288_v37 }
0x150c   :  { %v3273_v5 = vpop.xlane.xlu1 %3272 }
0x150d   :  { %v3275_v41 = vmul.f32 0.03125, %v3273_v5 }
0x150f   :  { %v3277_v33 = vadd.f32 1e-05, %v3275_v41 }
0x1511   :  { %4370 = vrsqrt.f32 %v3277_v33 }
0x1512   :  { %v3110_v38 = vpop.f32.mrb[140].mxu1 }
0x1513   :  { %v3111_v51 = vadd.f32 %v5785_v14, %v3110_v38  ;;  %v4092_v15 = vpop.f32.mrb[141].mxu1 }
0x1514   :  { %v3113_v8 = vpop.f32.mrb[142].mxu1 }
0x1515   :  { %v3120_v1 = vmax.f32 %v3111_v51, 0.0  ;;  %v4093_v44 = vpop.f32.mrb[143].mxu1 }
0x1517   :  { %v3123_v27 = vpack.c.bf16 %v3120_v1, %v3120_v1 }
0x1519   :  { %4119 = vmatmul.mubr.bf16.gmra.mrb[140].mxu0 %v3123_v27 }
0x151b   :  { %v4371_v13 = vpop.eup %4370 }
0x151c   :  { %v3281_v45 = vmul.f32 %v4371_v13, %v3265_v30 }
0x151e   :  { %v3289_v14 = vmul.f32 %v3525_v10, %v3281_v45 }
0x1520   :  { %v3297_v58 = vadd.f32 %v3526_v35, %v3289_v14 }
0x1522   :  { %v3298_v49 = vsel %vm387_vm3, %v3296_v28, %v3297_v58 }
0x1523   :  { %v3299_v53 = vpack.c.bf16 %v3298_v49, %v3298_v49 }
0x1525   :  { %4127 = vmatmul.mubr.msk.bf16.vlgmr.msra.gmra.mrb[144].mxu1 %vm147_vm1, %v3299_v53 }
0x15ec   :  { %v3245_v11 = vpop.f32.mrb[140].mxu0 }
0x15ed   :  { %v4120_v61 = vpop.f32.mrb[141].mxu0 }
0x15ee   :  { %v3247_v39 = vpop.f32.mrb[142].mxu0 }
0x15ef   :  { %v4121_v3 = vpop.f32.mrb[143].mxu0 }
0x15f8   :  { %v3360_v52 = vpop.f32.mrb[144].mxu1 }
0x15f9   :  { %v3361_v43 = vadd.f32 %v3527_v17, %v3360_v52  ;;  %v4128_v57 = vpop.f32.mrb[145].mxu1 }
0x15fa   :  { %v3363_v47 = vpop.f32.mrb[146].mxu1 }
0x15fb   :  { %3366 = vst [vmem:[#allocation3] sm:$0x3] %v3361_v43  ;;  %v4129_v25 = vpop.f32.mrb[147].mxu1 }
0x15fc   :  { %4388 = shalt.err (!%p4385_p4)
}
0x15fd   :  { %s4389_s14 = scalar_lea.hbm %s5858_s15, 32 }
0x15fe   :  { %p4390_p5 = scmp.ne.s32.totalorder %s5858_s15, %s4389_s14  ;;  %p4393_p6 = scmp.lt.u32.totalorder %s4389_s14, %s5858_s15 }
0x1600   :  { %p4395_p7 = pnand %p4393_p6, %p4390_p5 }
0x1602   :  { %4398 = shalt.err (!%p4395_p7)
}
0x1603   :  { %3376 = dma.vmem_to_hbm [thread:$0]  %s3374_s20, 32, %s5858_s15, [#allocation4]  }
0x1604   :  { %4399 = dma.done.wait [#allocation4], 32  }
0x1605   :  { %4400 = vsyncadd [#allocation4], 4294967264 }
0x1606   :  { %3380 = vsyncpa [#allocation4], 1 }

</bundles_post_ra>
